<compile_context>
chip_gen: v7x
topology: tpu7x:2x2x1
jax: 0.10.0
libtpu: 0.0.40
codegen_flags: <defaults>
</compile_context>

<pallas_src>
import jax
import jax.numpy as jnp
from jax.experimental import pallas as pl
from jax.experimental.pallas import tpu as pltpu

KSIZE = 7
PAD = (KSIZE - 1) // 2  # 3
BN_EPS = 1e-5


def _pick_batch_block(n, per_image_bytes, target_bytes=512 * 1024):
    """Largest divisor of n whose block stays under target_bytes, while keeping
    at least 2 grid steps (when possible) so both v7x TensorCores get work."""
    best = 1
    for nb in range(1, n + 1):
        if n % nb:
            continue
        if n >= 2 and n // nb < 2:
            continue
        if nb * per_image_bytes <= target_bytes:
            best = max(best, nb)
    return best


def _make_spatial_gate_kernel(Nb, C, CB, H, W):
    HW = H * W
    num_cc = C // CB
    inv_c = 1.0 / C

    def kernel(x_ref, w_ref, b_ref, o_ref,
               flat_ref, pool_ref, shift_ref, gate2d_ref, gate_flat_ref):
        # x_ref/o_ref   : (Nb, C, HW)  VMEM  lane-dense image block
        # w_ref         : (2*7*7,)     SMEM  depthwise * pointwise * bn_scale
        # b_ref         : (1,)         SMEM  folded BN bias
        # flat_ref      : (2, HW)            pooled maps, flat (lane-dense)
        # pool_ref      : (2, H, W+6)        pooled maps, lane-padded 2-D
        # shift_ref     : (14, H+6, W)       lane-shifted, sublane-padded maps
        # gate2d_ref    : (H, W)             sigmoid gate, 2-D
        # gate_flat_ref : (1, HW)            sigmoid gate, flat

        # Zero only the pad borders; interiors are rewritten for every image.
        # (Done every grid step: safe under megacore "parallel" splitting.)
        pool_ref[:, :, 0:PAD] = jnp.zeros((2, H, PAD), jnp.float32)
        pool_ref[:, :, PAD + W:] = jnp.zeros((2, H, PAD), jnp.float32)
        shift_ref[:, 0:PAD, :] = jnp.zeros((2 * KSIZE, PAD, W), jnp.float32)
        shift_ref[:, PAD + H:, :] = jnp.zeros((2 * KSIZE, PAD, W), jnp.float32)

        bias = b_ref[0]

        def image_body(b, carry):
            # --- ChannelPool: running max / sum over C, CB channels at a time
            def pool_body(cc, ms):
                m, s = ms
                c0 = pl.multiple_of(cc * CB, CB)
                xc = x_ref[b, pl.ds(c0, CB), :].astype(jnp.float32)  # (CB, HW)
                m = jnp.maximum(m, jnp.max(xc, axis=0, keepdims=True))
                s = s + jnp.sum(xc, axis=0, keepdims=True)
                return m, s

            m0 = jnp.full((1, HW), -jnp.inf, dtype=jnp.float32)
            s0 = jnp.zeros((1, HW), dtype=jnp.float32)
            x_max, x_sum = jax.lax.fori_loop(0, num_cc, pool_body, (m0, s0))
            flat_ref[0:1, :] = x_max
            flat_ref[1:2, :] = x_sum * jnp.float32(inv_c)

            # --- flat -> lane-padded 2-D pooled maps (ref->ref row copies) ---
            for c in range(2):
                for r in range(H):
                    pool_ref[c, r:r + 1, PAD:PAD + W] = (
                        flat_ref[c:c + 1, r * W:(r + 1) * W])

            # --- 14 lane-shifted copies: one lane shift per (channel, dx) ---
            for c in range(2):
                for dx in range(KSIZE):
                    shift_ref[c * KSIZE + dx, PAD:PAD + H, :] = (
                        pool_ref[c, :, dx:dx + W])

            # --- depthwise 7x7 + pointwise 1x1 + BN scale, folded into w_ref;
            #     inner loop uses only cheap sublane-offset ref loads ---
            acc = jnp.zeros((H, W), jnp.float32)
            for c in range(2):
                for dx in range(KSIZE):
                    src = c * KSIZE + dx
                    for dy in range(KSIZE):
                        w = w_ref[c * KSIZE * KSIZE + dy * KSIZE + dx]
                        acc = acc + w * shift_ref[src, dy:dy + H, :]
            gate2d_ref[...] = jax.nn.sigmoid(acc + bias)

            # --- 2-D gate -> flat gate (ref->ref row copies) ---
            for r in range(H):
                gate_flat_ref[0:1, r * W:(r + 1) * W] = gate2d_ref[r:r + 1, :]
            gate = gate_flat_ref[...].astype(o_ref.dtype)            # (1, HW)

            # --- broadcast multiply: lane-dense loads / unmasked stores ---
            def mul_body(cc, dummy):
                c0 = pl.multiple_of(cc * CB, CB)
                xc = x_ref[b, pl.ds(c0, CB), :]
                o_ref[b, pl.ds(c0, CB), :] = (xc * gate).astype(o_ref.dtype)
                return dummy

            jax.lax.fori_loop(0, num_cc, mul_body, 0)
            return carry

        jax.lax.fori_loop(0, Nb, image_body, 0)

    return kernel


def spatial_gate(x, dw_weight, pw_weight, bn_params):
    """x: (N, C, H, W). dw_weight: (2, 7, 7). pw_weight: (2,). bn_params: (4,)
    = [gamma, beta, running_mean, running_var] of BatchNorm2d(1), inference."""
    N, C, H, W = x.shape
    HW = H * W

    gamma, beta = bn_params[0], bn_params[1]
    r_mean, r_var = bn_params[2], bn_params[3]
    bn_scale = gamma * jax.lax.rsqrt(r_var + BN_EPS)
    bn_bias = beta - r_mean * bn_scale

    # Fold pointwise 1x1 weights and the BN scale into the depthwise taps.
    eff_w = (dw_weight.astype(jnp.float32)
             * pw_weight.astype(jnp.float32)[:, None, None]
             * bn_scale).reshape(-1)                        # (98,)
    bias = jnp.reshape(bn_bias, (1,)).astype(jnp.float32)   # (1,)

    Nb = _pick_batch_block(N, C * HW * x.dtype.itemsize)
    CB = 8 if C % 8 == 0 else C   # channel chunk (sublane granularity)

    x_flat = x.reshape(N, C, HW)  # lane-dense: H*W on the lane axis

    out_flat = pl.pallas_call(
        _make_spatial_gate_kernel(Nb, C, CB, H, W),
        out_shape=jax.ShapeDtypeStruct((N, C, HW), x.dtype),
        grid_spec=pltpu.PrefetchScalarGridSpec(
            num_scalar_prefetch=0,
            grid=(N // Nb,),
            in_specs=[
                pl.BlockSpec((Nb, C, HW), lambda n: (n, 0, 0)),
                pl.BlockSpec(memory_space=pltpu.MemorySpace.SMEM),
                pl.BlockSpec(memory_space=pltpu.MemorySpace.SMEM),
            ],
            out_specs=pl.BlockSpec((Nb, C, HW), lambda n: (n, 0, 0)),
            scratch_shapes=[
                pltpu.VMEM((2, HW), jnp.float32),                      # flat pooled maps
                pltpu.VMEM((2, H, W + 2 * PAD), jnp.float32),          # lane-padded maps
                pltpu.VMEM((2 * KSIZE, H + 2 * PAD, W), jnp.float32),  # shifted copies
                pltpu.VMEM((H, W), jnp.float32),                       # 2-D gate
                pltpu.VMEM((1, HW), jnp.float32),                      # flat gate
            ],
        ),
        compiler_params=pltpu.CompilerParams(
            dimension_semantics=("parallel",),
        ),
    )(x_flat, eff_w, bias)

    return out_flat.reshape(N, C, H, W)


def spatial_gate_reference(x, dw_weight, pw_weight, bn_params):
    """Pure-JAX reference (XLA convs) for correctness checking."""
    x_max = jnp.max(x, axis=1, keepdims=True)
    x_mean = jnp.mean(x, axis=1, keepdims=True)
    comp = jnp.concatenate([x_max, x_mean], axis=1)          # (N, 2, H, W)

    dw_w = dw_weight.reshape(2, 1, KSIZE, KSIZE)             # OIHW, groups=2
    y = jax.lax.conv_general_dilated(
        comp, dw_w, window_strides=(1, 1),
        padding=((PAD, PAD), (PAD, PAD)),
        feature_group_count=2,
        dimension_numbers=("NCHW", "OIHW", "NCHW"))
    pw_w = pw_weight.reshape(1, 2, 1, 1)
    y = jax.lax.conv_general_dilated(
        y, pw_w, window_strides=(1, 1), padding="VALID",
        dimension_numbers=("NCHW", "OIHW", "NCHW"))

    gamma, beta, r_mean, r_var = bn_params
    y = (y - r_mean) * jax.lax.rsqrt(r_var + BN_EPS) * gamma + beta
    scale = jax.nn.sigmoid(y)
    return x * scale


if __name__ == "__main__":
    key = jax.random.PRNGKey(0)
    k_dw, k_pw, k_x = jax.random.split(key, 3)

    N, C, H, W = 2, 4, 16, 16
    x = jax.random.normal(k_x, (N, C, H, W), dtype=jnp.float32)

    # Deterministic synthetic parameters (shapes from the module __init__).
    dw_weight = 0.1 * jax.random.normal(k_dw, (2, KSIZE, KSIZE), dtype=jnp.float32)
    pw_weight = 0.5 * jax.random.normal(k_pw, (2,), dtype=jnp.float32)
    # BatchNorm2d(1): [gamma, beta, running_mean, running_var] at fresh init.
    bn_params = jnp.array([1.0, 0.0, 0.0, 1.0], dtype=jnp.float32)

    out = jax.block_until_ready(spatial_gate(x, dw_weight, pw_weight, bn_params))
    ref = jax.block_until_ready(
        spatial_gate_reference(x, dw_weight, pw_weight, bn_params))

    assert out.shape == x.shape and out.dtype == x.dtype
    assert jnp.allclose(out, ref, atol=1e-5, rtol=1e-5), (
        float(jnp.max(jnp.abs(out - ref))))

    print("KERNEL_OK")
</pallas_src>

<mosaic_0001>
module attributes {stable_mosaic.version = 11 : i64} {
  func.func @kernel(%arg0: i32, %arg1: memref<1x4x256xf32, #tpu.memory_space<vmem>>, %arg2: memref<98xf32, #tpu.memory_space<smem>>, %arg3: memref<1xf32, #tpu.memory_space<smem>>, %arg4: memref<1x4x256xf32, #tpu.memory_space<vmem>>, %arg5: memref<2x256xf32, #tpu.memory_space<vmem>>, %arg6: memref<2x16x22xf32, #tpu.memory_space<vmem>>, %arg7: memref<14x22x16xf32, #tpu.memory_space<vmem>>, %arg8: memref<16x16xf32, #tpu.memory_space<vmem>>, %arg9: memref<1x256xf32, #tpu.memory_space<vmem>>) attributes {dimension_semantics = [#tpu.dimension_semantics<parallel>], iteration_bounds = array<i64: 2>, scalar_prefetch = 0 : i64, scratch_operands = 5 : i64, tpu.core_type = #tpu.core_type<tc>, window_params = [{transform_indices = @transform_0, window_bounds = array<i64: 1, 4, 256>}, {transform_indices = @transform_1, window_bounds = array<i64: 98>}, {transform_indices = @transform_2, window_bounds = array<i64: 1>}, {transform_indices = @transform_3, window_bounds = array<i64: 1, 4, 256>}]} {
    %cst = arith.constant 0.000000e+00 : f32
    %0 = vector.broadcast %cst : f32 to vector<2x16x3xf32>
    %c0 = arith.constant 0 : index
    %c0_0 = arith.constant 0 : index
    %c0_1 = arith.constant 0 : index
    %1 = vector.load %arg6[%c0, %c0_0, %c0_1] : memref<2x16x22xf32, #tpu.memory_space<vmem>>, vector<2x16x3xf32>
    tpu.vector_store %arg6[%c0, %c0_0, %c0_1], %0 {strides = array<i32>} : memref<2x16x22xf32, #tpu.memory_space<vmem>>, vector<2x16x3xf32>,
    %cst_2 = arith.constant 0.000000e+00 : f32
    %2 = vector.broadcast %cst_2 : f32 to vector<2x16x3xf32>
    %c0_3 = arith.constant 0 : index
    %c0_4 = arith.constant 0 : index
    %c19 = arith.constant 19 : index
    %3 = vector.load %arg6[%c0_3, %c0_4, %c19] : memref<2x16x22xf32, #tpu.memory_space<vmem>>, vector<2x16x3xf32>
    tpu.vector_store %arg6[%c0_3, %c0_4, %c19], %2 {strides = array<i32>} : memref<2x16x22xf32, #tpu.memory_space<vmem>>, vector<2x16x3xf32>,
    %cst_5 = arith.constant 0.000000e+00 : f32
    %4 = vector.broadcast %cst_5 : f32 to vector<14x3x16xf32>
    %c0_6 = arith.constant 0 : index
    %c0_7 = arith.constant 0 : index
    %c0_8 = arith.constant 0 : index
    %5 = vector.load %arg7[%c0_6, %c0_7, %c0_8] : memref<14x22x16xf32, #tpu.memory_space<vmem>>, vector<14x3x16xf32>
    tpu.vector_store %arg7[%c0_6, %c0_7, %c0_8], %4 {strides = array<i32>} : memref<14x22x16xf32, #tpu.memory_space<vmem>>, vector<14x3x16xf32>,
    %cst_9 = arith.constant 0.000000e+00 : f32
    %6 = vector.broadcast %cst_9 : f32 to vector<14x3x16xf32>
    %c0_10 = arith.constant 0 : index
    %c19_11 = arith.constant 19 : index
    %c0_12 = arith.constant 0 : index
    %7 = vector.load %arg7[%c0_10, %c19_11, %c0_12] : memref<14x22x16xf32, #tpu.memory_space<vmem>>, vector<14x3x16xf32>
    tpu.vector_store %arg7[%c0_10, %c19_11, %c0_12], %6 {strides = array<i32>} : memref<14x22x16xf32, #tpu.memory_space<vmem>>, vector<14x3x16xf32>,
    %c0_13 = arith.constant 0 : index
    %8 = memref.load %arg3[%c0_13] : memref<1xf32, #tpu.memory_space<smem>>
    %c0_i32 = arith.constant 0 : i32
    %cst_14 = arith.constant 0xFF800000 : f32
    %9 = vector.broadcast %cst_14 : f32 to vector<1x256xf32>
    %cst_15 = arith.constant 0.000000e+00 : f32
    %10 = vector.broadcast %cst_15 : f32 to vector<1x256xf32>
    %c0_i32_16 = arith.constant 0 : i32
    %c4_i32 = arith.constant 4 : i32
    %11 = arith.muli %c0_i32_16, %c4_i32 : i32
    %12 = tpu.assume_multiple %11, 4 : i32
    %13 = arith.index_cast %c0_i32 : i32 to index
    %14 = arith.index_cast %12 : i32 to index
    %c0_17 = arith.constant 0 : index
    %15 = vector.load %arg1[%13, %14, %c0_17] : memref<1x4x256xf32, #tpu.memory_space<vmem>>, vector<1x4x256xf32>
    %16 = vector.shape_cast %15 : vector<1x4x256xf32> to vector<4x256xf32>
    %cst_18 = arith.constant dense<0xFF800000> : vector<256xf32>
    %17 = vector.multi_reduction <maximumf>, %16, %cst_18 [0] : vector<4x256xf32> to vector<256xf32>
    %18 = vector.shape_cast %17 : vector<256xf32> to vector<1x256xf32>
    %19 = arith.maximumf %9, %18 : vector<1x256xf32>
    %cst_19 = arith.constant dense<0.000000e+00> : vector<256xf32>
    %20 = vector.multi_reduction <add>, %16, %cst_19 [0] : vector<4x256xf32> to vector<256xf32>
    %21 = vector.shape_cast %20 : vector<256xf32> to vector<1x256xf32>
    %22 = arith.addf %10, %21 : vector<1x256xf32>
    %c1_i32 = arith.constant 1 : i32
    %c0_20 = arith.constant 0 : index
    %c0_21 = arith.constant 0 : index
    %23 = vector.load %arg5[%c0_20, %c0_21] : memref<2x256xf32, #tpu.memory_space<vmem>>, vector<1x256xf32>
    tpu.vector_store %arg5[%c0_20, %c0_21], %19 {strides = array<i32>} : memref<2x256xf32, #tpu.memory_space<vmem>>, vector<1x256xf32>,
    %cst_22 = arith.constant 2.500000e-01 : f32
    %24 = vector.broadcast %cst_22 : f32 to vector<1x256xf32>
    %25 = arith.mulf %22, %24 : vector<1x256xf32>
    %c1 = arith.constant 1 : index
    %c0_23 = arith.constant 0 : index
    %26 = vector.load %arg5[%c1, %c0_23] : memref<2x256xf32, #tpu.memory_space<vmem>>, vector<1x256xf32>
    tpu.vector_store %arg5[%c1, %c0_23], %25 {strides = array<i32>} : memref<2x256xf32, #tpu.memory_space<vmem>>, vector<1x256xf32>,
    %c0_24 = arith.constant 0 : index
    %c0_25 = arith.constant 0 : index
    %27 = vector.load %arg5[%c0_24, %c0_25] : memref<2x256xf32, #tpu.memory_space<vmem>>, vector<1x16xf32>
    %c0_26 = arith.constant 0 : index
    %c0_27 = arith.constant 0 : index
    %c3 = arith.constant 3 : index
    %28 = vector.load %arg6[%c0_26, %c0_27, %c3] : memref<2x16x22xf32, #tpu.memory_space<vmem>>, vector<1x1x16xf32>
    %29 = vector.shape_cast %28 : vector<1x1x16xf32> to vector<1x16xf32>
    %30 = vector.shape_cast %27 : vector<1x16xf32> to vector<1x1x16xf32>
    tpu.vector_store %arg6[%c0_26, %c0_27, %c3], %30 {strides = array<i32>} : memref<2x16x22xf32, #tpu.memory_space<vmem>>, vector<1x1x16xf32>,
    %c0_28 = arith.constant 0 : index
    %c16 = arith.constant 16 : index
    %31 = vector.load %arg5[%c0_28, %c16] : memref<2x256xf32, #tpu.memory_space<vmem>>, vector<1x16xf32>
    %c0_29 = arith.constant 0 : index
    %c1_30 = arith.constant 1 : index
    %c3_31 = arith.constant 3 : index
    %32 = vector.load %arg6[%c0_29, %c1_30, %c3_31] : memref<2x16x22xf32, #tpu.memory_space<vmem>>, vector<1x1x16xf32>
    %33 = vector.shape_cast %32 : vector<1x1x16xf32> to vector<1x16xf32>
    %34 = vector.shape_cast %31 : vector<1x16xf32> to vector<1x1x16xf32>
    tpu.vector_store %arg6[%c0_29, %c1_30, %c3_31], %34 {strides = array<i32>} : memref<2x16x22xf32, #tpu.memory_space<vmem>>, vector<1x1x16xf32>,
    %c0_32 = arith.constant 0 : index
    %c32 = arith.constant 32 : index
    %35 = vector.load %arg5[%c0_32, %c32] : memref<2x256xf32, #tpu.memory_space<vmem>>, vector<1x16xf32>
    %c0_33 = arith.constant 0 : index
    %c2 = arith.constant 2 : index
    %c3_34 = arith.constant 3 : index
    %36 = vector.load %arg6[%c0_33, %c2, %c3_34] : memref<2x16x22xf32, #tpu.memory_space<vmem>>, vector<1x1x16xf32>
    %37 = vector.shape_cast %36 : vector<1x1x16xf32> to vector<1x16xf32>
    %38 = vector.shape_cast %35 : vector<1x16xf32> to vector<1x1x16xf32>
    tpu.vector_store %arg6[%c0_33, %c2, %c3_34], %38 {strides = array<i32>} : memref<2x16x22xf32, #tpu.memory_space<vmem>>, vector<1x1x16xf32>,
    %c0_35 = arith.constant 0 : index
    %c48 = arith.constant 48 : index
    %39 = vector.load %arg5[%c0_35, %c48] : memref<2x256xf32, #tpu.memory_space<vmem>>, vector<1x16xf32>
    %c0_36 = arith.constant 0 : index
    %c3_37 = arith.constant 3 : index
    %c3_38 = arith.constant 3 : index
    %40 = vector.load %arg6[%c0_36, %c3_37, %c3_38] : memref<2x16x22xf32, #tpu.memory_space<vmem>>, vector<1x1x16xf32>
    %41 = vector.shape_cast %40 : vector<1x1x16xf32> to vector<1x16xf32>
    %42 = vector.shape_cast %39 : vector<1x16xf32> to vector<1x1x16xf32>
    tpu.vector_store %arg6[%c0_36, %c3_37, %c3_38], %42 {strides = array<i32>} : memref<2x16x22xf32, #tpu.memory_space<vmem>>, vector<1x1x16xf32>,
    %c0_39 = arith.constant 0 : index
    %c64 = arith.constant 64 : index
    %43 = vector.load %arg5[%c0_39, %c64] : memref<2x256xf32, #tpu.memory_space<vmem>>, vector<1x16xf32>
    %c0_40 = arith.constant 0 : index
    %c4 = arith.constant 4 : index
    %c3_41 = arith.constant 3 : index
    %44 = vector.load %arg6[%c0_40, %c4, %c3_41] : memref<2x16x22xf32, #tpu.memory_space<vmem>>, vector<1x1x16xf32>
    %45 = vector.shape_cast %44 : vector<1x1x16xf32> to vector<1x16xf32>
    %46 = vector.shape_cast %43 : vector<1x16xf32> to vector<1x1x16xf32>
    tpu.vector_store %arg6[%c0_40, %c4, %c3_41], %46 {strides = array<i32>} : memref<2x16x22xf32, #tpu.memory_space<vmem>>, vector<1x1x16xf32>,
    %c0_42 = arith.constant 0 : index
    %c80 = arith.constant 80 : index
    %47 = vector.load %arg5[%c0_42, %c80] : memref<2x256xf32, #tpu.memory_space<vmem>>, vector<1x16xf32>
    %c0_43 = arith.constant 0 : index
    %c5 = arith.constant 5 : index
    %c3_44 = arith.constant 3 : index
    %48 = vector.load %arg6[%c0_43, %c5, %c3_44] : memref<2x16x22xf32, #tpu.memory_space<vmem>>, vector<1x1x16xf32>
    %49 = vector.shape_cast %48 : vector<1x1x16xf32> to vector<1x16xf32>
    %50 = vector.shape_cast %47 : vector<1x16xf32> to vector<1x1x16xf32>
    tpu.vector_store %arg6[%c0_43, %c5, %c3_44], %50 {strides = array<i32>} : memref<2x16x22xf32, #tpu.memory_space<vmem>>, vector<1x1x16xf32>,
    %c0_45 = arith.constant 0 : index
    %c96 = arith.constant 96 : index
    %51 = vector.load %arg5[%c0_45, %c96] : memref<2x256xf32, #tpu.memory_space<vmem>>, vector<1x16xf32>
    %c0_46 = arith.constant 0 : index
    %c6 = arith.constant 6 : index
    %c3_47 = arith.constant 3 : index
    %52 = vector.load %arg6[%c0_46, %c6, %c3_47] : memref<2x16x22xf32, #tpu.memory_space<vmem>>, vector<1x1x16xf32>
    %53 = vector.shape_cast %52 : vector<1x1x16xf32> to vector<1x16xf32>
    %54 = vector.shape_cast %51 : vector<1x16xf32> to vector<1x1x16xf32>
    tpu.vector_store %arg6[%c0_46, %c6, %c3_47], %54 {strides = array<i32>} : memref<2x16x22xf32, #tpu.memory_space<vmem>>, vector<1x1x16xf32>,
    %c0_48 = arith.constant 0 : index
    %c112 = arith.constant 112 : index
    %55 = vector.load %arg5[%c0_48, %c112] : memref<2x256xf32, #tpu.memory_space<vmem>>, vector<1x16xf32>
    %c0_49 = arith.constant 0 : index
    %c7 = arith.constant 7 : index
    %c3_50 = arith.constant 3 : index
    %56 = vector.load %arg6[%c0_49, %c7, %c3_50] : memref<2x16x22xf32, #tpu.memory_space<vmem>>, vector<1x1x16xf32>
    %57 = vector.shape_cast %56 : vector<1x1x16xf32> to vector<1x16xf32>
    %58 = vector.shape_cast %55 : vector<1x16xf32> to vector<1x1x16xf32>
    tpu.vector_store %arg6[%c0_49, %c7, %c3_50], %58 {strides = array<i32>} : memref<2x16x22xf32, #tpu.memory_space<vmem>>, vector<1x1x16xf32>,
    %c0_51 = arith.constant 0 : index
    %c128 = arith.constant 128 : index
    %59 = vector.load %arg5[%c0_51, %c128] : memref<2x256xf32, #tpu.memory_space<vmem>>, vector<1x16xf32>
    %c0_52 = arith.constant 0 : index
    %c8 = arith.constant 8 : index
    %c3_53 = arith.constant 3 : index
    %60 = vector.load %arg6[%c0_52, %c8, %c3_53] : memref<2x16x22xf32, #tpu.memory_space<vmem>>, vector<1x1x16xf32>
    %61 = vector.shape_cast %60 : vector<1x1x16xf32> to vector<1x16xf32>
    %62 = vector.shape_cast %59 : vector<1x16xf32> to vector<1x1x16xf32>
    tpu.vector_store %arg6[%c0_52, %c8, %c3_53], %62 {strides = array<i32>} : memref<2x16x22xf32, #tpu.memory_space<vmem>>, vector<1x1x16xf32>,
    %c0_54 = arith.constant 0 : index
    %c144 = arith.constant 144 : index
    %63 = vector.load %arg5[%c0_54, %c144] : memref<2x256xf32, #tpu.memory_space<vmem>>, vector<1x16xf32>
    %c0_55 = arith.constant 0 : index
    %c9 = arith.constant 9 : index
    %c3_56 = arith.constant 3 : index
    %64 = vector.load %arg6[%c0_55, %c9, %c3_56] : memref<2x16x22xf32, #tpu.memory_space<vmem>>, vector<1x1x16xf32>
    %65 = vector.shape_cast %64 : vector<1x1x16xf32> to vector<1x16xf32>
    %66 = vector.shape_cast %63 : vector<1x16xf32> to vector<1x1x16xf32>
    tpu.vector_store %arg6[%c0_55, %c9, %c3_56], %66 {strides = array<i32>} : memref<2x16x22xf32, #tpu.memory_space<vmem>>, vector<1x1x16xf32>,
    %c0_57 = arith.constant 0 : index
    %c160 = arith.constant 160 : index
    %67 = vector.load %arg5[%c0_57, %c160] : memref<2x256xf32, #tpu.memory_space<vmem>>, vector<1x16xf32>
    %c0_58 = arith.constant 0 : index
    %c10 = arith.constant 10 : index
    %c3_59 = arith.constant 3 : index
    %68 = vector.load %arg6[%c0_58, %c10, %c3_59] : memref<2x16x22xf32, #tpu.memory_space<vmem>>, vector<1x1x16xf32>
    %69 = vector.shape_cast %68 : vector<1x1x16xf32> to vector<1x16xf32>
    %70 = vector.shape_cast %67 : vector<1x16xf32> to vector<1x1x16xf32>
    tpu.vector_store %arg6[%c0_58, %c10, %c3_59], %70 {strides = array<i32>} : memref<2x16x22xf32, #tpu.memory_space<vmem>>, vector<1x1x16xf32>,
    %c0_60 = arith.constant 0 : index
    %c176 = arith.constant 176 : index
    %71 = vector.load %arg5[%c0_60, %c176] : memref<2x256xf32, #tpu.memory_space<vmem>>, vector<1x16xf32>
    %c0_61 = arith.constant 0 : index
    %c11 = arith.constant 11 : index
    %c3_62 = arith.constant 3 : index
    %72 = vector.load %arg6[%c0_61, %c11, %c3_62] : memref<2x16x22xf32, #tpu.memory_space<vmem>>, vector<1x1x16xf32>
    %73 = vector.shape_cast %72 : vector<1x1x16xf32> to vector<1x16xf32>
    %74 = vector.shape_cast %71 : vector<1x16xf32> to vector<1x1x16xf32>
    tpu.vector_store %arg6[%c0_61, %c11, %c3_62], %74 {strides = array<i32>} : memref<2x16x22xf32, #tpu.memory_space<vmem>>, vector<1x1x16xf32>,
    %c0_63 = arith.constant 0 : index
    %c192 = arith.constant 192 : index
    %75 = vector.load %arg5[%c0_63, %c192] : memref<2x256xf32, #tpu.memory_space<vmem>>, vector<1x16xf32>
    %c0_64 = arith.constant 0 : index
    %c12 = arith.constant 12 : index
    %c3_65 = arith.constant 3 : index
    %76 = vector.load %arg6[%c0_64, %c12, %c3_65] : memref<2x16x22xf32, #tpu.memory_space<vmem>>, vector<1x1x16xf32>
    %77 = vector.shape_cast %76 : vector<1x1x16xf32> to vector<1x16xf32>
    %78 = vector.shape_cast %75 : vector<1x16xf32> to vector<1x1x16xf32>
    tpu.vector_store %arg6[%c0_64, %c12, %c3_65], %78 {strides = array<i32>} : memref<2x16x22xf32, #tpu.memory_space<vmem>>, vector<1x1x16xf32>,
    %c0_66 = arith.constant 0 : index
    %c208 = arith.constant 208 : index
    %79 = vector.load %arg5[%c0_66, %c208] : memref<2x256xf32, #tpu.memory_space<vmem>>, vector<1x16xf32>
    %c0_67 = arith.constant 0 : index
    %c13 = arith.constant 13 : index
    %c3_68 = arith.constant 3 : index
    %80 = vector.load %arg6[%c0_67, %c13, %c3_68] : memref<2x16x22xf32, #tpu.memory_space<vmem>>, vector<1x1x16xf32>
    %81 = vector.shape_cast %80 : vector<1x1x16xf32> to vector<1x16xf32>
    %82 = vector.shape_cast %79 : vector<1x16xf32> to vector<1x1x16xf32>
    tpu.vector_store %arg6[%c0_67, %c13, %c3_68], %82 {strides = array<i32>} : memref<2x16x22xf32, #tpu.memory_space<vmem>>, vector<1x1x16xf32>,
    %c0_69 = arith.constant 0 : index
    %c224 = arith.constant 224 : index
    %83 = vector.load %arg5[%c0_69, %c224] : memref<2x256xf32, #tpu.memory_space<vmem>>, vector<1x16xf32>
    %c0_70 = arith.constant 0 : index
    %c14 = arith.constant 14 : index
    %c3_71 = arith.constant 3 : index
    %84 = vector.load %arg6[%c0_70, %c14, %c3_71] : memref<2x16x22xf32, #tpu.memory_space<vmem>>, vector<1x1x16xf32>
    %85 = vector.shape_cast %84 : vector<1x1x16xf32> to vector<1x16xf32>
    %86 = vector.shape_cast %83 : vector<1x16xf32> to vector<1x1x16xf32>
    tpu.vector_store %arg6[%c0_70, %c14, %c3_71], %86 {strides = array<i32>} : memref<2x16x22xf32, #tpu.memory_space<vmem>>, vector<1x1x16xf32>,
    %c0_72 = arith.constant 0 : index
    %c240 = arith.constant 240 : index
    %87 = vector.load %arg5[%c0_72, %c240] : memref<2x256xf32, #tpu.memory_space<vmem>>, vector<1x16xf32>
    %c0_73 = arith.constant 0 : index
    %c15 = arith.constant 15 : index
    %c3_74 = arith.constant 3 : index
    %88 = vector.load %arg6[%c0_73, %c15, %c3_74] : memref<2x16x22xf32, #tpu.memory_space<vmem>>, vector<1x1x16xf32>
    %89 = vector.shape_cast %88 : vector<1x1x16xf32> to vector<1x16xf32>
    %90 = vector.shape_cast %87 : vector<1x16xf32> to vector<1x1x16xf32>
    tpu.vector_store %arg6[%c0_73, %c15, %c3_74], %90 {strides = array<i32>} : memref<2x16x22xf32, #tpu.memory_space<vmem>>, vector<1x1x16xf32>,
    %c1_75 = arith.constant 1 : index
    %c0_76 = arith.constant 0 : index
    %91 = vector.load %arg5[%c1_75, %c0_76] : memref<2x256xf32, #tpu.memory_space<vmem>>, vector<1x16xf32>
    %c1_77 = arith.constant 1 : index
    %c0_78 = arith.constant 0 : index
    %c3_79 = arith.constant 3 : index
    %92 = vector.load %arg6[%c1_77, %c0_78, %c3_79] : memref<2x16x22xf32, #tpu.memory_space<vmem>>, vector<1x1x16xf32>
    %93 = vector.shape_cast %92 : vector<1x1x16xf32> to vector<1x16xf32>
    %94 = vector.shape_cast %91 : vector<1x16xf32> to vector<1x1x16xf32>
    tpu.vector_store %arg6[%c1_77, %c0_78, %c3_79], %94 {strides = array<i32>} : memref<2x16x22xf32, #tpu.memory_space<vmem>>, vector<1x1x16xf32>,
    %c1_80 = arith.constant 1 : index
    %c16_81 = arith.constant 16 : index
    %95 = vector.load %arg5[%c1_80, %c16_81] : memref<2x256xf32, #tpu.memory_space<vmem>>, vector<1x16xf32>
    %c1_82 = arith.constant 1 : index
    %c1_83 = arith.constant 1 : index
    %c3_84 = arith.constant 3 : index
    %96 = vector.load %arg6[%c1_82, %c1_83, %c3_84] : memref<2x16x22xf32, #tpu.memory_space<vmem>>, vector<1x1x16xf32>
    %97 = vector.shape_cast %96 : vector<1x1x16xf32> to vector<1x16xf32>
    %98 = vector.shape_cast %95 : vector<1x16xf32> to vector<1x1x16xf32>
    tpu.vector_store %arg6[%c1_82, %c1_83, %c3_84], %98 {strides = array<i32>} : memref<2x16x22xf32, #tpu.memory_space<vmem>>, vector<1x1x16xf32>,
    %c1_85 = arith.constant 1 : index
    %c32_86 = arith.constant 32 : index
    %99 = vector.load %arg5[%c1_85, %c32_86] : memref<2x256xf32, #tpu.memory_space<vmem>>, vector<1x16xf32>
    %c1_87 = arith.constant 1 : index
    %c2_88 = arith.constant 2 : index
    %c3_89 = arith.constant 3 : index
    %100 = vector.load %arg6[%c1_87, %c2_88, %c3_89] : memref<2x16x22xf32, #tpu.memory_space<vmem>>, vector<1x1x16xf32>
    %101 = vector.shape_cast %100 : vector<1x1x16xf32> to vector<1x16xf32>
    %102 = vector.shape_cast %99 : vector<1x16xf32> to vector<1x1x16xf32>
    tpu.vector_store %arg6[%c1_87, %c2_88, %c3_89], %102 {strides = array<i32>} : memref<2x16x22xf32, #tpu.memory_space<vmem>>, vector<1x1x16xf32>,
    %c1_90 = arith.constant 1 : index
    %c48_91 = arith.constant 48 : index
    %103 = vector.load %arg5[%c1_90, %c48_91] : memref<2x256xf32, #tpu.memory_space<vmem>>, vector<1x16xf32>
    %c1_92 = arith.constant 1 : index
    %c3_93 = arith.constant 3 : index
    %c3_94 = arith.constant 3 : index
    %104 = vector.load %arg6[%c1_92, %c3_93, %c3_94] : memref<2x16x22xf32, #tpu.memory_space<vmem>>, vector<1x1x16xf32>
    %105 = vector.shape_cast %104 : vector<1x1x16xf32> to vector<1x16xf32>
    %106 = vector.shape_cast %103 : vector<1x16xf32> to vector<1x1x16xf32>
    tpu.vector_store %arg6[%c1_92, %c3_93, %c3_94], %106 {strides = array<i32>} : memref<2x16x22xf32, #tpu.memory_space<vmem>>, vector<1x1x16xf32>,
    %c1_95 = arith.constant 1 : index
    %c64_96 = arith.constant 64 : index
    %107 = vector.load %arg5[%c1_95, %c64_96] : memref<2x256xf32, #tpu.memory_space<vmem>>, vector<1x16xf32>
    %c1_97 = arith.constant 1 : index
    %c4_98 = arith.constant 4 : index
    %c3_99 = arith.constant 3 : index
    %108 = vector.load %arg6[%c1_97, %c4_98, %c3_99] : memref<2x16x22xf32, #tpu.memory_space<vmem>>, vector<1x1x16xf32>
    %109 = vector.shape_cast %108 : vector<1x1x16xf32> to vector<1x16xf32>
    %110 = vector.shape_cast %107 : vector<1x16xf32> to vector<1x1x16xf32>
    tpu.vector_store %arg6[%c1_97, %c4_98, %c3_99], %110 {strides = array<i32>} : memref<2x16x22xf32, #tpu.memory_space<vmem>>, vector<1x1x16xf32>,
    %c1_100 = arith.constant 1 : index
    %c80_101 = arith.constant 80 : index
    %111 = vector.load %arg5[%c1_100, %c80_101] : memref<2x256xf32, #tpu.memory_space<vmem>>, vector<1x16xf32>
    %c1_102 = arith.constant 1 : index
    %c5_103 = arith.constant 5 : index
    %c3_104 = arith.constant 3 : index
    %112 = vector.load %arg6[%c1_102, %c5_103, %c3_104] : memref<2x16x22xf32, #tpu.memory_space<vmem>>, vector<1x1x16xf32>
    %113 = vector.shape_cast %112 : vector<1x1x16xf32> to vector<1x16xf32>
    %114 = vector.shape_cast %111 : vector<1x16xf32> to vector<1x1x16xf32>
    tpu.vector_store %arg6[%c1_102, %c5_103, %c3_104], %114 {strides = array<i32>} : memref<2x16x22xf32, #tpu.memory_space<vmem>>, vector<1x1x16xf32>,
    %c1_105 = arith.constant 1 : index
    %c96_106 = arith.constant 96 : index
    %115 = vector.load %arg5[%c1_105, %c96_106] : memref<2x256xf32, #tpu.memory_space<vmem>>, vector<1x16xf32>
    %c1_107 = arith.constant 1 : index
    %c6_108 = arith.constant 6 : index
    %c3_109 = arith.constant 3 : index
    %116 = vector.load %arg6[%c1_107, %c6_108, %c3_109] : memref<2x16x22xf32, #tpu.memory_space<vmem>>, vector<1x1x16xf32>
    %117 = vector.shape_cast %116 : vector<1x1x16xf32> to vector<1x16xf32>
    %118 = vector.shape_cast %115 : vector<1x16xf32> to vector<1x1x16xf32>
    tpu.vector_store %arg6[%c1_107, %c6_108, %c3_109], %118 {strides = array<i32>} : memref<2x16x22xf32, #tpu.memory_space<vmem>>, vector<1x1x16xf32>,
    %c1_110 = arith.constant 1 : index
    %c112_111 = arith.constant 112 : index
    %119 = vector.load %arg5[%c1_110, %c112_111] : memref<2x256xf32, #tpu.memory_space<vmem>>, vector<1x16xf32>
    %c1_112 = arith.constant 1 : index
    %c7_113 = arith.constant 7 : index
    %c3_114 = arith.constant 3 : index
    %120 = vector.load %arg6[%c1_112, %c7_113, %c3_114] : memref<2x16x22xf32, #tpu.memory_space<vmem>>, vector<1x1x16xf32>
    %121 = vector.shape_cast %120 : vector<1x1x16xf32> to vector<1x16xf32>
    %122 = vector.shape_cast %119 : vector<1x16xf32> to vector<1x1x16xf32>
    tpu.vector_store %arg6[%c1_112, %c7_113, %c3_114], %122 {strides = array<i32>} : memref<2x16x22xf32, #tpu.memory_space<vmem>>, vector<1x1x16xf32>,
    %c1_115 = arith.constant 1 : index
    %c128_116 = arith.constant 128 : index
    %123 = vector.load %arg5[%c1_115, %c128_116] : memref<2x256xf32, #tpu.memory_space<vmem>>, vector<1x16xf32>
    %c1_117 = arith.constant 1 : index
    %c8_118 = arith.constant 8 : index
    %c3_119 = arith.constant 3 : index
    %124 = vector.load %arg6[%c1_117, %c8_118, %c3_119] : memref<2x16x22xf32, #tpu.memory_space<vmem>>, vector<1x1x16xf32>
    %125 = vector.shape_cast %124 : vector<1x1x16xf32> to vector<1x16xf32>
    %126 = vector.shape_cast %123 : vector<1x16xf32> to vector<1x1x16xf32>
    tpu.vector_store %arg6[%c1_117, %c8_118, %c3_119], %126 {strides = array<i32>} : memref<2x16x22xf32, #tpu.memory_space<vmem>>, vector<1x1x16xf32>,
    %c1_120 = arith.constant 1 : index
    %c144_121 = arith.constant 144 : index
    %127 = vector.load %arg5[%c1_120, %c144_121] : memref<2x256xf32, #tpu.memory_space<vmem>>, vector<1x16xf32>
    %c1_122 = arith.constant 1 : index
    %c9_123 = arith.constant 9 : index
    %c3_124 = arith.constant 3 : index
    %128 = vector.load %arg6[%c1_122, %c9_123, %c3_124] : memref<2x16x22xf32, #tpu.memory_space<vmem>>, vector<1x1x16xf32>
    %129 = vector.shape_cast %128 : vector<1x1x16xf32> to vector<1x16xf32>
    %130 = vector.shape_cast %127 : vector<1x16xf32> to vector<1x1x16xf32>
    tpu.vector_store %arg6[%c1_122, %c9_123, %c3_124], %130 {strides = array<i32>} : memref<2x16x22xf32, #tpu.memory_space<vmem>>, vector<1x1x16xf32>,
    %c1_125 = arith.constant 1 : index
    %c160_126 = arith.constant 160 : index
    %131 = vector.load %arg5[%c1_125, %c160_126] : memref<2x256xf32, #tpu.memory_space<vmem>>, vector<1x16xf32>
    %c1_127 = arith.constant 1 : index
    %c10_128 = arith.constant 10 : index
    %c3_129 = arith.constant 3 : index
    %132 = vector.load %arg6[%c1_127, %c10_128, %c3_129] : memref<2x16x22xf32, #tpu.memory_space<vmem>>, vector<1x1x16xf32>
    %133 = vector.shape_cast %132 : vector<1x1x16xf32> to vector<1x16xf32>
    %134 = vector.shape_cast %131 : vector<1x16xf32> to vector<1x1x16xf32>
    tpu.vector_store %arg6[%c1_127, %c10_128, %c3_129], %134 {strides = array<i32>} : memref<2x16x22xf32, #tpu.memory_space<vmem>>, vector<1x1x16xf32>,
    %c1_130 = arith.constant 1 : index
    %c176_131 = arith.constant 176 : index
    %135 = vector.load %arg5[%c1_130, %c176_131] : memref<2x256xf32, #tpu.memory_space<vmem>>, vector<1x16xf32>
    %c1_132 = arith.constant 1 : index
    %c11_133 = arith.constant 11 : index
    %c3_134 = arith.constant 3 : index
    %136 = vector.load %arg6[%c1_132, %c11_133, %c3_134] : memref<2x16x22xf32, #tpu.memory_space<vmem>>, vector<1x1x16xf32>
    %137 = vector.shape_cast %136 : vector<1x1x16xf32> to vector<1x16xf32>
    %138 = vector.shape_cast %135 : vector<1x16xf32> to vector<1x1x16xf32>
    tpu.vector_store %arg6[%c1_132, %c11_133, %c3_134], %138 {strides = array<i32>} : memref<2x16x22xf32, #tpu.memory_space<vmem>>, vector<1x1x16xf32>,
    %c1_135 = arith.constant 1 : index
    %c192_136 = arith.constant 192 : index
    %139 = vector.load %arg5[%c1_135, %c192_136] : memref<2x256xf32, #tpu.memory_space<vmem>>, vector<1x16xf32>
    %c1_137 = arith.constant 1 : index
    %c12_138 = arith.constant 12 : index
    %c3_139 = arith.constant 3 : index
    %140 = vector.load %arg6[%c1_137, %c12_138, %c3_139] : memref<2x16x22xf32, #tpu.memory_space<vmem>>, vector<1x1x16xf32>
    %141 = vector.shape_cast %140 : vector<1x1x16xf32> to vector<1x16xf32>
    %142 = vector.shape_cast %139 : vector<1x16xf32> to vector<1x1x16xf32>
    tpu.vector_store %arg6[%c1_137, %c12_138, %c3_139], %142 {strides = array<i32>} : memref<2x16x22xf32, #tpu.memory_space<vmem>>, vector<1x1x16xf32>,
    %c1_140 = arith.constant 1 : index
    %c208_141 = arith.constant 208 : index
    %143 = vector.load %arg5[%c1_140, %c208_141] : memref<2x256xf32, #tpu.memory_space<vmem>>, vector<1x16xf32>
    %c1_142 = arith.constant 1 : index
    %c13_143 = arith.constant 13 : index
    %c3_144 = arith.constant 3 : index
    %144 = vector.load %arg6[%c1_142, %c13_143, %c3_144] : memref<2x16x22xf32, #tpu.memory_space<vmem>>, vector<1x1x16xf32>
    %145 = vector.shape_cast %144 : vector<1x1x16xf32> to vector<1x16xf32>
    %146 = vector.shape_cast %143 : vector<1x16xf32> to vector<1x1x16xf32>
    tpu.vector_store %arg6[%c1_142, %c13_143, %c3_144], %146 {strides = array<i32>} : memref<2x16x22xf32, #tpu.memory_space<vmem>>, vector<1x1x16xf32>,
    %c1_145 = arith.constant 1 : index
    %c224_146 = arith.constant 224 : index
    %147 = vector.load %arg5[%c1_145, %c224_146] : memref<2x256xf32, #tpu.memory_space<vmem>>, vector<1x16xf32>
    %c1_147 = arith.constant 1 : index
    %c14_148 = arith.constant 14 : index
    %c3_149 = arith.constant 3 : index
    %148 = vector.load %arg6[%c1_147, %c14_148, %c3_149] : memref<2x16x22xf32, #tpu.memory_space<vmem>>, vector<1x1x16xf32>
    %149 = vector.shape_cast %148 : vector<1x1x16xf32> to vector<1x16xf32>
    %150 = vector.shape_cast %147 : vector<1x16xf32> to vector<1x1x16xf32>
    tpu.vector_store %arg6[%c1_147, %c14_148, %c3_149], %150 {strides = array<i32>} : memref<2x16x22xf32, #tpu.memory_space<vmem>>, vector<1x1x16xf32>,
    %c1_150 = arith.constant 1 : index
    %c240_151 = arith.constant 240 : index
    %151 = vector.load %arg5[%c1_150, %c240_151] : memref<2x256xf32, #tpu.memory_space<vmem>>, vector<1x16xf32>
    %c1_152 = arith.constant 1 : index
    %c15_153 = arith.constant 15 : index
    %c3_154 = arith.constant 3 : index
    %152 = vector.load %arg6[%c1_152, %c15_153, %c3_154] : memref<2x16x22xf32, #tpu.memory_space<vmem>>, vector<1x1x16xf32>
    %153 = vector.shape_cast %152 : vector<1x1x16xf32> to vector<1x16xf32>
    %154 = vector.shape_cast %151 : vector<1x16xf32> to vector<1x1x16xf32>
    tpu.vector_store %arg6[%c1_152, %c15_153, %c3_154], %154 {strides = array<i32>} : memref<2x16x22xf32, #tpu.memory_space<vmem>>, vector<1x1x16xf32>,
    %c0_155 = arith.constant 0 : index
    %c0_156 = arith.constant 0 : index
    %c0_157 = arith.constant 0 : index
    %155 = vector.load %arg6[%c0_155, %c0_156, %c0_157] : memref<2x16x22xf32, #tpu.memory_space<vmem>>, vector<1x16x16xf32>
    %156 = vector.shape_cast %155 : vector<1x16x16xf32> to vector<16x16xf32>
    %c0_158 = arith.constant 0 : index
    %c3_159 = arith.constant 3 : index
    %c0_160 = arith.constant 0 : index
    %157 = vector.load %arg7[%c0_158, %c3_159, %c0_160] : memref<14x22x16xf32, #tpu.memory_space<vmem>>, vector<1x16x16xf32>
    %158 = vector.shape_cast %157 : vector<1x16x16xf32> to vector<16x16xf32>
    %159 = vector.shape_cast %156 : vector<16x16xf32> to vector<1x16x16xf32>
    tpu.vector_store %arg7[%c0_158, %c3_159, %c0_160], %159 {strides = array<i32>} : memref<14x22x16xf32, #tpu.memory_space<vmem>>, vector<1x16x16xf32>,
    %c0_161 = arith.constant 0 : index
    %c0_162 = arith.constant 0 : index
    %c1_163 = arith.constant 1 : index
    %160 = vector.load %arg6[%c0_161, %c0_162, %c1_163] : memref<2x16x22xf32, #tpu.memory_space<vmem>>, vector<1x16x16xf32>
    %161 = vector.shape_cast %160 : vector<1x16x16xf32> to vector<16x16xf32>
    %c1_164 = arith.constant 1 : index
    %c3_165 = arith.constant 3 : index
    %c0_166 = arith.constant 0 : index
    %162 = vector.load %arg7[%c1_164, %c3_165, %c0_166] : memref<14x22x16xf32, #tpu.memory_space<vmem>>, vector<1x16x16xf32>
    %163 = vector.shape_cast %162 : vector<1x16x16xf32> to vector<16x16xf32>
    %164 = vector.shape_cast %161 : vector<16x16xf32> to vector<1x16x16xf32>
    tpu.vector_store %arg7[%c1_164, %c3_165, %c0_166], %164 {strides = array<i32>} : memref<14x22x16xf32, #tpu.memory_space<vmem>>, vector<1x16x16xf32>,
    %c0_167 = arith.constant 0 : index
    %c0_168 = arith.constant 0 : index
    %c2_169 = arith.constant 2 : index
    %165 = vector.load %arg6[%c0_167, %c0_168, %c2_169] : memref<2x16x22xf32, #tpu.memory_space<vmem>>, vector<1x16x16xf32>
    %166 = vector.shape_cast %165 : vector<1x16x16xf32> to vector<16x16xf32>
    %c2_170 = arith.constant 2 : index
    %c3_171 = arith.constant 3 : index
    %c0_172 = arith.constant 0 : index
    %167 = vector.load %arg7[%c2_170, %c3_171, %c0_172] : memref<14x22x16xf32, #tpu.memory_space<vmem>>, vector<1x16x16xf32>
    %168 = vector.shape_cast %167 : vector<1x16x16xf32> to vector<16x16xf32>
    %169 = vector.shape_cast %166 : vector<16x16xf32> to vector<1x16x16xf32>
    tpu.vector_store %arg7[%c2_170, %c3_171, %c0_172], %169 {strides = array<i32>} : memref<14x22x16xf32, #tpu.memory_space<vmem>>, vector<1x16x16xf32>,
    %c0_173 = arith.constant 0 : index
    %c0_174 = arith.constant 0 : index
    %c3_175 = arith.constant 3 : index
    %170 = vector.load %arg6[%c0_173, %c0_174, %c3_175] : memref<2x16x22xf32, #tpu.memory_space<vmem>>, vector<1x16x16xf32>
    %171 = vector.shape_cast %170 : vector<1x16x16xf32> to vector<16x16xf32>
    %c3_176 = arith.constant 3 : index
    %c3_177 = arith.constant 3 : index
    %c0_178 = arith.constant 0 : index
    %172 = vector.load %arg7[%c3_176, %c3_177, %c0_178] : memref<14x22x16xf32, #tpu.memory_space<vmem>>, vector<1x16x16xf32>
    %173 = vector.shape_cast %172 : vector<1x16x16xf32> to vector<16x16xf32>
    %174 = vector.shape_cast %171 : vector<16x16xf32> to vector<1x16x16xf32>
    tpu.vector_store %arg7[%c3_176, %c3_177, %c0_178], %174 {strides = array<i32>} : memref<14x22x16xf32, #tpu.memory_space<vmem>>, vector<1x16x16xf32>,
    %c0_179 = arith.constant 0 : index
    %c0_180 = arith.constant 0 : index
    %c4_181 = arith.constant 4 : index
    %175 = vector.load %arg6[%c0_179, %c0_180, %c4_181] : memref<2x16x22xf32, #tpu.memory_space<vmem>>, vector<1x16x16xf32>
    %176 = vector.shape_cast %175 : vector<1x16x16xf32> to vector<16x16xf32>
    %c4_182 = arith.constant 4 : index
    %c3_183 = arith.constant 3 : index
    %c0_184 = arith.constant 0 : index
    %177 = vector.load %arg7[%c4_182, %c3_183, %c0_184] : memref<14x22x16xf32, #tpu.memory_space<vmem>>, vector<1x16x16xf32>
    %178 = vector.shape_cast %177 : vector<1x16x16xf32> to vector<16x16xf32>
    %179 = vector.shape_cast %176 : vector<16x16xf32> to vector<1x16x16xf32>
    tpu.vector_store %arg7[%c4_182, %c3_183, %c0_184], %179 {strides = array<i32>} : memref<14x22x16xf32, #tpu.memory_space<vmem>>, vector<1x16x16xf32>,
    %c0_185 = arith.constant 0 : index
    %c0_186 = arith.constant 0 : index
    %c5_187 = arith.constant 5 : index
    %180 = vector.load %arg6[%c0_185, %c0_186, %c5_187] : memref<2x16x22xf32, #tpu.memory_space<vmem>>, vector<1x16x16xf32>
    %181 = vector.shape_cast %180 : vector<1x16x16xf32> to vector<16x16xf32>
    %c5_188 = arith.constant 5 : index
    %c3_189 = arith.constant 3 : index
    %c0_190 = arith.constant 0 : index
    %182 = vector.load %arg7[%c5_188, %c3_189, %c0_190] : memref<14x22x16xf32, #tpu.memory_space<vmem>>, vector<1x16x16xf32>
    %183 = vector.shape_cast %182 : vector<1x16x16xf32> to vector<16x16xf32>
    %184 = vector.shape_cast %181 : vector<16x16xf32> to vector<1x16x16xf32>
    tpu.vector_store %arg7[%c5_188, %c3_189, %c0_190], %184 {strides = array<i32>} : memref<14x22x16xf32, #tpu.memory_space<vmem>>, vector<1x16x16xf32>,
    %c0_191 = arith.constant 0 : index
    %c0_192 = arith.constant 0 : index
    %c6_193 = arith.constant 6 : index
    %185 = vector.load %arg6[%c0_191, %c0_192, %c6_193] : memref<2x16x22xf32, #tpu.memory_space<vmem>>, vector<1x16x16xf32>
    %186 = vector.shape_cast %185 : vector<1x16x16xf32> to vector<16x16xf32>
    %c6_194 = arith.constant 6 : index
    %c3_195 = arith.constant 3 : index
    %c0_196 = arith.constant 0 : index
    %187 = vector.load %arg7[%c6_194, %c3_195, %c0_196] : memref<14x22x16xf32, #tpu.memory_space<vmem>>, vector<1x16x16xf32>
    %188 = vector.shape_cast %187 : vector<1x16x16xf32> to vector<16x16xf32>
    %189 = vector.shape_cast %186 : vector<16x16xf32> to vector<1x16x16xf32>
    tpu.vector_store %arg7[%c6_194, %c3_195, %c0_196], %189 {strides = array<i32>} : memref<14x22x16xf32, #tpu.memory_space<vmem>>, vector<1x16x16xf32>,
    %c1_197 = arith.constant 1 : index
    %c0_198 = arith.constant 0 : index
    %c0_199 = arith.constant 0 : index
    %190 = vector.load %arg6[%c1_197, %c0_198, %c0_199] : memref<2x16x22xf32, #tpu.memory_space<vmem>>, vector<1x16x16xf32>
    %191 = vector.shape_cast %190 : vector<1x16x16xf32> to vector<16x16xf32>
    %c7_200 = arith.constant 7 : index
    %c3_201 = arith.constant 3 : index
    %c0_202 = arith.constant 0 : index
    %192 = vector.load %arg7[%c7_200, %c3_201, %c0_202] : memref<14x22x16xf32, #tpu.memory_space<vmem>>, vector<1x16x16xf32>
    %193 = vector.shape_cast %192 : vector<1x16x16xf32> to vector<16x16xf32>
    %194 = vector.shape_cast %191 : vector<16x16xf32> to vector<1x16x16xf32>
    tpu.vector_store %arg7[%c7_200, %c3_201, %c0_202], %194 {strides = array<i32>} : memref<14x22x16xf32, #tpu.memory_space<vmem>>, vector<1x16x16xf32>,
    %c1_203 = arith.constant 1 : index
    %c0_204 = arith.constant 0 : index
    %c1_205 = arith.constant 1 : index
    %195 = vector.load %arg6[%c1_203, %c0_204, %c1_205] : memref<2x16x22xf32, #tpu.memory_space<vmem>>, vector<1x16x16xf32>
    %196 = vector.shape_cast %195 : vector<1x16x16xf32> to vector<16x16xf32>
    %c8_206 = arith.constant 8 : index
    %c3_207 = arith.constant 3 : index
    %c0_208 = arith.constant 0 : index
    %197 = vector.load %arg7[%c8_206, %c3_207, %c0_208] : memref<14x22x16xf32, #tpu.memory_space<vmem>>, vector<1x16x16xf32>
    %198 = vector.shape_cast %197 : vector<1x16x16xf32> to vector<16x16xf32>
    %199 = vector.shape_cast %196 : vector<16x16xf32> to vector<1x16x16xf32>
    tpu.vector_store %arg7[%c8_206, %c3_207, %c0_208], %199 {strides = array<i32>} : memref<14x22x16xf32, #tpu.memory_space<vmem>>, vector<1x16x16xf32>,
    %c1_209 = arith.constant 1 : index
    %c0_210 = arith.constant 0 : index
    %c2_211 = arith.constant 2 : index
    %200 = vector.load %arg6[%c1_209, %c0_210, %c2_211] : memref<2x16x22xf32, #tpu.memory_space<vmem>>, vector<1x16x16xf32>
    %201 = vector.shape_cast %200 : vector<1x16x16xf32> to vector<16x16xf32>
    %c9_212 = arith.constant 9 : index
    %c3_213 = arith.constant 3 : index
    %c0_214 = arith.constant 0 : index
    %202 = vector.load %arg7[%c9_212, %c3_213, %c0_214] : memref<14x22x16xf32, #tpu.memory_space<vmem>>, vector<1x16x16xf32>
    %203 = vector.shape_cast %202 : vector<1x16x16xf32> to vector<16x16xf32>
    %204 = vector.shape_cast %201 : vector<16x16xf32> to vector<1x16x16xf32>
    tpu.vector_store %arg7[%c9_212, %c3_213, %c0_214], %204 {strides = array<i32>} : memref<14x22x16xf32, #tpu.memory_space<vmem>>, vector<1x16x16xf32>,
    %c1_215 = arith.constant 1 : index
    %c0_216 = arith.constant 0 : index
    %c3_217 = arith.constant 3 : index
    %205 = vector.load %arg6[%c1_215, %c0_216, %c3_217] : memref<2x16x22xf32, #tpu.memory_space<vmem>>, vector<1x16x16xf32>
    %206 = vector.shape_cast %205 : vector<1x16x16xf32> to vector<16x16xf32>
    %c10_218 = arith.constant 10 : index
    %c3_219 = arith.constant 3 : index
    %c0_220 = arith.constant 0 : index
    %207 = vector.load %arg7[%c10_218, %c3_219, %c0_220] : memref<14x22x16xf32, #tpu.memory_space<vmem>>, vector<1x16x16xf32>
    %208 = vector.shape_cast %207 : vector<1x16x16xf32> to vector<16x16xf32>
    %209 = vector.shape_cast %206 : vector<16x16xf32> to vector<1x16x16xf32>
    tpu.vector_store %arg7[%c10_218, %c3_219, %c0_220], %209 {strides = array<i32>} : memref<14x22x16xf32, #tpu.memory_space<vmem>>, vector<1x16x16xf32>,
    %c1_221 = arith.constant 1 : index
    %c0_222 = arith.constant 0 : index
    %c4_223 = arith.constant 4 : index
    %210 = vector.load %arg6[%c1_221, %c0_222, %c4_223] : memref<2x16x22xf32, #tpu.memory_space<vmem>>, vector<1x16x16xf32>
    %211 = vector.shape_cast %210 : vector<1x16x16xf32> to vector<16x16xf32>
    %c11_224 = arith.constant 11 : index
    %c3_225 = arith.constant 3 : index
    %c0_226 = arith.constant 0 : index
    %212 = vector.load %arg7[%c11_224, %c3_225, %c0_226] : memref<14x22x16xf32, #tpu.memory_space<vmem>>, vector<1x16x16xf32>
    %213 = vector.shape_cast %212 : vector<1x16x16xf32> to vector<16x16xf32>
    %214 = vector.shape_cast %211 : vector<16x16xf32> to vector<1x16x16xf32>
    tpu.vector_store %arg7[%c11_224, %c3_225, %c0_226], %214 {strides = array<i32>} : memref<14x22x16xf32, #tpu.memory_space<vmem>>, vector<1x16x16xf32>,
    %c1_227 = arith.constant 1 : index
    %c0_228 = arith.constant 0 : index
    %c5_229 = arith.constant 5 : index
    %215 = vector.load %arg6[%c1_227, %c0_228, %c5_229] : memref<2x16x22xf32, #tpu.memory_space<vmem>>, vector<1x16x16xf32>
    %216 = vector.shape_cast %215 : vector<1x16x16xf32> to vector<16x16xf32>
    %c12_230 = arith.constant 12 : index
    %c3_231 = arith.constant 3 : index
    %c0_232 = arith.constant 0 : index
    %217 = vector.load %arg7[%c12_230, %c3_231, %c0_232] : memref<14x22x16xf32, #tpu.memory_space<vmem>>, vector<1x16x16xf32>
    %218 = vector.shape_cast %217 : vector<1x16x16xf32> to vector<16x16xf32>
    %219 = vector.shape_cast %216 : vector<16x16xf32> to vector<1x16x16xf32>
    tpu.vector_store %arg7[%c12_230, %c3_231, %c0_232], %219 {strides = array<i32>} : memref<14x22x16xf32, #tpu.memory_space<vmem>>, vector<1x16x16xf32>,
    %c1_233 = arith.constant 1 : index
    %c0_234 = arith.constant 0 : index
    %c6_235 = arith.constant 6 : index
    %220 = vector.load %arg6[%c1_233, %c0_234, %c6_235] : memref<2x16x22xf32, #tpu.memory_space<vmem>>, vector<1x16x16xf32>
    %221 = vector.shape_cast %220 : vector<1x16x16xf32> to vector<16x16xf32>
    %c13_236 = arith.constant 13 : index
    %c3_237 = arith.constant 3 : index
    %c0_238 = arith.constant 0 : index
    %222 = vector.load %arg7[%c13_236, %c3_237, %c0_238] : memref<14x22x16xf32, #tpu.memory_space<vmem>>, vector<1x16x16xf32>
    %223 = vector.shape_cast %222 : vector<1x16x16xf32> to vector<16x16xf32>
    %224 = vector.shape_cast %221 : vector<16x16xf32> to vector<1x16x16xf32>
    tpu.vector_store %arg7[%c13_236, %c3_237, %c0_238], %224 {strides = array<i32>} : memref<14x22x16xf32, #tpu.memory_space<vmem>>, vector<1x16x16xf32>,
    %cst_239 = arith.constant 0.000000e+00 : f32
    %225 = vector.broadcast %cst_239 : f32 to vector<16x16xf32>
    %c0_240 = arith.constant 0 : index
    %226 = memref.load %arg2[%c0_240] : memref<98xf32, #tpu.memory_space<smem>>
    %c0_241 = arith.constant 0 : index
    %c0_242 = arith.constant 0 : index
    %c0_243 = arith.constant 0 : index
    %227 = vector.load %arg7[%c0_241, %c0_242, %c0_243] : memref<14x22x16xf32, #tpu.memory_space<vmem>>, vector<1x16x16xf32>
    %228 = vector.shape_cast %227 : vector<1x16x16xf32> to vector<16x16xf32>
    %229 = vector.broadcast %226 : f32 to vector<16x16xf32>
    %230 = arith.mulf %229, %228 : vector<16x16xf32>
    %231 = arith.addf %225, %230 : vector<16x16xf32>
    %c7_244 = arith.constant 7 : index
    %232 = memref.load %arg2[%c7_244] : memref<98xf32, #tpu.memory_space<smem>>
    %c0_245 = arith.constant 0 : index
    %c1_246 = arith.constant 1 : index
    %c0_247 = arith.constant 0 : index
    %233 = vector.load %arg7[%c0_245, %c1_246, %c0_247] : memref<14x22x16xf32, #tpu.memory_space<vmem>>, vector<1x16x16xf32>
    %234 = vector.shape_cast %233 : vector<1x16x16xf32> to vector<16x16xf32>
    %235 = vector.broadcast %232 : f32 to vector<16x16xf32>
    %236 = arith.mulf %235, %234 : vector<16x16xf32>
    %237 = arith.addf %231, %236 : vector<16x16xf32>
    %c14_248 = arith.constant 14 : index
    %238 = memref.load %arg2[%c14_248] : memref<98xf32, #tpu.memory_space<smem>>
    %c0_249 = arith.constant 0 : index
    %c2_250 = arith.constant 2 : index
    %c0_251 = arith.constant 0 : index
    %239 = vector.load %arg7[%c0_249, %c2_250, %c0_251] : memref<14x22x16xf32, #tpu.memory_space<vmem>>, vector<1x16x16xf32>
    %240 = vector.shape_cast %239 : vector<1x16x16xf32> to vector<16x16xf32>
    %241 = vector.broadcast %238 : f32 to vector<16x16xf32>
    %242 = arith.mulf %241, %240 : vector<16x16xf32>
    %243 = arith.addf %237, %242 : vector<16x16xf32>
    %c21 = arith.constant 21 : index
    %244 = memref.load %arg2[%c21] : memref<98xf32, #tpu.memory_space<smem>>
    %c0_252 = arith.constant 0 : index
    %c3_253 = arith.constant 3 : index
    %c0_254 = arith.constant 0 : index
    %245 = vector.load %arg7[%c0_252, %c3_253, %c0_254] : memref<14x22x16xf32, #tpu.memory_space<vmem>>, vector<1x16x16xf32>
    %246 = vector.shape_cast %245 : vector<1x16x16xf32> to vector<16x16xf32>
    %247 = vector.broadcast %244 : f32 to vector<16x16xf32>
    %248 = arith.mulf %247, %246 : vector<16x16xf32>
    %249 = arith.addf %243, %248 : vector<16x16xf32>
    %c28 = arith.constant 28 : index
    %250 = memref.load %arg2[%c28] : memref<98xf32, #tpu.memory_space<smem>>
    %c0_255 = arith.constant 0 : index
    %c4_256 = arith.constant 4 : index
    %c0_257 = arith.constant 0 : index
    %251 = vector.load %arg7[%c0_255, %c4_256, %c0_257] : memref<14x22x16xf32, #tpu.memory_space<vmem>>, vector<1x16x16xf32>
    %252 = vector.shape_cast %251 : vector<1x16x16xf32> to vector<16x16xf32>
    %253 = vector.broadcast %250 : f32 to vector<16x16xf32>
    %254 = arith.mulf %253, %252 : vector<16x16xf32>
    %255 = arith.addf %249, %254 : vector<16x16xf32>
    %c35 = arith.constant 35 : index
    %256 = memref.load %arg2[%c35] : memref<98xf32, #tpu.memory_space<smem>>
    %c0_258 = arith.constant 0 : index
    %c5_259 = arith.constant 5 : index
    %c0_260 = arith.constant 0 : index
    %257 = vector.load %arg7[%c0_258, %c5_259, %c0_260] : memref<14x22x16xf32, #tpu.memory_space<vmem>>, vector<1x16x16xf32>
    %258 = vector.shape_cast %257 : vector<1x16x16xf32> to vector<16x16xf32>
    %259 = vector.broadcast %256 : f32 to vector<16x16xf32>
    %260 = arith.mulf %259, %258 : vector<16x16xf32>
    %261 = arith.addf %255, %260 : vector<16x16xf32>
    %c42 = arith.constant 42 : index
    %262 = memref.load %arg2[%c42] : memref<98xf32, #tpu.memory_space<smem>>
    %c0_261 = arith.constant 0 : index
    %c6_262 = arith.constant 6 : index
    %c0_263 = arith.constant 0 : index
    %263 = vector.load %arg7[%c0_261, %c6_262, %c0_263] : memref<14x22x16xf32, #tpu.memory_space<vmem>>, vector<1x16x16xf32>
    %264 = vector.shape_cast %263 : vector<1x16x16xf32> to vector<16x16xf32>
    %265 = vector.broadcast %262 : f32 to vector<16x16xf32>
    %266 = arith.mulf %265, %264 : vector<16x16xf32>
    %267 = arith.addf %261, %266 : vector<16x16xf32>
    %c1_264 = arith.constant 1 : index
    %268 = memref.load %arg2[%c1_264] : memref<98xf32, #tpu.memory_space<smem>>
    %c1_265 = arith.constant 1 : index
    %c0_266 = arith.constant 0 : index
    %c0_267 = arith.constant 0 : index
    %269 = vector.load %arg7[%c1_265, %c0_266, %c0_267] : memref<14x22x16xf32, #tpu.memory_space<vmem>>, vector<1x16x16xf32>
    %270 = vector.shape_cast %269 : vector<1x16x16xf32> to vector<16x16xf32>
    %271 = vector.broadcast %268 : f32 to vector<16x16xf32>
    %272 = arith.mulf %271, %270 : vector<16x16xf32>
    %273 = arith.addf %267, %272 : vector<16x16xf32>
    %c8_268 = arith.constant 8 : index
    %274 = memref.load %arg2[%c8_268] : memref<98xf32, #tpu.memory_space<smem>>
    %c1_269 = arith.constant 1 : index
    %c1_270 = arith.constant 1 : index
    %c0_271 = arith.constant 0 : index
    %275 = vector.load %arg7[%c1_269, %c1_270, %c0_271] : memref<14x22x16xf32, #tpu.memory_space<vmem>>, vector<1x16x16xf32>
    %276 = vector.shape_cast %275 : vector<1x16x16xf32> to vector<16x16xf32>
    %277 = vector.broadcast %274 : f32 to vector<16x16xf32>
    %278 = arith.mulf %277, %276 : vector<16x16xf32>
    %279 = arith.addf %273, %278 : vector<16x16xf32>
    %c15_272 = arith.constant 15 : index
    %280 = memref.load %arg2[%c15_272] : memref<98xf32, #tpu.memory_space<smem>>
    %c1_273 = arith.constant 1 : index
    %c2_274 = arith.constant 2 : index
    %c0_275 = arith.constant 0 : index
    %281 = vector.load %arg7[%c1_273, %c2_274, %c0_275] : memref<14x22x16xf32, #tpu.memory_space<vmem>>, vector<1x16x16xf32>
    %282 = vector.shape_cast %281 : vector<1x16x16xf32> to vector<16x16xf32>
    %283 = vector.broadcast %280 : f32 to vector<16x16xf32>
    %284 = arith.mulf %283, %282 : vector<16x16xf32>
    %285 = arith.addf %279, %284 : vector<16x16xf32>
    %c22 = arith.constant 22 : index
    %286 = memref.load %arg2[%c22] : memref<98xf32, #tpu.memory_space<smem>>
    %c1_276 = arith.constant 1 : index
    %c3_277 = arith.constant 3 : index
    %c0_278 = arith.constant 0 : index
    %287 = vector.load %arg7[%c1_276, %c3_277, %c0_278] : memref<14x22x16xf32, #tpu.memory_space<vmem>>, vector<1x16x16xf32>
    %288 = vector.shape_cast %287 : vector<1x16x16xf32> to vector<16x16xf32>
    %289 = vector.broadcast %286 : f32 to vector<16x16xf32>
    %290 = arith.mulf %289, %288 : vector<16x16xf32>
    %291 = arith.addf %285, %290 : vector<16x16xf32>
    %c29 = arith.constant 29 : index
    %292 = memref.load %arg2[%c29] : memref<98xf32, #tpu.memory_space<smem>>
    %c1_279 = arith.constant 1 : index
    %c4_280 = arith.constant 4 : index
    %c0_281 = arith.constant 0 : index
    %293 = vector.load %arg7[%c1_279, %c4_280, %c0_281] : memref<14x22x16xf32, #tpu.memory_space<vmem>>, vector<1x16x16xf32>
    %294 = vector.shape_cast %293 : vector<1x16x16xf32> to vector<16x16xf32>
    %295 = vector.broadcast %292 : f32 to vector<16x16xf32>
    %296 = arith.mulf %295, %294 : vector<16x16xf32>
    %297 = arith.addf %291, %296 : vector<16x16xf32>
    %c36 = arith.constant 36 : index
    %298 = memref.load %arg2[%c36] : memref<98xf32, #tpu.memory_space<smem>>
    %c1_282 = arith.constant 1 : index
    %c5_283 = arith.constant 5 : index
    %c0_284 = arith.constant 0 : index
    %299 = vector.load %arg7[%c1_282, %c5_283, %c0_284] : memref<14x22x16xf32, #tpu.memory_space<vmem>>, vector<1x16x16xf32>
    %300 = vector.shape_cast %299 : vector<1x16x16xf32> to vector<16x16xf32>
    %301 = vector.broadcast %298 : f32 to vector<16x16xf32>
    %302 = arith.mulf %301, %300 : vector<16x16xf32>
    %303 = arith.addf %297, %302 : vector<16x16xf32>
    %c43 = arith.constant 43 : index
    %304 = memref.load %arg2[%c43] : memref<98xf32, #tpu.memory_space<smem>>
    %c1_285 = arith.constant 1 : index
    %c6_286 = arith.constant 6 : index
    %c0_287 = arith.constant 0 : index
    %305 = vector.load %arg7[%c1_285, %c6_286, %c0_287] : memref<14x22x16xf32, #tpu.memory_space<vmem>>, vector<1x16x16xf32>
    %306 = vector.shape_cast %305 : vector<1x16x16xf32> to vector<16x16xf32>
    %307 = vector.broadcast %304 : f32 to vector<16x16xf32>
    %308 = arith.mulf %307, %306 : vector<16x16xf32>
    %309 = arith.addf %303, %308 : vector<16x16xf32>
    %c2_288 = arith.constant 2 : index
    %310 = memref.load %arg2[%c2_288] : memref<98xf32, #tpu.memory_space<smem>>
    %c2_289 = arith.constant 2 : index
    %c0_290 = arith.constant 0 : index
    %c0_291 = arith.constant 0 : index
    %311 = vector.load %arg7[%c2_289, %c0_290, %c0_291] : memref<14x22x16xf32, #tpu.memory_space<vmem>>, vector<1x16x16xf32>
    %312 = vector.shape_cast %311 : vector<1x16x16xf32> to vector<16x16xf32>
    %313 = vector.broadcast %310 : f32 to vector<16x16xf32>
    %314 = arith.mulf %313, %312 : vector<16x16xf32>
    %315 = arith.addf %309, %314 : vector<16x16xf32>
    %c9_292 = arith.constant 9 : index
    %316 = memref.load %arg2[%c9_292] : memref<98xf32, #tpu.memory_space<smem>>
    %c2_293 = arith.constant 2 : index
    %c1_294 = arith.constant 1 : index
    %c0_295 = arith.constant 0 : index
    %317 = vector.load %arg7[%c2_293, %c1_294, %c0_295] : memref<14x22x16xf32, #tpu.memory_space<vmem>>, vector<1x16x16xf32>
    %318 = vector.shape_cast %317 : vector<1x16x16xf32> to vector<16x16xf32>
    %319 = vector.broadcast %316 : f32 to vector<16x16xf32>
    %320 = arith.mulf %319, %318 : vector<16x16xf32>
    %321 = arith.addf %315, %320 : vector<16x16xf32>
    %c16_296 = arith.constant 16 : index
    %322 = memref.load %arg2[%c16_296] : memref<98xf32, #tpu.memory_space<smem>>
    %c2_297 = arith.constant 2 : index
    %c2_298 = arith.constant 2 : index
    %c0_299 = arith.constant 0 : index
    %323 = vector.load %arg7[%c2_297, %c2_298, %c0_299] : memref<14x22x16xf32, #tpu.memory_space<vmem>>, vector<1x16x16xf32>
    %324 = vector.shape_cast %323 : vector<1x16x16xf32> to vector<16x16xf32>
    %325 = vector.broadcast %322 : f32 to vector<16x16xf32>
    %326 = arith.mulf %325, %324 : vector<16x16xf32>
    %327 = arith.addf %321, %326 : vector<16x16xf32>
    %c23 = arith.constant 23 : index
    %328 = memref.load %arg2[%c23] : memref<98xf32, #tpu.memory_space<smem>>
    %c2_300 = arith.constant 2 : index
    %c3_301 = arith.constant 3 : index
    %c0_302 = arith.constant 0 : index
    %329 = vector.load %arg7[%c2_300, %c3_301, %c0_302] : memref<14x22x16xf32, #tpu.memory_space<vmem>>, vector<1x16x16xf32>
    %330 = vector.shape_cast %329 : vector<1x16x16xf32> to vector<16x16xf32>
    %331 = vector.broadcast %328 : f32 to vector<16x16xf32>
    %332 = arith.mulf %331, %330 : vector<16x16xf32>
    %333 = arith.addf %327, %332 : vector<16x16xf32>
    %c30 = arith.constant 30 : index
    %334 = memref.load %arg2[%c30] : memref<98xf32, #tpu.memory_space<smem>>
    %c2_303 = arith.constant 2 : index
    %c4_304 = arith.constant 4 : index
    %c0_305 = arith.constant 0 : index
    %335 = vector.load %arg7[%c2_303, %c4_304, %c0_305] : memref<14x22x16xf32, #tpu.memory_space<vmem>>, vector<1x16x16xf32>
    %336 = vector.shape_cast %335 : vector<1x16x16xf32> to vector<16x16xf32>
    %337 = vector.broadcast %334 : f32 to vector<16x16xf32>
    %338 = arith.mulf %337, %336 : vector<16x16xf32>
    %339 = arith.addf %333, %338 : vector<16x16xf32>
    %c37 = arith.constant 37 : index
    %340 = memref.load %arg2[%c37] : memref<98xf32, #tpu.memory_space<smem>>
    %c2_306 = arith.constant 2 : index
    %c5_307 = arith.constant 5 : index
    %c0_308 = arith.constant 0 : index
    %341 = vector.load %arg7[%c2_306, %c5_307, %c0_308] : memref<14x22x16xf32, #tpu.memory_space<vmem>>, vector<1x16x16xf32>
    %342 = vector.shape_cast %341 : vector<1x16x16xf32> to vector<16x16xf32>
    %343 = vector.broadcast %340 : f32 to vector<16x16xf32>
    %344 = arith.mulf %343, %342 : vector<16x16xf32>
    %345 = arith.addf %339, %344 : vector<16x16xf32>
    %c44 = arith.constant 44 : index
    %346 = memref.load %arg2[%c44] : memref<98xf32, #tpu.memory_space<smem>>
    %c2_309 = arith.constant 2 : index
    %c6_310 = arith.constant 6 : index
    %c0_311 = arith.constant 0 : index
    %347 = vector.load %arg7[%c2_309, %c6_310, %c0_311] : memref<14x22x16xf32, #tpu.memory_space<vmem>>, vector<1x16x16xf32>
    %348 = vector.shape_cast %347 : vector<1x16x16xf32> to vector<16x16xf32>
    %349 = vector.broadcast %346 : f32 to vector<16x16xf32>
    %350 = arith.mulf %349, %348 : vector<16x16xf32>
    %351 = arith.addf %345, %350 : vector<16x16xf32>
    %c3_312 = arith.constant 3 : index
    %352 = memref.load %arg2[%c3_312] : memref<98xf32, #tpu.memory_space<smem>>
    %c3_313 = arith.constant 3 : index
    %c0_314 = arith.constant 0 : index
    %c0_315 = arith.constant 0 : index
    %353 = vector.load %arg7[%c3_313, %c0_314, %c0_315] : memref<14x22x16xf32, #tpu.memory_space<vmem>>, vector<1x16x16xf32>
    %354 = vector.shape_cast %353 : vector<1x16x16xf32> to vector<16x16xf32>
    %355 = vector.broadcast %352 : f32 to vector<16x16xf32>
    %356 = arith.mulf %355, %354 : vector<16x16xf32>
    %357 = arith.addf %351, %356 : vector<16x16xf32>
    %c10_316 = arith.constant 10 : index
    %358 = memref.load %arg2[%c10_316] : memref<98xf32, #tpu.memory_space<smem>>
    %c3_317 = arith.constant 3 : index
    %c1_318 = arith.constant 1 : index
    %c0_319 = arith.constant 0 : index
    %359 = vector.load %arg7[%c3_317, %c1_318, %c0_319] : memref<14x22x16xf32, #tpu.memory_space<vmem>>, vector<1x16x16xf32>
    %360 = vector.shape_cast %359 : vector<1x16x16xf32> to vector<16x16xf32>
    %361 = vector.broadcast %358 : f32 to vector<16x16xf32>
    %362 = arith.mulf %361, %360 : vector<16x16xf32>
    %363 = arith.addf %357, %362 : vector<16x16xf32>
    %c17 = arith.constant 17 : index
    %364 = memref.load %arg2[%c17] : memref<98xf32, #tpu.memory_space<smem>>
    %c3_320 = arith.constant 3 : index
    %c2_321 = arith.constant 2 : index
    %c0_322 = arith.constant 0 : index
    %365 = vector.load %arg7[%c3_320, %c2_321, %c0_322] : memref<14x22x16xf32, #tpu.memory_space<vmem>>, vector<1x16x16xf32>
    %366 = vector.shape_cast %365 : vector<1x16x16xf32> to vector<16x16xf32>
    %367 = vector.broadcast %364 : f32 to vector<16x16xf32>
    %368 = arith.mulf %367, %366 : vector<16x16xf32>
    %369 = arith.addf %363, %368 : vector<16x16xf32>
    %c24 = arith.constant 24 : index
    %370 = memref.load %arg2[%c24] : memref<98xf32, #tpu.memory_space<smem>>
    %c3_323 = arith.constant 3 : index
    %c3_324 = arith.constant 3 : index
    %c0_325 = arith.constant 0 : index
    %371 = vector.load %arg7[%c3_323, %c3_324, %c0_325] : memref<14x22x16xf32, #tpu.memory_space<vmem>>, vector<1x16x16xf32>
    %372 = vector.shape_cast %371 : vector<1x16x16xf32> to vector<16x16xf32>
    %373 = vector.broadcast %370 : f32 to vector<16x16xf32>
    %374 = arith.mulf %373, %372 : vector<16x16xf32>
    %375 = arith.addf %369, %374 : vector<16x16xf32>
    %c31 = arith.constant 31 : index
    %376 = memref.load %arg2[%c31] : memref<98xf32, #tpu.memory_space<smem>>
    %c3_326 = arith.constant 3 : index
    %c4_327 = arith.constant 4 : index
    %c0_328 = arith.constant 0 : index
    %377 = vector.load %arg7[%c3_326, %c4_327, %c0_328] : memref<14x22x16xf32, #tpu.memory_space<vmem>>, vector<1x16x16xf32>
    %378 = vector.shape_cast %377 : vector<1x16x16xf32> to vector<16x16xf32>
    %379 = vector.broadcast %376 : f32 to vector<16x16xf32>
    %380 = arith.mulf %379, %378 : vector<16x16xf32>
    %381 = arith.addf %375, %380 : vector<16x16xf32>
    %c38 = arith.constant 38 : index
    %382 = memref.load %arg2[%c38] : memref<98xf32, #tpu.memory_space<smem>>
    %c3_329 = arith.constant 3 : index
    %c5_330 = arith.constant 5 : index
    %c0_331 = arith.constant 0 : index
    %383 = vector.load %arg7[%c3_329, %c5_330, %c0_331] : memref<14x22x16xf32, #tpu.memory_space<vmem>>, vector<1x16x16xf32>
    %384 = vector.shape_cast %383 : vector<1x16x16xf32> to vector<16x16xf32>
    %385 = vector.broadcast %382 : f32 to vector<16x16xf32>
    %386 = arith.mulf %385, %384 : vector<16x16xf32>
    %387 = arith.addf %381, %386 : vector<16x16xf32>
    %c45 = arith.constant 45 : index
    %388 = memref.load %arg2[%c45] : memref<98xf32, #tpu.memory_space<smem>>
    %c3_332 = arith.constant 3 : index
    %c6_333 = arith.constant 6 : index
    %c0_334 = arith.constant 0 : index
    %389 = vector.load %arg7[%c3_332, %c6_333, %c0_334] : memref<14x22x16xf32, #tpu.memory_space<vmem>>, vector<1x16x16xf32>
    %390 = vector.shape_cast %389 : vector<1x16x16xf32> to vector<16x16xf32>
    %391 = vector.broadcast %388 : f32 to vector<16x16xf32>
    %392 = arith.mulf %391, %390 : vector<16x16xf32>
    %393 = arith.addf %387, %392 : vector<16x16xf32>
    %c4_335 = arith.constant 4 : index
    %394 = memref.load %arg2[%c4_335] : memref<98xf32, #tpu.memory_space<smem>>
    %c4_336 = arith.constant 4 : index
    %c0_337 = arith.constant 0 : index
    %c0_338 = arith.constant 0 : index
    %395 = vector.load %arg7[%c4_336, %c0_337, %c0_338] : memref<14x22x16xf32, #tpu.memory_space<vmem>>, vector<1x16x16xf32>
    %396 = vector.shape_cast %395 : vector<1x16x16xf32> to vector<16x16xf32>
    %397 = vector.broadcast %394 : f32 to vector<16x16xf32>
    %398 = arith.mulf %397, %396 : vector<16x16xf32>
    %399 = arith.addf %393, %398 : vector<16x16xf32>
    %c11_339 = arith.constant 11 : index
    %400 = memref.load %arg2[%c11_339] : memref<98xf32, #tpu.memory_space<smem>>
    %c4_340 = arith.constant 4 : index
    %c1_341 = arith.constant 1 : index
    %c0_342 = arith.constant 0 : index
    %401 = vector.load %arg7[%c4_340, %c1_341, %c0_342] : memref<14x22x16xf32, #tpu.memory_space<vmem>>, vector<1x16x16xf32>
    %402 = vector.shape_cast %401 : vector<1x16x16xf32> to vector<16x16xf32>
    %403 = vector.broadcast %400 : f32 to vector<16x16xf32>
    %404 = arith.mulf %403, %402 : vector<16x16xf32>
    %405 = arith.addf %399, %404 : vector<16x16xf32>
    %c18 = arith.constant 18 : index
    %406 = memref.load %arg2[%c18] : memref<98xf32, #tpu.memory_space<smem>>
    %c4_343 = arith.constant 4 : index
    %c2_344 = arith.constant 2 : index
    %c0_345 = arith.constant 0 : index
    %407 = vector.load %arg7[%c4_343, %c2_344, %c0_345] : memref<14x22x16xf32, #tpu.memory_space<vmem>>, vector<1x16x16xf32>
    %408 = vector.shape_cast %407 : vector<1x16x16xf32> to vector<16x16xf32>
    %409 = vector.broadcast %406 : f32 to vector<16x16xf32>
    %410 = arith.mulf %409, %408 : vector<16x16xf32>
    %411 = arith.addf %405, %410 : vector<16x16xf32>
    %c25 = arith.constant 25 : index
    %412 = memref.load %arg2[%c25] : memref<98xf32, #tpu.memory_space<smem>>
    %c4_346 = arith.constant 4 : index
    %c3_347 = arith.constant 3 : index
    %c0_348 = arith.constant 0 : index
    %413 = vector.load %arg7[%c4_346, %c3_347, %c0_348] : memref<14x22x16xf32, #tpu.memory_space<vmem>>, vector<1x16x16xf32>
    %414 = vector.shape_cast %413 : vector<1x16x16xf32> to vector<16x16xf32>
    %415 = vector.broadcast %412 : f32 to vector<16x16xf32>
    %416 = arith.mulf %415, %414 : vector<16x16xf32>
    %417 = arith.addf %411, %416 : vector<16x16xf32>
    %c32_349 = arith.constant 32 : index
    %418 = memref.load %arg2[%c32_349] : memref<98xf32, #tpu.memory_space<smem>>
    %c4_350 = arith.constant 4 : index
    %c4_351 = arith.constant 4 : index
    %c0_352 = arith.constant 0 : index
    %419 = vector.load %arg7[%c4_350, %c4_351, %c0_352] : memref<14x22x16xf32, #tpu.memory_space<vmem>>, vector<1x16x16xf32>
    %420 = vector.shape_cast %419 : vector<1x16x16xf32> to vector<16x16xf32>
    %421 = vector.broadcast %418 : f32 to vector<16x16xf32>
    %422 = arith.mulf %421, %420 : vector<16x16xf32>
    %423 = arith.addf %417, %422 : vector<16x16xf32>
    %c39 = arith.constant 39 : index
    %424 = memref.load %arg2[%c39] : memref<98xf32, #tpu.memory_space<smem>>
    %c4_353 = arith.constant 4 : index
    %c5_354 = arith.constant 5 : index
    %c0_355 = arith.constant 0 : index
    %425 = vector.load %arg7[%c4_353, %c5_354, %c0_355] : memref<14x22x16xf32, #tpu.memory_space<vmem>>, vector<1x16x16xf32>
    %426 = vector.shape_cast %425 : vector<1x16x16xf32> to vector<16x16xf32>
    %427 = vector.broadcast %424 : f32 to vector<16x16xf32>
    %428 = arith.mulf %427, %426 : vector<16x16xf32>
    %429 = arith.addf %423, %428 : vector<16x16xf32>
    %c46 = arith.constant 46 : index
    %430 = memref.load %arg2[%c46] : memref<98xf32, #tpu.memory_space<smem>>
    %c4_356 = arith.constant 4 : index
    %c6_357 = arith.constant 6 : index
    %c0_358 = arith.constant 0 : index
    %431 = vector.load %arg7[%c4_356, %c6_357, %c0_358] : memref<14x22x16xf32, #tpu.memory_space<vmem>>, vector<1x16x16xf32>
    %432 = vector.shape_cast %431 : vector<1x16x16xf32> to vector<16x16xf32>
    %433 = vector.broadcast %430 : f32 to vector<16x16xf32>
    %434 = arith.mulf %433, %432 : vector<16x16xf32>
    %435 = arith.addf %429, %434 : vector<16x16xf32>
    %c5_359 = arith.constant 5 : index
    %436 = memref.load %arg2[%c5_359] : memref<98xf32, #tpu.memory_space<smem>>
    %c5_360 = arith.constant 5 : index
    %c0_361 = arith.constant 0 : index
    %c0_362 = arith.constant 0 : index
    %437 = vector.load %arg7[%c5_360, %c0_361, %c0_362] : memref<14x22x16xf32, #tpu.memory_space<vmem>>, vector<1x16x16xf32>
    %438 = vector.shape_cast %437 : vector<1x16x16xf32> to vector<16x16xf32>
    %439 = vector.broadcast %436 : f32 to vector<16x16xf32>
    %440 = arith.mulf %439, %438 : vector<16x16xf32>
    %441 = arith.addf %435, %440 : vector<16x16xf32>
    %c12_363 = arith.constant 12 : index
    %442 = memref.load %arg2[%c12_363] : memref<98xf32, #tpu.memory_space<smem>>
    %c5_364 = arith.constant 5 : index
    %c1_365 = arith.constant 1 : index
    %c0_366 = arith.constant 0 : index
    %443 = vector.load %arg7[%c5_364, %c1_365, %c0_366] : memref<14x22x16xf32, #tpu.memory_space<vmem>>, vector<1x16x16xf32>
    %444 = vector.shape_cast %443 : vector<1x16x16xf32> to vector<16x16xf32>
    %445 = vector.broadcast %442 : f32 to vector<16x16xf32>
    %446 = arith.mulf %445, %444 : vector<16x16xf32>
    %447 = arith.addf %441, %446 : vector<16x16xf32>
    %c19_367 = arith.constant 19 : index
    %448 = memref.load %arg2[%c19_367] : memref<98xf32, #tpu.memory_space<smem>>
    %c5_368 = arith.constant 5 : index
    %c2_369 = arith.constant 2 : index
    %c0_370 = arith.constant 0 : index
    %449 = vector.load %arg7[%c5_368, %c2_369, %c0_370] : memref<14x22x16xf32, #tpu.memory_space<vmem>>, vector<1x16x16xf32>
    %450 = vector.shape_cast %449 : vector<1x16x16xf32> to vector<16x16xf32>
    %451 = vector.broadcast %448 : f32 to vector<16x16xf32>
    %452 = arith.mulf %451, %450 : vector<16x16xf32>
    %453 = arith.addf %447, %452 : vector<16x16xf32>
    %c26 = arith.constant 26 : index
    %454 = memref.load %arg2[%c26] : memref<98xf32, #tpu.memory_space<smem>>
    %c5_371 = arith.constant 5 : index
    %c3_372 = arith.constant 3 : index
    %c0_373 = arith.constant 0 : index
    %455 = vector.load %arg7[%c5_371, %c3_372, %c0_373] : memref<14x22x16xf32, #tpu.memory_space<vmem>>, vector<1x16x16xf32>
    %456 = vector.shape_cast %455 : vector<1x16x16xf32> to vector<16x16xf32>
    %457 = vector.broadcast %454 : f32 to vector<16x16xf32>
    %458 = arith.mulf %457, %456 : vector<16x16xf32>
    %459 = arith.addf %453, %458 : vector<16x16xf32>
    %c33 = arith.constant 33 : index
    %460 = memref.load %arg2[%c33] : memref<98xf32, #tpu.memory_space<smem>>
    %c5_374 = arith.constant 5 : index
    %c4_375 = arith.constant 4 : index
    %c0_376 = arith.constant 0 : index
    %461 = vector.load %arg7[%c5_374, %c4_375, %c0_376] : memref<14x22x16xf32, #tpu.memory_space<vmem>>, vector<1x16x16xf32>
    %462 = vector.shape_cast %461 : vector<1x16x16xf32> to vector<16x16xf32>
    %463 = vector.broadcast %460 : f32 to vector<16x16xf32>
    %464 = arith.mulf %463, %462 : vector<16x16xf32>
    %465 = arith.addf %459, %464 : vector<16x16xf32>
    %c40 = arith.constant 40 : index
    %466 = memref.load %arg2[%c40] : memref<98xf32, #tpu.memory_space<smem>>
    %c5_377 = arith.constant 5 : index
    %c5_378 = arith.constant 5 : index
    %c0_379 = arith.constant 0 : index
    %467 = vector.load %arg7[%c5_377, %c5_378, %c0_379] : memref<14x22x16xf32, #tpu.memory_space<vmem>>, vector<1x16x16xf32>
    %468 = vector.shape_cast %467 : vector<1x16x16xf32> to vector<16x16xf32>
    %469 = vector.broadcast %466 : f32 to vector<16x16xf32>
    %470 = arith.mulf %469, %468 : vector<16x16xf32>
    %471 = arith.addf %465, %470 : vector<16x16xf32>
    %c47 = arith.constant 47 : index
    %472 = memref.load %arg2[%c47] : memref<98xf32, #tpu.memory_space<smem>>
    %c5_380 = arith.constant 5 : index
    %c6_381 = arith.constant 6 : index
    %c0_382 = arith.constant 0 : index
    %473 = vector.load %arg7[%c5_380, %c6_381, %c0_382] : memref<14x22x16xf32, #tpu.memory_space<vmem>>, vector<1x16x16xf32>
    %474 = vector.shape_cast %473 : vector<1x16x16xf32> to vector<16x16xf32>
    %475 = vector.broadcast %472 : f32 to vector<16x16xf32>
    %476 = arith.mulf %475, %474 : vector<16x16xf32>
    %477 = arith.addf %471, %476 : vector<16x16xf32>
    %c6_383 = arith.constant 6 : index
    %478 = memref.load %arg2[%c6_383] : memref<98xf32, #tpu.memory_space<smem>>
    %c6_384 = arith.constant 6 : index
    %c0_385 = arith.constant 0 : index
    %c0_386 = arith.constant 0 : index
    %479 = vector.load %arg7[%c6_384, %c0_385, %c0_386] : memref<14x22x16xf32, #tpu.memory_space<vmem>>, vector<1x16x16xf32>
    %480 = vector.shape_cast %479 : vector<1x16x16xf32> to vector<16x16xf32>
    %481 = vector.broadcast %478 : f32 to vector<16x16xf32>
    %482 = arith.mulf %481, %480 : vector<16x16xf32>
    %483 = arith.addf %477, %482 : vector<16x16xf32>
    %c13_387 = arith.constant 13 : index
    %484 = memref.load %arg2[%c13_387] : memref<98xf32, #tpu.memory_space<smem>>
    %c6_388 = arith.constant 6 : index
    %c1_389 = arith.constant 1 : index
    %c0_390 = arith.constant 0 : index
    %485 = vector.load %arg7[%c6_388, %c1_389, %c0_390] : memref<14x22x16xf32, #tpu.memory_space<vmem>>, vector<1x16x16xf32>
    %486 = vector.shape_cast %485 : vector<1x16x16xf32> to vector<16x16xf32>
    %487 = vector.broadcast %484 : f32 to vector<16x16xf32>
    %488 = arith.mulf %487, %486 : vector<16x16xf32>
    %489 = arith.addf %483, %488 : vector<16x16xf32>
    %c20 = arith.constant 20 : index
    %490 = memref.load %arg2[%c20] : memref<98xf32, #tpu.memory_space<smem>>
    %c6_391 = arith.constant 6 : index
    %c2_392 = arith.constant 2 : index
    %c0_393 = arith.constant 0 : index
    %491 = vector.load %arg7[%c6_391, %c2_392, %c0_393] : memref<14x22x16xf32, #tpu.memory_space<vmem>>, vector<1x16x16xf32>
    %492 = vector.shape_cast %491 : vector<1x16x16xf32> to vector<16x16xf32>
    %493 = vector.broadcast %490 : f32 to vector<16x16xf32>
    %494 = arith.mulf %493, %492 : vector<16x16xf32>
    %495 = arith.addf %489, %494 : vector<16x16xf32>
    %c27 = arith.constant 27 : index
    %496 = memref.load %arg2[%c27] : memref<98xf32, #tpu.memory_space<smem>>
    %c6_394 = arith.constant 6 : index
    %c3_395 = arith.constant 3 : index
    %c0_396 = arith.constant 0 : index
    %497 = vector.load %arg7[%c6_394, %c3_395, %c0_396] : memref<14x22x16xf32, #tpu.memory_space<vmem>>, vector<1x16x16xf32>
    %498 = vector.shape_cast %497 : vector<1x16x16xf32> to vector<16x16xf32>
    %499 = vector.broadcast %496 : f32 to vector<16x16xf32>
    %500 = arith.mulf %499, %498 : vector<16x16xf32>
    %501 = arith.addf %495, %500 : vector<16x16xf32>
    %c34 = arith.constant 34 : index
    %502 = memref.load %arg2[%c34] : memref<98xf32, #tpu.memory_space<smem>>
    %c6_397 = arith.constant 6 : index
    %c4_398 = arith.constant 4 : index
    %c0_399 = arith.constant 0 : index
    %503 = vector.load %arg7[%c6_397, %c4_398, %c0_399] : memref<14x22x16xf32, #tpu.memory_space<vmem>>, vector<1x16x16xf32>
    %504 = vector.shape_cast %503 : vector<1x16x16xf32> to vector<16x16xf32>
    %505 = vector.broadcast %502 : f32 to vector<16x16xf32>
    %506 = arith.mulf %505, %504 : vector<16x16xf32>
    %507 = arith.addf %501, %506 : vector<16x16xf32>
    %c41 = arith.constant 41 : index
    %508 = memref.load %arg2[%c41] : memref<98xf32, #tpu.memory_space<smem>>
    %c6_400 = arith.constant 6 : index
    %c5_401 = arith.constant 5 : index
    %c0_402 = arith.constant 0 : index
    %509 = vector.load %arg7[%c6_400, %c5_401, %c0_402] : memref<14x22x16xf32, #tpu.memory_space<vmem>>, vector<1x16x16xf32>
    %510 = vector.shape_cast %509 : vector<1x16x16xf32> to vector<16x16xf32>
    %511 = vector.broadcast %508 : f32 to vector<16x16xf32>
    %512 = arith.mulf %511, %510 : vector<16x16xf32>
    %513 = arith.addf %507, %512 : vector<16x16xf32>
    %c48_403 = arith.constant 48 : index
    %514 = memref.load %arg2[%c48_403] : memref<98xf32, #tpu.memory_space<smem>>
    %c6_404 = arith.constant 6 : index
    %c6_405 = arith.constant 6 : index
    %c0_406 = arith.constant 0 : index
    %515 = vector.load %arg7[%c6_404, %c6_405, %c0_406] : memref<14x22x16xf32, #tpu.memory_space<vmem>>, vector<1x16x16xf32>
    %516 = vector.shape_cast %515 : vector<1x16x16xf32> to vector<16x16xf32>
    %517 = vector.broadcast %514 : f32 to vector<16x16xf32>
    %518 = arith.mulf %517, %516 : vector<16x16xf32>
    %519 = arith.addf %513, %518 : vector<16x16xf32>
    %c49 = arith.constant 49 : index
    %520 = memref.load %arg2[%c49] : memref<98xf32, #tpu.memory_space<smem>>
    %c7_407 = arith.constant 7 : index
    %c0_408 = arith.constant 0 : index
    %c0_409 = arith.constant 0 : index
    %521 = vector.load %arg7[%c7_407, %c0_408, %c0_409] : memref<14x22x16xf32, #tpu.memory_space<vmem>>, vector<1x16x16xf32>
    %522 = vector.shape_cast %521 : vector<1x16x16xf32> to vector<16x16xf32>
    %523 = vector.broadcast %520 : f32 to vector<16x16xf32>
    %524 = arith.mulf %523, %522 : vector<16x16xf32>
    %525 = arith.addf %519, %524 : vector<16x16xf32>
    %c56 = arith.constant 56 : index
    %526 = memref.load %arg2[%c56] : memref<98xf32, #tpu.memory_space<smem>>
    %c7_410 = arith.constant 7 : index
    %c1_411 = arith.constant 1 : index
    %c0_412 = arith.constant 0 : index
    %527 = vector.load %arg7[%c7_410, %c1_411, %c0_412] : memref<14x22x16xf32, #tpu.memory_space<vmem>>, vector<1x16x16xf32>
    %528 = vector.shape_cast %527 : vector<1x16x16xf32> to vector<16x16xf32>
    %529 = vector.broadcast %526 : f32 to vector<16x16xf32>
    %530 = arith.mulf %529, %528 : vector<16x16xf32>
    %531 = arith.addf %525, %530 : vector<16x16xf32>
    %c63 = arith.constant 63 : index
    %532 = memref.load %arg2[%c63] : memref<98xf32, #tpu.memory_space<smem>>
    %c7_413 = arith.constant 7 : index
    %c2_414 = arith.constant 2 : index
    %c0_415 = arith.constant 0 : index
    %533 = vector.load %arg7[%c7_413, %c2_414, %c0_415] : memref<14x22x16xf32, #tpu.memory_space<vmem>>, vector<1x16x16xf32>
    %534 = vector.shape_cast %533 : vector<1x16x16xf32> to vector<16x16xf32>
    %535 = vector.broadcast %532 : f32 to vector<16x16xf32>
    %536 = arith.mulf %535, %534 : vector<16x16xf32>
    %537 = arith.addf %531, %536 : vector<16x16xf32>
    %c70 = arith.constant 70 : index
    %538 = memref.load %arg2[%c70] : memref<98xf32, #tpu.memory_space<smem>>
    %c7_416 = arith.constant 7 : index
    %c3_417 = arith.constant 3 : index
    %c0_418 = arith.constant 0 : index
    %539 = vector.load %arg7[%c7_416, %c3_417, %c0_418] : memref<14x22x16xf32, #tpu.memory_space<vmem>>, vector<1x16x16xf32>
    %540 = vector.shape_cast %539 : vector<1x16x16xf32> to vector<16x16xf32>
    %541 = vector.broadcast %538 : f32 to vector<16x16xf32>
    %542 = arith.mulf %541, %540 : vector<16x16xf32>
    %543 = arith.addf %537, %542 : vector<16x16xf32>
    %c77 = arith.constant 77 : index
    %544 = memref.load %arg2[%c77] : memref<98xf32, #tpu.memory_space<smem>>
    %c7_419 = arith.constant 7 : index
    %c4_420 = arith.constant 4 : index
    %c0_421 = arith.constant 0 : index
    %545 = vector.load %arg7[%c7_419, %c4_420, %c0_421] : memref<14x22x16xf32, #tpu.memory_space<vmem>>, vector<1x16x16xf32>
    %546 = vector.shape_cast %545 : vector<1x16x16xf32> to vector<16x16xf32>
    %547 = vector.broadcast %544 : f32 to vector<16x16xf32>
    %548 = arith.mulf %547, %546 : vector<16x16xf32>
    %549 = arith.addf %543, %548 : vector<16x16xf32>
    %c84 = arith.constant 84 : index
    %550 = memref.load %arg2[%c84] : memref<98xf32, #tpu.memory_space<smem>>
    %c7_422 = arith.constant 7 : index
    %c5_423 = arith.constant 5 : index
    %c0_424 = arith.constant 0 : index
    %551 = vector.load %arg7[%c7_422, %c5_423, %c0_424] : memref<14x22x16xf32, #tpu.memory_space<vmem>>, vector<1x16x16xf32>
    %552 = vector.shape_cast %551 : vector<1x16x16xf32> to vector<16x16xf32>
    %553 = vector.broadcast %550 : f32 to vector<16x16xf32>
    %554 = arith.mulf %553, %552 : vector<16x16xf32>
    %555 = arith.addf %549, %554 : vector<16x16xf32>
    %c91 = arith.constant 91 : index
    %556 = memref.load %arg2[%c91] : memref<98xf32, #tpu.memory_space<smem>>
    %c7_425 = arith.constant 7 : index
    %c6_426 = arith.constant 6 : index
    %c0_427 = arith.constant 0 : index
    %557 = vector.load %arg7[%c7_425, %c6_426, %c0_427] : memref<14x22x16xf32, #tpu.memory_space<vmem>>, vector<1x16x16xf32>
    %558 = vector.shape_cast %557 : vector<1x16x16xf32> to vector<16x16xf32>
    %559 = vector.broadcast %556 : f32 to vector<16x16xf32>
    %560 = arith.mulf %559, %558 : vector<16x16xf32>
    %561 = arith.addf %555, %560 : vector<16x16xf32>
    %c50 = arith.constant 50 : index
    %562 = memref.load %arg2[%c50] : memref<98xf32, #tpu.memory_space<smem>>
    %c8_428 = arith.constant 8 : index
    %c0_429 = arith.constant 0 : index
    %c0_430 = arith.constant 0 : index
    %563 = vector.load %arg7[%c8_428, %c0_429, %c0_430] : memref<14x22x16xf32, #tpu.memory_space<vmem>>, vector<1x16x16xf32>
    %564 = vector.shape_cast %563 : vector<1x16x16xf32> to vector<16x16xf32>
    %565 = vector.broadcast %562 : f32 to vector<16x16xf32>
    %566 = arith.mulf %565, %564 : vector<16x16xf32>
    %567 = arith.addf %561, %566 : vector<16x16xf32>
    %c57 = arith.constant 57 : index
    %568 = memref.load %arg2[%c57] : memref<98xf32, #tpu.memory_space<smem>>
    %c8_431 = arith.constant 8 : index
    %c1_432 = arith.constant 1 : index
    %c0_433 = arith.constant 0 : index
    %569 = vector.load %arg7[%c8_431, %c1_432, %c0_433] : memref<14x22x16xf32, #tpu.memory_space<vmem>>, vector<1x16x16xf32>
    %570 = vector.shape_cast %569 : vector<1x16x16xf32> to vector<16x16xf32>
    %571 = vector.broadcast %568 : f32 to vector<16x16xf32>
    %572 = arith.mulf %571, %570 : vector<16x16xf32>
    %573 = arith.addf %567, %572 : vector<16x16xf32>
    %c64_434 = arith.constant 64 : index
    %574 = memref.load %arg2[%c64_434] : memref<98xf32, #tpu.memory_space<smem>>
    %c8_435 = arith.constant 8 : index
    %c2_436 = arith.constant 2 : index
    %c0_437 = arith.constant 0 : index
    %575 = vector.load %arg7[%c8_435, %c2_436, %c0_437] : memref<14x22x16xf32, #tpu.memory_space<vmem>>, vector<1x16x16xf32>
    %576 = vector.shape_cast %575 : vector<1x16x16xf32> to vector<16x16xf32>
    %577 = vector.broadcast %574 : f32 to vector<16x16xf32>
    %578 = arith.mulf %577, %576 : vector<16x16xf32>
    %579 = arith.addf %573, %578 : vector<16x16xf32>
    %c71 = arith.constant 71 : index
    %580 = memref.load %arg2[%c71] : memref<98xf32, #tpu.memory_space<smem>>
    %c8_438 = arith.constant 8 : index
    %c3_439 = arith.constant 3 : index
    %c0_440 = arith.constant 0 : index
    %581 = vector.load %arg7[%c8_438, %c3_439, %c0_440] : memref<14x22x16xf32, #tpu.memory_space<vmem>>, vector<1x16x16xf32>
    %582 = vector.shape_cast %581 : vector<1x16x16xf32> to vector<16x16xf32>
    %583 = vector.broadcast %580 : f32 to vector<16x16xf32>
    %584 = arith.mulf %583, %582 : vector<16x16xf32>
    %585 = arith.addf %579, %584 : vector<16x16xf32>
    %c78 = arith.constant 78 : index
    %586 = memref.load %arg2[%c78] : memref<98xf32, #tpu.memory_space<smem>>
    %c8_441 = arith.constant 8 : index
    %c4_442 = arith.constant 4 : index
    %c0_443 = arith.constant 0 : index
    %587 = vector.load %arg7[%c8_441, %c4_442, %c0_443] : memref<14x22x16xf32, #tpu.memory_space<vmem>>, vector<1x16x16xf32>
    %588 = vector.shape_cast %587 : vector<1x16x16xf32> to vector<16x16xf32>
    %589 = vector.broadcast %586 : f32 to vector<16x16xf32>
    %590 = arith.mulf %589, %588 : vector<16x16xf32>
    %591 = arith.addf %585, %590 : vector<16x16xf32>
    %c85 = arith.constant 85 : index
    %592 = memref.load %arg2[%c85] : memref<98xf32, #tpu.memory_space<smem>>
    %c8_444 = arith.constant 8 : index
    %c5_445 = arith.constant 5 : index
    %c0_446 = arith.constant 0 : index
    %593 = vector.load %arg7[%c8_444, %c5_445, %c0_446] : memref<14x22x16xf32, #tpu.memory_space<vmem>>, vector<1x16x16xf32>
    %594 = vector.shape_cast %593 : vector<1x16x16xf32> to vector<16x16xf32>
    %595 = vector.broadcast %592 : f32 to vector<16x16xf32>
    %596 = arith.mulf %595, %594 : vector<16x16xf32>
    %597 = arith.addf %591, %596 : vector<16x16xf32>
    %c92 = arith.constant 92 : index
    %598 = memref.load %arg2[%c92] : memref<98xf32, #tpu.memory_space<smem>>
    %c8_447 = arith.constant 8 : index
    %c6_448 = arith.constant 6 : index
    %c0_449 = arith.constant 0 : index
    %599 = vector.load %arg7[%c8_447, %c6_448, %c0_449] : memref<14x22x16xf32, #tpu.memory_space<vmem>>, vector<1x16x16xf32>
    %600 = vector.shape_cast %599 : vector<1x16x16xf32> to vector<16x16xf32>
    %601 = vector.broadcast %598 : f32 to vector<16x16xf32>
    %602 = arith.mulf %601, %600 : vector<16x16xf32>
    %603 = arith.addf %597, %602 : vector<16x16xf32>
    %c51 = arith.constant 51 : index
    %604 = memref.load %arg2[%c51] : memref<98xf32, #tpu.memory_space<smem>>
    %c9_450 = arith.constant 9 : index
    %c0_451 = arith.constant 0 : index
    %c0_452 = arith.constant 0 : index
    %605 = vector.load %arg7[%c9_450, %c0_451, %c0_452] : memref<14x22x16xf32, #tpu.memory_space<vmem>>, vector<1x16x16xf32>
    %606 = vector.shape_cast %605 : vector<1x16x16xf32> to vector<16x16xf32>
    %607 = vector.broadcast %604 : f32 to vector<16x16xf32>
    %608 = arith.mulf %607, %606 : vector<16x16xf32>
    %609 = arith.addf %603, %608 : vector<16x16xf32>
    %c58 = arith.constant 58 : index
    %610 = memref.load %arg2[%c58] : memref<98xf32, #tpu.memory_space<smem>>
    %c9_453 = arith.constant 9 : index
    %c1_454 = arith.constant 1 : index
    %c0_455 = arith.constant 0 : index
    %611 = vector.load %arg7[%c9_453, %c1_454, %c0_455] : memref<14x22x16xf32, #tpu.memory_space<vmem>>, vector<1x16x16xf32>
    %612 = vector.shape_cast %611 : vector<1x16x16xf32> to vector<16x16xf32>
    %613 = vector.broadcast %610 : f32 to vector<16x16xf32>
    %614 = arith.mulf %613, %612 : vector<16x16xf32>
    %615 = arith.addf %609, %614 : vector<16x16xf32>
    %c65 = arith.constant 65 : index
    %616 = memref.load %arg2[%c65] : memref<98xf32, #tpu.memory_space<smem>>
    %c9_456 = arith.constant 9 : index
    %c2_457 = arith.constant 2 : index
    %c0_458 = arith.constant 0 : index
    %617 = vector.load %arg7[%c9_456, %c2_457, %c0_458] : memref<14x22x16xf32, #tpu.memory_space<vmem>>, vector<1x16x16xf32>
    %618 = vector.shape_cast %617 : vector<1x16x16xf32> to vector<16x16xf32>
    %619 = vector.broadcast %616 : f32 to vector<16x16xf32>
    %620 = arith.mulf %619, %618 : vector<16x16xf32>
    %621 = arith.addf %615, %620 : vector<16x16xf32>
    %c72 = arith.constant 72 : index
    %622 = memref.load %arg2[%c72] : memref<98xf32, #tpu.memory_space<smem>>
    %c9_459 = arith.constant 9 : index
    %c3_460 = arith.constant 3 : index
    %c0_461 = arith.constant 0 : index
    %623 = vector.load %arg7[%c9_459, %c3_460, %c0_461] : memref<14x22x16xf32, #tpu.memory_space<vmem>>, vector<1x16x16xf32>
    %624 = vector.shape_cast %623 : vector<1x16x16xf32> to vector<16x16xf32>
    %625 = vector.broadcast %622 : f32 to vector<16x16xf32>
    %626 = arith.mulf %625, %624 : vector<16x16xf32>
    %627 = arith.addf %621, %626 : vector<16x16xf32>
    %c79 = arith.constant 79 : index
    %628 = memref.load %arg2[%c79] : memref<98xf32, #tpu.memory_space<smem>>
    %c9_462 = arith.constant 9 : index
    %c4_463 = arith.constant 4 : index
    %c0_464 = arith.constant 0 : index
    %629 = vector.load %arg7[%c9_462, %c4_463, %c0_464] : memref<14x22x16xf32, #tpu.memory_space<vmem>>, vector<1x16x16xf32>
    %630 = vector.shape_cast %629 : vector<1x16x16xf32> to vector<16x16xf32>
    %631 = vector.broadcast %628 : f32 to vector<16x16xf32>
    %632 = arith.mulf %631, %630 : vector<16x16xf32>
    %633 = arith.addf %627, %632 : vector<16x16xf32>
    %c86 = arith.constant 86 : index
    %634 = memref.load %arg2[%c86] : memref<98xf32, #tpu.memory_space<smem>>
    %c9_465 = arith.constant 9 : index
    %c5_466 = arith.constant 5 : index
    %c0_467 = arith.constant 0 : index
    %635 = vector.load %arg7[%c9_465, %c5_466, %c0_467] : memref<14x22x16xf32, #tpu.memory_space<vmem>>, vector<1x16x16xf32>
    %636 = vector.shape_cast %635 : vector<1x16x16xf32> to vector<16x16xf32>
    %637 = vector.broadcast %634 : f32 to vector<16x16xf32>
    %638 = arith.mulf %637, %636 : vector<16x16xf32>
    %639 = arith.addf %633, %638 : vector<16x16xf32>
    %c93 = arith.constant 93 : index
    %640 = memref.load %arg2[%c93] : memref<98xf32, #tpu.memory_space<smem>>
    %c9_468 = arith.constant 9 : index
    %c6_469 = arith.constant 6 : index
    %c0_470 = arith.constant 0 : index
    %641 = vector.load %arg7[%c9_468, %c6_469, %c0_470] : memref<14x22x16xf32, #tpu.memory_space<vmem>>, vector<1x16x16xf32>
    %642 = vector.shape_cast %641 : vector<1x16x16xf32> to vector<16x16xf32>
    %643 = vector.broadcast %640 : f32 to vector<16x16xf32>
    %644 = arith.mulf %643, %642 : vector<16x16xf32>
    %645 = arith.addf %639, %644 : vector<16x16xf32>
    %c52 = arith.constant 52 : index
    %646 = memref.load %arg2[%c52] : memref<98xf32, #tpu.memory_space<smem>>
    %c10_471 = arith.constant 10 : index
    %c0_472 = arith.constant 0 : index
    %c0_473 = arith.constant 0 : index
    %647 = vector.load %arg7[%c10_471, %c0_472, %c0_473] : memref<14x22x16xf32, #tpu.memory_space<vmem>>, vector<1x16x16xf32>
    %648 = vector.shape_cast %647 : vector<1x16x16xf32> to vector<16x16xf32>
    %649 = vector.broadcast %646 : f32 to vector<16x16xf32>
    %650 = arith.mulf %649, %648 : vector<16x16xf32>
    %651 = arith.addf %645, %650 : vector<16x16xf32>
    %c59 = arith.constant 59 : index
    %652 = memref.load %arg2[%c59] : memref<98xf32, #tpu.memory_space<smem>>
    %c10_474 = arith.constant 10 : index
    %c1_475 = arith.constant 1 : index
    %c0_476 = arith.constant 0 : index
    %653 = vector.load %arg7[%c10_474, %c1_475, %c0_476] : memref<14x22x16xf32, #tpu.memory_space<vmem>>, vector<1x16x16xf32>
    %654 = vector.shape_cast %653 : vector<1x16x16xf32> to vector<16x16xf32>
    %655 = vector.broadcast %652 : f32 to vector<16x16xf32>
    %656 = arith.mulf %655, %654 : vector<16x16xf32>
    %657 = arith.addf %651, %656 : vector<16x16xf32>
    %c66 = arith.constant 66 : index
    %658 = memref.load %arg2[%c66] : memref<98xf32, #tpu.memory_space<smem>>
    %c10_477 = arith.constant 10 : index
    %c2_478 = arith.constant 2 : index
    %c0_479 = arith.constant 0 : index
    %659 = vector.load %arg7[%c10_477, %c2_478, %c0_479] : memref<14x22x16xf32, #tpu.memory_space<vmem>>, vector<1x16x16xf32>
    %660 = vector.shape_cast %659 : vector<1x16x16xf32> to vector<16x16xf32>
    %661 = vector.broadcast %658 : f32 to vector<16x16xf32>
    %662 = arith.mulf %661, %660 : vector<16x16xf32>
    %663 = arith.addf %657, %662 : vector<16x16xf32>
    %c73 = arith.constant 73 : index
    %664 = memref.load %arg2[%c73] : memref<98xf32, #tpu.memory_space<smem>>
    %c10_480 = arith.constant 10 : index
    %c3_481 = arith.constant 3 : index
    %c0_482 = arith.constant 0 : index
    %665 = vector.load %arg7[%c10_480, %c3_481, %c0_482] : memref<14x22x16xf32, #tpu.memory_space<vmem>>, vector<1x16x16xf32>
    %666 = vector.shape_cast %665 : vector<1x16x16xf32> to vector<16x16xf32>
    %667 = vector.broadcast %664 : f32 to vector<16x16xf32>
    %668 = arith.mulf %667, %666 : vector<16x16xf32>
    %669 = arith.addf %663, %668 : vector<16x16xf32>
    %c80_483 = arith.constant 80 : index
    %670 = memref.load %arg2[%c80_483] : memref<98xf32, #tpu.memory_space<smem>>
    %c10_484 = arith.constant 10 : index
    %c4_485 = arith.constant 4 : index
    %c0_486 = arith.constant 0 : index
    %671 = vector.load %arg7[%c10_484, %c4_485, %c0_486] : memref<14x22x16xf32, #tpu.memory_space<vmem>>, vector<1x16x16xf32>
    %672 = vector.shape_cast %671 : vector<1x16x16xf32> to vector<16x16xf32>
    %673 = vector.broadcast %670 : f32 to vector<16x16xf32>
    %674 = arith.mulf %673, %672 : vector<16x16xf32>
    %675 = arith.addf %669, %674 : vector<16x16xf32>
    %c87 = arith.constant 87 : index
    %676 = memref.load %arg2[%c87] : memref<98xf32, #tpu.memory_space<smem>>
    %c10_487 = arith.constant 10 : index
    %c5_488 = arith.constant 5 : index
    %c0_489 = arith.constant 0 : index
    %677 = vector.load %arg7[%c10_487, %c5_488, %c0_489] : memref<14x22x16xf32, #tpu.memory_space<vmem>>, vector<1x16x16xf32>
    %678 = vector.shape_cast %677 : vector<1x16x16xf32> to vector<16x16xf32>
    %679 = vector.broadcast %676 : f32 to vector<16x16xf32>
    %680 = arith.mulf %679, %678 : vector<16x16xf32>
    %681 = arith.addf %675, %680 : vector<16x16xf32>
    %c94 = arith.constant 94 : index
    %682 = memref.load %arg2[%c94] : memref<98xf32, #tpu.memory_space<smem>>
    %c10_490 = arith.constant 10 : index
    %c6_491 = arith.constant 6 : index
    %c0_492 = arith.constant 0 : index
    %683 = vector.load %arg7[%c10_490, %c6_491, %c0_492] : memref<14x22x16xf32, #tpu.memory_space<vmem>>, vector<1x16x16xf32>
    %684 = vector.shape_cast %683 : vector<1x16x16xf32> to vector<16x16xf32>
    %685 = vector.broadcast %682 : f32 to vector<16x16xf32>
    %686 = arith.mulf %685, %684 : vector<16x16xf32>
    %687 = arith.addf %681, %686 : vector<16x16xf32>
    %c53 = arith.constant 53 : index
    %688 = memref.load %arg2[%c53] : memref<98xf32, #tpu.memory_space<smem>>
    %c11_493 = arith.constant 11 : index
    %c0_494 = arith.constant 0 : index
    %c0_495 = arith.constant 0 : index
    %689 = vector.load %arg7[%c11_493, %c0_494, %c0_495] : memref<14x22x16xf32, #tpu.memory_space<vmem>>, vector<1x16x16xf32>
    %690 = vector.shape_cast %689 : vector<1x16x16xf32> to vector<16x16xf32>
    %691 = vector.broadcast %688 : f32 to vector<16x16xf32>
    %692 = arith.mulf %691, %690 : vector<16x16xf32>
    %693 = arith.addf %687, %692 : vector<16x16xf32>
    %c60 = arith.constant 60 : index
    %694 = memref.load %arg2[%c60] : memref<98xf32, #tpu.memory_space<smem>>
    %c11_496 = arith.constant 11 : index
    %c1_497 = arith.constant 1 : index
    %c0_498 = arith.constant 0 : index
    %695 = vector.load %arg7[%c11_496, %c1_497, %c0_498] : memref<14x22x16xf32, #tpu.memory_space<vmem>>, vector<1x16x16xf32>
    %696 = vector.shape_cast %695 : vector<1x16x16xf32> to vector<16x16xf32>
    %697 = vector.broadcast %694 : f32 to vector<16x16xf32>
    %698 = arith.mulf %697, %696 : vector<16x16xf32>
    %699 = arith.addf %693, %698 : vector<16x16xf32>
    %c67 = arith.constant 67 : index
    %700 = memref.load %arg2[%c67] : memref<98xf32, #tpu.memory_space<smem>>
    %c11_499 = arith.constant 11 : index
    %c2_500 = arith.constant 2 : index
    %c0_501 = arith.constant 0 : index
    %701 = vector.load %arg7[%c11_499, %c2_500, %c0_501] : memref<14x22x16xf32, #tpu.memory_space<vmem>>, vector<1x16x16xf32>
    %702 = vector.shape_cast %701 : vector<1x16x16xf32> to vector<16x16xf32>
    %703 = vector.broadcast %700 : f32 to vector<16x16xf32>
    %704 = arith.mulf %703, %702 : vector<16x16xf32>
    %705 = arith.addf %699, %704 : vector<16x16xf32>
    %c74 = arith.constant 74 : index
    %706 = memref.load %arg2[%c74] : memref<98xf32, #tpu.memory_space<smem>>
    %c11_502 = arith.constant 11 : index
    %c3_503 = arith.constant 3 : index
    %c0_504 = arith.constant 0 : index
    %707 = vector.load %arg7[%c11_502, %c3_503, %c0_504] : memref<14x22x16xf32, #tpu.memory_space<vmem>>, vector<1x16x16xf32>
    %708 = vector.shape_cast %707 : vector<1x16x16xf32> to vector<16x16xf32>
    %709 = vector.broadcast %706 : f32 to vector<16x16xf32>
    %710 = arith.mulf %709, %708 : vector<16x16xf32>
    %711 = arith.addf %705, %710 : vector<16x16xf32>
    %c81 = arith.constant 81 : index
    %712 = memref.load %arg2[%c81] : memref<98xf32, #tpu.memory_space<smem>>
    %c11_505 = arith.constant 11 : index
    %c4_506 = arith.constant 4 : index
    %c0_507 = arith.constant 0 : index
    %713 = vector.load %arg7[%c11_505, %c4_506, %c0_507] : memref<14x22x16xf32, #tpu.memory_space<vmem>>, vector<1x16x16xf32>
    %714 = vector.shape_cast %713 : vector<1x16x16xf32> to vector<16x16xf32>
    %715 = vector.broadcast %712 : f32 to vector<16x16xf32>
    %716 = arith.mulf %715, %714 : vector<16x16xf32>
    %717 = arith.addf %711, %716 : vector<16x16xf32>
    %c88 = arith.constant 88 : index
    %718 = memref.load %arg2[%c88] : memref<98xf32, #tpu.memory_space<smem>>
    %c11_508 = arith.constant 11 : index
    %c5_509 = arith.constant 5 : index
    %c0_510 = arith.constant 0 : index
    %719 = vector.load %arg7[%c11_508, %c5_509, %c0_510] : memref<14x22x16xf32, #tpu.memory_space<vmem>>, vector<1x16x16xf32>
    %720 = vector.shape_cast %719 : vector<1x16x16xf32> to vector<16x16xf32>
    %721 = vector.broadcast %718 : f32 to vector<16x16xf32>
    %722 = arith.mulf %721, %720 : vector<16x16xf32>
    %723 = arith.addf %717, %722 : vector<16x16xf32>
    %c95 = arith.constant 95 : index
    %724 = memref.load %arg2[%c95] : memref<98xf32, #tpu.memory_space<smem>>
    %c11_511 = arith.constant 11 : index
    %c6_512 = arith.constant 6 : index
    %c0_513 = arith.constant 0 : index
    %725 = vector.load %arg7[%c11_511, %c6_512, %c0_513] : memref<14x22x16xf32, #tpu.memory_space<vmem>>, vector<1x16x16xf32>
    %726 = vector.shape_cast %725 : vector<1x16x16xf32> to vector<16x16xf32>
    %727 = vector.broadcast %724 : f32 to vector<16x16xf32>
    %728 = arith.mulf %727, %726 : vector<16x16xf32>
    %729 = arith.addf %723, %728 : vector<16x16xf32>
    %c54 = arith.constant 54 : index
    %730 = memref.load %arg2[%c54] : memref<98xf32, #tpu.memory_space<smem>>
    %c12_514 = arith.constant 12 : index
    %c0_515 = arith.constant 0 : index
    %c0_516 = arith.constant 0 : index
    %731 = vector.load %arg7[%c12_514, %c0_515, %c0_516] : memref<14x22x16xf32, #tpu.memory_space<vmem>>, vector<1x16x16xf32>
    %732 = vector.shape_cast %731 : vector<1x16x16xf32> to vector<16x16xf32>
    %733 = vector.broadcast %730 : f32 to vector<16x16xf32>
    %734 = arith.mulf %733, %732 : vector<16x16xf32>
    %735 = arith.addf %729, %734 : vector<16x16xf32>
    %c61 = arith.constant 61 : index
    %736 = memref.load %arg2[%c61] : memref<98xf32, #tpu.memory_space<smem>>
    %c12_517 = arith.constant 12 : index
    %c1_518 = arith.constant 1 : index
    %c0_519 = arith.constant 0 : index
    %737 = vector.load %arg7[%c12_517, %c1_518, %c0_519] : memref<14x22x16xf32, #tpu.memory_space<vmem>>, vector<1x16x16xf32>
    %738 = vector.shape_cast %737 : vector<1x16x16xf32> to vector<16x16xf32>
    %739 = vector.broadcast %736 : f32 to vector<16x16xf32>
    %740 = arith.mulf %739, %738 : vector<16x16xf32>
    %741 = arith.addf %735, %740 : vector<16x16xf32>
    %c68 = arith.constant 68 : index
    %742 = memref.load %arg2[%c68] : memref<98xf32, #tpu.memory_space<smem>>
    %c12_520 = arith.constant 12 : index
    %c2_521 = arith.constant 2 : index
    %c0_522 = arith.constant 0 : index
    %743 = vector.load %arg7[%c12_520, %c2_521, %c0_522] : memref<14x22x16xf32, #tpu.memory_space<vmem>>, vector<1x16x16xf32>
    %744 = vector.shape_cast %743 : vector<1x16x16xf32> to vector<16x16xf32>
    %745 = vector.broadcast %742 : f32 to vector<16x16xf32>
    %746 = arith.mulf %745, %744 : vector<16x16xf32>
    %747 = arith.addf %741, %746 : vector<16x16xf32>
    %c75 = arith.constant 75 : index
    %748 = memref.load %arg2[%c75] : memref<98xf32, #tpu.memory_space<smem>>
    %c12_523 = arith.constant 12 : index
    %c3_524 = arith.constant 3 : index
    %c0_525 = arith.constant 0 : index
    %749 = vector.load %arg7[%c12_523, %c3_524, %c0_525] : memref<14x22x16xf32, #tpu.memory_space<vmem>>, vector<1x16x16xf32>
    %750 = vector.shape_cast %749 : vector<1x16x16xf32> to vector<16x16xf32>
    %751 = vector.broadcast %748 : f32 to vector<16x16xf32>
    %752 = arith.mulf %751, %750 : vector<16x16xf32>
    %753 = arith.addf %747, %752 : vector<16x16xf32>
    %c82 = arith.constant 82 : index
    %754 = memref.load %arg2[%c82] : memref<98xf32, #tpu.memory_space<smem>>
    %c12_526 = arith.constant 12 : index
    %c4_527 = arith.constant 4 : index
    %c0_528 = arith.constant 0 : index
    %755 = vector.load %arg7[%c12_526, %c4_527, %c0_528] : memref<14x22x16xf32, #tpu.memory_space<vmem>>, vector<1x16x16xf32>
    %756 = vector.shape_cast %755 : vector<1x16x16xf32> to vector<16x16xf32>
    %757 = vector.broadcast %754 : f32 to vector<16x16xf32>
    %758 = arith.mulf %757, %756 : vector<16x16xf32>
    %759 = arith.addf %753, %758 : vector<16x16xf32>
    %c89 = arith.constant 89 : index
    %760 = memref.load %arg2[%c89] : memref<98xf32, #tpu.memory_space<smem>>
    %c12_529 = arith.constant 12 : index
    %c5_530 = arith.constant 5 : index
    %c0_531 = arith.constant 0 : index
    %761 = vector.load %arg7[%c12_529, %c5_530, %c0_531] : memref<14x22x16xf32, #tpu.memory_space<vmem>>, vector<1x16x16xf32>
    %762 = vector.shape_cast %761 : vector<1x16x16xf32> to vector<16x16xf32>
    %763 = vector.broadcast %760 : f32 to vector<16x16xf32>
    %764 = arith.mulf %763, %762 : vector<16x16xf32>
    %765 = arith.addf %759, %764 : vector<16x16xf32>
    %c96_532 = arith.constant 96 : index
    %766 = memref.load %arg2[%c96_532] : memref<98xf32, #tpu.memory_space<smem>>
    %c12_533 = arith.constant 12 : index
    %c6_534 = arith.constant 6 : index
    %c0_535 = arith.constant 0 : index
    %767 = vector.load %arg7[%c12_533, %c6_534, %c0_535] : memref<14x22x16xf32, #tpu.memory_space<vmem>>, vector<1x16x16xf32>
    %768 = vector.shape_cast %767 : vector<1x16x16xf32> to vector<16x16xf32>
    %769 = vector.broadcast %766 : f32 to vector<16x16xf32>
    %770 = arith.mulf %769, %768 : vector<16x16xf32>
    %771 = arith.addf %765, %770 : vector<16x16xf32>
    %c55 = arith.constant 55 : index
    %772 = memref.load %arg2[%c55] : memref<98xf32, #tpu.memory_space<smem>>
    %c13_536 = arith.constant 13 : index
    %c0_537 = arith.constant 0 : index
    %c0_538 = arith.constant 0 : index
    %773 = vector.load %arg7[%c13_536, %c0_537, %c0_538] : memref<14x22x16xf32, #tpu.memory_space<vmem>>, vector<1x16x16xf32>
    %774 = vector.shape_cast %773 : vector<1x16x16xf32> to vector<16x16xf32>
    %775 = vector.broadcast %772 : f32 to vector<16x16xf32>
    %776 = arith.mulf %775, %774 : vector<16x16xf32>
    %777 = arith.addf %771, %776 : vector<16x16xf32>
    %c62 = arith.constant 62 : index
    %778 = memref.load %arg2[%c62] : memref<98xf32, #tpu.memory_space<smem>>
    %c13_539 = arith.constant 13 : index
    %c1_540 = arith.constant 1 : index
    %c0_541 = arith.constant 0 : index
    %779 = vector.load %arg7[%c13_539, %c1_540, %c0_541] : memref<14x22x16xf32, #tpu.memory_space<vmem>>, vector<1x16x16xf32>
    %780 = vector.shape_cast %779 : vector<1x16x16xf32> to vector<16x16xf32>
    %781 = vector.broadcast %778 : f32 to vector<16x16xf32>
    %782 = arith.mulf %781, %780 : vector<16x16xf32>
    %783 = arith.addf %777, %782 : vector<16x16xf32>
    %c69 = arith.constant 69 : index
    %784 = memref.load %arg2[%c69] : memref<98xf32, #tpu.memory_space<smem>>
    %c13_542 = arith.constant 13 : index
    %c2_543 = arith.constant 2 : index
    %c0_544 = arith.constant 0 : index
    %785 = vector.load %arg7[%c13_542, %c2_543, %c0_544] : memref<14x22x16xf32, #tpu.memory_space<vmem>>, vector<1x16x16xf32>
    %786 = vector.shape_cast %785 : vector<1x16x16xf32> to vector<16x16xf32>
    %787 = vector.broadcast %784 : f32 to vector<16x16xf32>
    %788 = arith.mulf %787, %786 : vector<16x16xf32>
    %789 = arith.addf %783, %788 : vector<16x16xf32>
    %c76 = arith.constant 76 : index
    %790 = memref.load %arg2[%c76] : memref<98xf32, #tpu.memory_space<smem>>
    %c13_545 = arith.constant 13 : index
    %c3_546 = arith.constant 3 : index
    %c0_547 = arith.constant 0 : index
    %791 = vector.load %arg7[%c13_545, %c3_546, %c0_547] : memref<14x22x16xf32, #tpu.memory_space<vmem>>, vector<1x16x16xf32>
    %792 = vector.shape_cast %791 : vector<1x16x16xf32> to vector<16x16xf32>
    %793 = vector.broadcast %790 : f32 to vector<16x16xf32>
    %794 = arith.mulf %793, %792 : vector<16x16xf32>
    %795 = arith.addf %789, %794 : vector<16x16xf32>
    %c83 = arith.constant 83 : index
    %796 = memref.load %arg2[%c83] : memref<98xf32, #tpu.memory_space<smem>>
    %c13_548 = arith.constant 13 : index
    %c4_549 = arith.constant 4 : index
    %c0_550 = arith.constant 0 : index
    %797 = vector.load %arg7[%c13_548, %c4_549, %c0_550] : memref<14x22x16xf32, #tpu.memory_space<vmem>>, vector<1x16x16xf32>
    %798 = vector.shape_cast %797 : vector<1x16x16xf32> to vector<16x16xf32>
    %799 = vector.broadcast %796 : f32 to vector<16x16xf32>
    %800 = arith.mulf %799, %798 : vector<16x16xf32>
    %801 = arith.addf %795, %800 : vector<16x16xf32>
    %c90 = arith.constant 90 : index
    %802 = memref.load %arg2[%c90] : memref<98xf32, #tpu.memory_space<smem>>
    %c13_551 = arith.constant 13 : index
    %c5_552 = arith.constant 5 : index
    %c0_553 = arith.constant 0 : index
    %803 = vector.load %arg7[%c13_551, %c5_552, %c0_553] : memref<14x22x16xf32, #tpu.memory_space<vmem>>, vector<1x16x16xf32>
    %804 = vector.shape_cast %803 : vector<1x16x16xf32> to vector<16x16xf32>
    %805 = vector.broadcast %802 : f32 to vector<16x16xf32>
    %806 = arith.mulf %805, %804 : vector<16x16xf32>
    %807 = arith.addf %801, %806 : vector<16x16xf32>
    %c97 = arith.constant 97 : index
    %808 = memref.load %arg2[%c97] : memref<98xf32, #tpu.memory_space<smem>>
    %c13_554 = arith.constant 13 : index
    %c6_555 = arith.constant 6 : index
    %c0_556 = arith.constant 0 : index
    %809 = vector.load %arg7[%c13_554, %c6_555, %c0_556] : memref<14x22x16xf32, #tpu.memory_space<vmem>>, vector<1x16x16xf32>
    %810 = vector.shape_cast %809 : vector<1x16x16xf32> to vector<16x16xf32>
    %811 = vector.broadcast %808 : f32 to vector<16x16xf32>
    %812 = arith.mulf %811, %810 : vector<16x16xf32>
    %813 = arith.addf %807, %812 : vector<16x16xf32>
    %814 = vector.broadcast %8 : f32 to vector<16x16xf32>
    %815 = arith.addf %813, %814 : vector<16x16xf32>
    %816 = arith.negf %815 : vector<16x16xf32>
    %817 = math.exp %816 : vector<16x16xf32>
    %cst_557 = arith.constant 1.000000e+00 : f32
    %818 = vector.broadcast %cst_557 : f32 to vector<16x16xf32>
    %819 = arith.addf %818, %817 : vector<16x16xf32>
    %820 = arith.divf %818, %819 : vector<16x16xf32>
    %c0_558 = arith.constant 0 : index
    %c0_559 = arith.constant 0 : index
    %821 = vector.load %arg8[%c0_558, %c0_559] : memref<16x16xf32, #tpu.memory_space<vmem>>, vector<16x16xf32>
    tpu.vector_store %arg8[%c0_558, %c0_559], %820 {strides = array<i32>} : memref<16x16xf32, #tpu.memory_space<vmem>>, vector<16x16xf32>,
    %c0_560 = arith.constant 0 : index
    %c0_561 = arith.constant 0 : index
    %822 = vector.load %arg8[%c0_560, %c0_561] : memref<16x16xf32, #tpu.memory_space<vmem>>, vector<1x16xf32>
    %c0_562 = arith.constant 0 : index
    %c0_563 = arith.constant 0 : index
    %823 = vector.load %arg9[%c0_562, %c0_563] : memref<1x256xf32, #tpu.memory_space<vmem>>, vector<1x16xf32>
    tpu.vector_store %arg9[%c0_562, %c0_563], %822 {strides = array<i32>} : memref<1x256xf32, #tpu.memory_space<vmem>>, vector<1x16xf32>,
    %c1_564 = arith.constant 1 : index
    %c0_565 = arith.constant 0 : index
    %824 = vector.load %arg8[%c1_564, %c0_565] : memref<16x16xf32, #tpu.memory_space<vmem>>, vector<1x16xf32>
    %c0_566 = arith.constant 0 : index
    %c16_567 = arith.constant 16 : index
    %825 = vector.load %arg9[%c0_566, %c16_567] : memref<1x256xf32, #tpu.memory_space<vmem>>, vector<1x16xf32>
    tpu.vector_store %arg9[%c0_566, %c16_567], %824 {strides = array<i32>} : memref<1x256xf32, #tpu.memory_space<vmem>>, vector<1x16xf32>,
    %c2_568 = arith.constant 2 : index
    %c0_569 = arith.constant 0 : index
    %826 = vector.load %arg8[%c2_568, %c0_569] : memref<16x16xf32, #tpu.memory_space<vmem>>, vector<1x16xf32>
    %c0_570 = arith.constant 0 : index
    %c32_571 = arith.constant 32 : index
    %827 = vector.load %arg9[%c0_570, %c32_571] : memref<1x256xf32, #tpu.memory_space<vmem>>, vector<1x16xf32>
    tpu.vector_store %arg9[%c0_570, %c32_571], %826 {strides = array<i32>} : memref<1x256xf32, #tpu.memory_space<vmem>>, vector<1x16xf32>,
    %c3_572 = arith.constant 3 : index
    %c0_573 = arith.constant 0 : index
    %828 = vector.load %arg8[%c3_572, %c0_573] : memref<16x16xf32, #tpu.memory_space<vmem>>, vector<1x16xf32>
    %c0_574 = arith.constant 0 : index
    %c48_575 = arith.constant 48 : index
    %829 = vector.load %arg9[%c0_574, %c48_575] : memref<1x256xf32, #tpu.memory_space<vmem>>, vector<1x16xf32>
    tpu.vector_store %arg9[%c0_574, %c48_575], %828 {strides = array<i32>} : memref<1x256xf32, #tpu.memory_space<vmem>>, vector<1x16xf32>,
    %c4_576 = arith.constant 4 : index
    %c0_577 = arith.constant 0 : index
    %830 = vector.load %arg8[%c4_576, %c0_577] : memref<16x16xf32, #tpu.memory_space<vmem>>, vector<1x16xf32>
    %c0_578 = arith.constant 0 : index
    %c64_579 = arith.constant 64 : index
    %831 = vector.load %arg9[%c0_578, %c64_579] : memref<1x256xf32, #tpu.memory_space<vmem>>, vector<1x16xf32>
    tpu.vector_store %arg9[%c0_578, %c64_579], %830 {strides = array<i32>} : memref<1x256xf32, #tpu.memory_space<vmem>>, vector<1x16xf32>,
    %c5_580 = arith.constant 5 : index
    %c0_581 = arith.constant 0 : index
    %832 = vector.load %arg8[%c5_580, %c0_581] : memref<16x16xf32, #tpu.memory_space<vmem>>, vector<1x16xf32>
    %c0_582 = arith.constant 0 : index
    %c80_583 = arith.constant 80 : index
    %833 = vector.load %arg9[%c0_582, %c80_583] : memref<1x256xf32, #tpu.memory_space<vmem>>, vector<1x16xf32>
    tpu.vector_store %arg9[%c0_582, %c80_583], %832 {strides = array<i32>} : memref<1x256xf32, #tpu.memory_space<vmem>>, vector<1x16xf32>,
    %c6_584 = arith.constant 6 : index
    %c0_585 = arith.constant 0 : index
    %834 = vector.load %arg8[%c6_584, %c0_585] : memref<16x16xf32, #tpu.memory_space<vmem>>, vector<1x16xf32>
    %c0_586 = arith.constant 0 : index
    %c96_587 = arith.constant 96 : index
    %835 = vector.load %arg9[%c0_586, %c96_587] : memref<1x256xf32, #tpu.memory_space<vmem>>, vector<1x16xf32>
    tpu.vector_store %arg9[%c0_586, %c96_587], %834 {strides = array<i32>} : memref<1x256xf32, #tpu.memory_space<vmem>>, vector<1x16xf32>,
    %c7_588 = arith.constant 7 : index
    %c0_589 = arith.constant 0 : index
    %836 = vector.load %arg8[%c7_588, %c0_589] : memref<16x16xf32, #tpu.memory_space<vmem>>, vector<1x16xf32>
    %c0_590 = arith.constant 0 : index
    %c112_591 = arith.constant 112 : index
    %837 = vector.load %arg9[%c0_590, %c112_591] : memref<1x256xf32, #tpu.memory_space<vmem>>, vector<1x16xf32>
    tpu.vector_store %arg9[%c0_590, %c112_591], %836 {strides = array<i32>} : memref<1x256xf32, #tpu.memory_space<vmem>>, vector<1x16xf32>,
    %c8_592 = arith.constant 8 : index
    %c0_593 = arith.constant 0 : index
    %838 = vector.load %arg8[%c8_592, %c0_593] : memref<16x16xf32, #tpu.memory_space<vmem>>, vector<1x16xf32>
    %c0_594 = arith.constant 0 : index
    %c128_595 = arith.constant 128 : index
    %839 = vector.load %arg9[%c0_594, %c128_595] : memref<1x256xf32, #tpu.memory_space<vmem>>, vector<1x16xf32>
    tpu.vector_store %arg9[%c0_594, %c128_595], %838 {strides = array<i32>} : memref<1x256xf32, #tpu.memory_space<vmem>>, vector<1x16xf32>,
    %c9_596 = arith.constant 9 : index
    %c0_597 = arith.constant 0 : index
    %840 = vector.load %arg8[%c9_596, %c0_597] : memref<16x16xf32, #tpu.memory_space<vmem>>, vector<1x16xf32>
    %c0_598 = arith.constant 0 : index
    %c144_599 = arith.constant 144 : index
    %841 = vector.load %arg9[%c0_598, %c144_599] : memref<1x256xf32, #tpu.memory_space<vmem>>, vector<1x16xf32>
    tpu.vector_store %arg9[%c0_598, %c144_599], %840 {strides = array<i32>} : memref<1x256xf32, #tpu.memory_space<vmem>>, vector<1x16xf32>,
    %c10_600 = arith.constant 10 : index
    %c0_601 = arith.constant 0 : index
    %842 = vector.load %arg8[%c10_600, %c0_601] : memref<16x16xf32, #tpu.memory_space<vmem>>, vector<1x16xf32>
    %c0_602 = arith.constant 0 : index
    %c160_603 = arith.constant 160 : index
    %843 = vector.load %arg9[%c0_602, %c160_603] : memref<1x256xf32, #tpu.memory_space<vmem>>, vector<1x16xf32>
    tpu.vector_store %arg9[%c0_602, %c160_603], %842 {strides = array<i32>} : memref<1x256xf32, #tpu.memory_space<vmem>>, vector<1x16xf32>,
    %c11_604 = arith.constant 11 : index
    %c0_605 = arith.constant 0 : index
    %844 = vector.load %arg8[%c11_604, %c0_605] : memref<16x16xf32, #tpu.memory_space<vmem>>, vector<1x16xf32>
    %c0_606 = arith.constant 0 : index
    %c176_607 = arith.constant 176 : index
    %845 = vector.load %arg9[%c0_606, %c176_607] : memref<1x256xf32, #tpu.memory_space<vmem>>, vector<1x16xf32>
    tpu.vector_store %arg9[%c0_606, %c176_607], %844 {strides = array<i32>} : memref<1x256xf32, #tpu.memory_space<vmem>>, vector<1x16xf32>,
    %c12_608 = arith.constant 12 : index
    %c0_609 = arith.constant 0 : index
    %846 = vector.load %arg8[%c12_608, %c0_609] : memref<16x16xf32, #tpu.memory_space<vmem>>, vector<1x16xf32>
    %c0_610 = arith.constant 0 : index
    %c192_611 = arith.constant 192 : index
    %847 = vector.load %arg9[%c0_610, %c192_611] : memref<1x256xf32, #tpu.memory_space<vmem>>, vector<1x16xf32>
    tpu.vector_store %arg9[%c0_610, %c192_611], %846 {strides = array<i32>} : memref<1x256xf32, #tpu.memory_space<vmem>>, vector<1x16xf32>,
    %c13_612 = arith.constant 13 : index
    %c0_613 = arith.constant 0 : index
    %848 = vector.load %arg8[%c13_612, %c0_613] : memref<16x16xf32, #tpu.memory_space<vmem>>, vector<1x16xf32>
    %c0_614 = arith.constant 0 : index
    %c208_615 = arith.constant 208 : index
    %849 = vector.load %arg9[%c0_614, %c208_615] : memref<1x256xf32, #tpu.memory_space<vmem>>, vector<1x16xf32>
    tpu.vector_store %arg9[%c0_614, %c208_615], %848 {strides = array<i32>} : memref<1x256xf32, #tpu.memory_space<vmem>>, vector<1x16xf32>,
    %c14_616 = arith.constant 14 : index
    %c0_617 = arith.constant 0 : index
    %850 = vector.load %arg8[%c14_616, %c0_617] : memref<16x16xf32, #tpu.memory_space<vmem>>, vector<1x16xf32>
    %c0_618 = arith.constant 0 : index
    %c224_619 = arith.constant 224 : index
    %851 = vector.load %arg9[%c0_618, %c224_619] : memref<1x256xf32, #tpu.memory_space<vmem>>, vector<1x16xf32>
    tpu.vector_store %arg9[%c0_618, %c224_619], %850 {strides = array<i32>} : memref<1x256xf32, #tpu.memory_space<vmem>>, vector<1x16xf32>,
    %c15_620 = arith.constant 15 : index
    %c0_621 = arith.constant 0 : index
    %852 = vector.load %arg8[%c15_620, %c0_621] : memref<16x16xf32, #tpu.memory_space<vmem>>, vector<1x16xf32>
    %c0_622 = arith.constant 0 : index
    %c240_623 = arith.constant 240 : index
    %853 = vector.load %arg9[%c0_622, %c240_623] : memref<1x256xf32, #tpu.memory_space<vmem>>, vector<1x16xf32>
    tpu.vector_store %arg9[%c0_622, %c240_623], %852 {strides = array<i32>} : memref<1x256xf32, #tpu.memory_space<vmem>>, vector<1x16xf32>,
    %c0_624 = arith.constant 0 : index
    %c0_625 = arith.constant 0 : index
    %854 = vector.load %arg9[%c0_624, %c0_625] : memref<1x256xf32, #tpu.memory_space<vmem>>, vector<1x256xf32>
    %c0_i32_626 = arith.constant 0 : i32
    %c4_i32_627 = arith.constant 4 : i32
    %855 = arith.muli %c0_i32_626, %c4_i32_627 : i32
    %856 = tpu.assume_multiple %855, 4 : i32
    %857 = arith.index_cast %c0_i32 : i32 to index
    %858 = arith.index_cast %856 : i32 to index
    %c0_628 = arith.constant 0 : index
    %859 = vector.load %arg1[%857, %858, %c0_628] : memref<1x4x256xf32, #tpu.memory_space<vmem>>, vector<1x4x256xf32>
    %860 = vector.shape_cast %859 : vector<1x4x256xf32> to vector<4x256xf32>
    %861 = vector.broadcast %854 : vector<1x256xf32> to vector<4x256xf32>
    %862 = arith.mulf %860, %861 : vector<4x256xf32>
    %863 = arith.index_cast %c0_i32 : i32 to index
    %864 = arith.index_cast %856 : i32 to index
    %c0_629 = arith.constant 0 : index
    %865 = vector.load %arg4[%863, %864, %c0_629] : memref<1x4x256xf32, #tpu.memory_space<vmem>>, vector<1x4x256xf32>
    %866 = vector.shape_cast %865 : vector<1x4x256xf32> to vector<4x256xf32>
    %867 = vector.shape_cast %862 : vector<4x256xf32> to vector<1x4x256xf32>
    tpu.vector_store %arg4[%863, %864, %c0_629], %867 {strides = array<i32>} : memref<1x4x256xf32, #tpu.memory_space<vmem>>, vector<1x4x256xf32>,
    %c1_i32_630 = arith.constant 1 : i32
    %c1_i32_631 = arith.constant 1 : i32
    return
  }
  func.func @transform_0(%arg0: i32) -> (i32, i32, i32) {
    %c0_i32 = arith.constant 0 : i32
    %c0_i32_0 = arith.constant 0 : i32
    %c0_i32_1 = arith.constant 0 : i32
    return %arg0, %c0_i32, %c0_i32_0 : i32, i32, i32
  }
  func.func @transform_1(%arg0: i32) -> i32 {
    %c0_i32 = arith.constant 0 : i32
    %c0_i32_0 = arith.constant 0 : i32
    return %c0_i32 : i32
  }
  func.func @transform_2(%arg0: i32) -> i32 {
    %c0_i32 = arith.constant 0 : i32
    %c0_i32_0 = arith.constant 0 : i32
    return %c0_i32 : i32
  }
  func.func @transform_3(%arg0: i32) -> (i32, i32, i32) {
    %c0_i32 = arith.constant 0 : i32
    %c0_i32_0 = arith.constant 0 : i32
    %c0_i32_1 = arith.constant 0 : i32
    return %arg0, %c0_i32, %c0_i32_0 : i32, i32, i32
  }
}

</mosaic_0001>

<bundles_post_ra>
// kernel: tpu_custom_call.1
= control target key start
LH: loop header
LB: loop body
LE: loop exit
PB: predicated region body
PF: predicated region fallthrough
CT: control target
= control target key end

     0   :  { %s3270_s0 = inlined_call_operand.hbm [shape: f32[2,4,256], index: 0, kind: input, shape index: {}]   ;;  %s3271_s1 = inlined_call_operand.vmem [shape: f32[98], index: 1, kind: input, shape index: {}]   ;;  %s3272_s2 = inlined_call_operand.<no memory space> [shape: f32[1], index: 2, kind: input, shape index: {}]   ;;  %s3273_s3 = inlined_call_operand.hbm [shape: f32[2,4,256], index: 3, kind: output, shape index: {}]  }
   0x1   :  { %8 = sst [smem:[#allocation7]] %s3272_s2 }
   0x2   :  { %9 = vsyncpa [#allocation9], 0 }
   0x3   :  { %11 = vsyncpa [#allocation9 + $0x1], 0 }
   0x4   :  { %12 = vsyncpa [#allocation11], 0 }
   0x5   :  { %13 = vsyncpa [#allocation10], 0 }
   0x6   :  { %15 = vsyncpa [#allocation10 + $0x1], 0  ;;  %s2453_s14 = smov 0   ;;  %s2455_s15 = smov 0  }
   0x7   :  { %s2457_s16 = smov 0   ;;  %s2459_s17 = smov 0  }
   0x8 LB: > { %s2474_s2 = sadd.s32 4294967295, %s2402_s17   ;;  %s2035_s18 = sadd.s32 4294967294, %s2402_s17   ;;  %s2402_s17 = sphi %s2459_s17, %s3320_s17   ;;  %s2398_s16 = sphi %s2457_s16, %s3319_s16   ;;  %s2394_s15 = sphi %s2455_s15, %s3318_s15   ;;  %s2390_s14 = sphi %s2453_s14, %s3317_s14  }
   0x9   : > { %p41_p0 = scmp.ne.s32.totalorder %s2394_s15, %s2390_s14  ;;  %p3274_p1 = scmp.eq.s32.totalorder %s2474_s2, 0 }
   0xa   : > { %p113_p3 = scmp.eq.s32.totalorder %s2035_s18, 1  ;;  %p2036_p5 = scmp.ge.s32.totalorder %s2402_s17, 1 }
   0xb   : > { %p2483_p4 = por %p3274_p1, %p41_p0  ;;  %p120_p7 = scmp.lt.s32.totalorder %s2402_s17, 3 }
   0xc   : > { %p2488_p6 = por %p113_p3, %p41_p0  ;;  %s133_s23 = sshll.u32 %s3271_s1, 4  ;;  %s134_s23 = int_to_ptr.vmem [resolvable:$true] %s133_s23 }
   0xd   : > { %s3277_s19 = scalar_select %p2483_p4, 1, 0 }
   0xe   : > { %s3278_s20 = scalar_select %p2488_p6, 1, 0 }
   0xf   : > { %p2496_p8 = pnand %p2036_p5, %p120_p7  ;;  %s2504_s25 = sadd.s32 1, %s2402_s17  }
  0x10   : > { %s25_s27 = ssub.s32 %s2402_s17, %s2504_s25  ;;  %s28_s29 = sadd.s32 1, %s2398_s16 }
  0x11   : > { %p2206_p10 = pneg %p2496_p8  ;;  %p2514_p12 = scmp.eq.s32.totalorder %s25_s27, 0 }
  0x12   : > { %p35_p13 = scmp.ne.s32.totalorder %s2398_s16, %s2394_s15  ;;  %s2287_s30 = scalar_lea.vmem %s134_s23, 16 }
  0x13   : > { %p2508_p11 = pnand %p2206_p10, %p3274_p1  ;;  %p2288_p0 = scmp.ne.s32.totalorder %s134_s23, %s2287_s30 }
  0x14   : > { %p2295_p9 = scmp.lt.s32.totalorder %s134_s23, %s134_s23  ;;  %p2296_p2 = scmp.lt.s32.totalorder %s2287_s30, %s2287_s30 }
  0x15   : > { %p2289_p3 = pneg %p2508_p11 }
  0x16   : > { %p2297_p10 = por %p2296_p2, %p2295_p9 }
  0x17   : > { %p2290_p5 = pnand %p2289_p3, %p2288_p0 }
  0x19   : > { %p2291_p7 = pneg %p2290_p5 }
  0x1b   : > { %p2298_p1 = pnand %p2297_p10, %p2291_p7 }
  0x1d   : > { %2301 = shalt.err (!%p2298_p1)
}
  0x1e   : > { %s2404_s4 = smov [#allocation12]   ;;  %p36_p2 = scmp.eq.s32.totalorder %s2402_s17, 0 }
  0x1f   : > { %2209 = dma.vmem_to_smem (!%p2508_p11), %s134_s23, 16, %s2404_s4, [#allocation11]  }
  0x20   : > { %s2528_s5 = scalar_select %p2514_p12, %s2398_s16, %s28_s29  }
  0x21   : > { %p3282_p1 = scmp.eq.s32.totalorder %s2474_s2, 1  ;;  %p2219_p0 = scmp.lt.s32.totalorder %s2402_s17, 2 }
  0x22   : > { %s147_s7 = sand.u32 1, %s2398_s16   ;;  %p37_p3 = por %p36_p2, %p35_p13 }
  0x23   : > { %p2536_p9 = por %p3282_p1, %p35_p13  ;;  %s2039_s8 = sshll.u32 %s147_s7, 3 }
  0x24   : > { %s2196_s9 = sshll.u32 %s2402_s17, 7  ;;  %s151_s13 = scalar_lea.vmem [#allocation8], %s2039_s8 }
  0x25   : > { %s3283_s6 = scalar_select %p2536_p9, 1, 0 }
  0x26   : > { %s2549_s12 = scalar_lea.hbm %s3270_s0, %s2196_s9  ;;  %s159_s18 = sshll.u32 %s151_s13, 4  ;;  %s2555_s18 = int_to_ptr.vmem [resolvable:$true] %s159_s18 }
  0x27   : > { %p2551_p11 = pnand %p2219_p0, %p37_p3  ;;  %s148_s22 = scalar_lea.sflag [#allocation9], %s147_s7 }
  0x28   : > { %s2302_s23 = scalar_lea.hbm %s2549_s12, 128  ;;  %s2307_s28 = scalar_lea.hbm %s3270_s0, 256 }
  0x29   : > { %p2303_p12 = scmp.ne.s32.totalorder %s2549_s12, %s2302_s23  ;;  %p2304_p13 = pneg %p2551_p11 }
  0x2a   : > { %p2308_p10 = scmp.lt.u32.totalorder %s2549_s12, %s3270_s0  ;;  %p2309_p2 = scmp.lt.u32.totalorder %s2307_s28, %s2302_s23 }
  0x2b   : > { %p2305_p5 = pnand %p2304_p13, %p2303_p12  ;;  %p2311_p0 = scmp.lt.u32.totalorder %s2302_s23, %s2549_s12 }
  0x2c   : > { %p2310_p1 = por %p2309_p2, %p2308_p10 }
  0x2d   : > { %p2306_p7 = pneg %p2305_p5 }
  0x2e   : > { %p2312_p3 = por %p2311_p0, %p2310_p1 }
  0x30   : > { %p2313_p6 = pnand %p2312_p3, %p2306_p7 }
  0x32   : > { %2316 = shalt.err (!%p2313_p6)
}
  0x33   : > { %s2317_s4 = scalar_lea.vmem %s2555_s18, 128  ;;  %s2405_s7 = smov [#allocation8]  }
  0x34   : > { %p2318_p12 = scmp.ne.s32.totalorder %s2555_s18, %s2317_s4  ;;  %s2322_s8 = sshll.u32 %s2405_s7, 4  ;;  %s2323_s8 = int_to_ptr.vmem [resolvable:$false] %s2322_s8 }
  0x35   : > { %s2324_s9 = scalar_lea.vmem %s2323_s8, 256  ;;  %p2325_p4 = scmp.lt.s32.totalorder %s2555_s18, %s2323_s8 }
  0x36   : > { %p2320_p5 = pnand %p2318_p12, %p2304_p13  ;;  %p2326_p10 = scmp.lt.s32.totalorder %s2324_s9, %s2317_s4 }
  0x38   : > { %p2321_p9 = pneg %p2320_p5  ;;  %p2327_p2 = por %p2326_p10, %p2325_p4 }
  0x3a   : > { %p2328_p1 = pnand %p2327_p2, %p2321_p9 }
  0x3c   : > { %2331 = shalt.err (!%p2328_p1)
}
  0x3d   : > { %2213 = dma.hbm_to_vmem [thread:$0]  (!%p2551_p11), %s2549_s12, 128, %s2555_s18, %s148_s22  }
  0x3e   : > { %168 = sbr.rel (%p2496_p8) target bundleno = 826 (0x33a), region = 32  ;;  %s2585_s10 = sand.u32 (!%p2496_p8), 1, %s2394_s15  }
  0x3f   : > { %s2043_s11 = sshll.u32 (!%p2496_p8), %s2585_s10, 3  ;;  %s171_s13 = scalar_lea.sflag (!%p2496_p8), [#allocation9], %s2585_s10 }
  0x40   : > { %s2591_s23 = scalar_lea.vmem (!%p2496_p8), [#allocation8], %s2043_s11  ;;  %p3285_p4 = scmp.ne.s32.totalorder (!%p2496_p8), %s3277_s19, 0 }
  0x45   : > { %2377 = dma.done.wait (%p3285_p4), %s171_s13, 128  }
  0x46   : > { %2379 = vsyncadd (%p3285_p4), %s171_s13, 4294967168  ;;  %p3286_p6 = scmp.eq.s32.totalorder %s2474_s2, 0 }
  0x48   : > { %2381 = dma.done.wait (%p3286_p6), [#allocation11], 16   ;;  %p3287_p8 = pmov %p3286_p6 }
  0x4a   : > { %2383 = vsyncadd (%p3287_p8), [#allocation11], 4294967280 }
  0x4b   : > { %183 = sfence }
  0x4c   : > { %v245_v0 = vld [vmem:[%s2591_s23] sm:$0xff]  ;;  %vm249_vm0 = vcmask 1043456   ;;  %v2406_v11 = vmov 1966171168   ;;  %v286_v13 = vlaneseq  ;;  %vm202_vm1 = vcmask 23552   ;;  %s2408_s19 = smov 99  }
  0x4d   : > { %v247_v1 = vcombine.high %v245_v0, %v245_v0  ;;  %v250_v2 = vsel %vm249_vm0, %v245_v0, -inf  ;;  %v264_v4 = vsel %vm249_vm0, %v245_v0, 0.0  ;;  %v284_v12 = vunpack.c.l.s4 %v2406_v11  ;;  %s2409_s24 = smov 3   ;;  %s2410_s12 = smov 83  }
  0x4e   : > { %v251_v3 = vrot.slane %v250_v2, 4  ;;  %v265_v6 = vrot.slane %v264_v4, 4  ;;  %v2603_v23 = vshrl.u32 %v286_v13, 7  ;;  %v2407_v36 = vmov 0.0   ;;  %s2411_s18 = smov 115   ;;  %s2412_s21 = smov 51  }
  0x4f   : > { %v257_v5 = vsel %vm249_vm0, %v247_v1, -inf  ;;  %v271_v7 = vsel %vm249_vm0, %v247_v1, 0.0  ;;  %v285_v22 = vunpack.c.0.s8 %v284_v12  ;;  %203 = vst.msk [vmem:[#allocation3] sm:$0xff] %vm202_vm1, %v2407_v36  ;;  %vm207_vm2 = vcmask 179352   ;;  %204 = vst.msk [vmem:[#allocation3 + $0x8] sm:$0xff] %vm202_vm1, %v2407_v36  ;;  %s2413_s22 = smov 67  }
  0x50   : > { %v252_v8 = vmax.f32 %v250_v2, %v251_v3  ;;  %v258_v9 = vrot.slane %v257_v5, 4  ;;  %v272_v10 = vrot.slane %v271_v7, 4  ;;  %v266_v14 = vadd.f32 %v265_v6, %v264_v4  ;;  %205 = vst.msk [vmem:[#allocation3 + $0x10] sm:$0xff] %vm202_vm1, %v2407_v36  ;;  %206 = vst.msk [vmem:[#allocation3 + $0x18] sm:$0xff] %vm202_vm1, %v2407_v36  ;;  %s2414_s26 = smov 19   ;;  %s2415_s27 = smov 35  }
  0x51   : > { %v2606_v32 = vsub.s32 %v285_v22, %v2603_v23  ;;  %208 = vst.msk [vmem:[#allocation3] sm:$0xff] %vm207_vm2, %v2407_v36  ;;  %209 = vst.msk [vmem:[#allocation3 + $0x8] sm:$0xff] %vm207_vm2, %v2407_v36  ;;  %vm300_vm3 = vcmp.lt.s32.totalorder %v286_v13, 256  ;;  %vm212_vm4 = vcmask 124928   ;;  %vm334_vm5 = vcmask 147480   ;;  %s2416_s28 = smov 127  }
  0x52   : > { %v253_v15 = vrot.slane %v252_v8, 2  ;;  %v259_v16 = vmax.f32 %v257_v5, %v258_v9  ;;  %v273_v17 = vadd.f32 %v272_v10, %v271_v7  ;;  %v267_v18 = vrot.slane %v266_v14, 2  ;;  %210 = vst.msk [vmem:[#allocation3 + $0x10] sm:$0xff] %vm207_vm2, %v2407_v36  ;;  %211 = vst.msk [vmem:[#allocation3 + $0x18] sm:$0xff] %vm207_vm2, %v2407_v36  ;;  %s2417_s29 = smov 126   ;;  %s2418_s30 = smov 125  }
  0x53   : > { %213 = vst.msk [vmem:[#allocation4] sm:$0x7] %vm212_vm4, %v2407_v36  ;;  %214 = vst.msk [vmem:[#allocation4 + $0x18] sm:$0x7] %vm212_vm4, %v2407_v36  ;;  %vm649_vm6 = vcmask 130048   ;;  %s2419_s4 = smov 124  }
  0x54   : > { %v254_v19 = vmax.f32 %v252_v8, %v253_v15  ;;  %v260_v20 = vrot.slane %v259_v16, 2  ;;  %v274_v21 = vrot.slane %v273_v17, 2  ;;  %v268_v24 = vadd.f32 %v267_v18, %v266_v14  ;;  %215 = vst.msk [vmem:[#allocation4 + $0x30] sm:$0x7] %vm212_vm4, %v2407_v36  ;;  %216 = vst.msk [vmem:[#allocation4 + $0x48] sm:$0x7] %vm212_vm4, %v2407_v36 }
  0x55   : > { %217 = vst.msk [vmem:[#allocation4 + $0x60] sm:$0x7] %vm212_vm4, %v2407_v36  ;;  %218 = vst.msk [vmem:[#allocation4 + $0x78] sm:$0x7] %vm212_vm4, %v2407_v36  ;;  %s2420_s7 = smov 123   ;;  %s2421_s8 = smov 122  }
  0x56   : > { %v255_v25 = vrot.slane %v254_v19, 1  ;;  %v261_v26 = vmax.f32 %v259_v16, %v260_v20  ;;  %v275_v27 = vadd.f32 %v274_v21, %v273_v17  ;;  %v269_v28 = vrot.slane %v268_v24, 1  ;;  %219 = vst.msk [vmem:[#allocation4 + $0x90] sm:$0x7] %vm212_vm4, %v2407_v36  ;;  %220 = vst.msk [vmem:[#allocation4 + $0xa8] sm:$0x7] %vm212_vm4, %v2407_v36 }
  0x57   : > { %221 = vst.msk [vmem:[#allocation4 + $0xc0] sm:$0x7] %vm212_vm4, %v2407_v36  ;;  %222 = vst.msk [vmem:[#allocation4 + $0xd8] sm:$0x7] %vm212_vm4, %v2407_v36  ;;  %s813_s9 = sld [smem:[#allocation12]]  ;;  %s2078_s13 = sld [smem:[#allocation12 + $0x7]] }
  0x58   : > { %v256_v29 = vmax.f32 %v254_v19, %v255_v25  ;;  %v262_v30 = vrot.slane %v261_v26, 1  ;;  %v276_v31 = vrot.slane %v275_v27, 1  ;;  %v270_v33 = vadd.f32 %v269_v28, %v268_v24  ;;  %223 = vst.msk [vmem:[#allocation4 + $0xf0] sm:$0x7] %vm212_vm4, %v2407_v36  ;;  %224 = vst.msk [vmem:[#allocation4 + $0x108] sm:$0x7] %vm212_vm4, %v2407_v36 }
  0x59   : > { %225 = vst.msk [vmem:[#allocation4 + $0x120] sm:$0x7] %vm212_vm4, %v2407_v36  ;;  %226 = vst.msk [vmem:[#allocation4 + $0x138] sm:$0x7] %vm212_vm4, %v2407_v36  ;;  %vm3068_vm7 = vcmp.lt.s32.totalorder %v286_v13, 16  ;;  %vm3092_vm8 = vcmp.ge.s32.totalorder %v286_v13, 16 }
  0x5a   : > { %v263_v34 = vmax.f32 %v261_v26, %v262_v30  ;;  %v277_v35 = vadd.f32 %v276_v31, %v275_v27  ;;  %v303_v37 = vmul.f32 0.25, %v270_v33  ;;  %227 = vst.msk [vmem:[#allocation4 + $0x13] sm:$0x7] %vm212_vm4, %v2407_v36  ;;  %228 = vst.msk [vmem:[#allocation4 + $0x2b] sm:$0x7] %vm212_vm4, %v2407_v36  ;;  %vm3097_vm9 = vcmp.lt.s32.totalorder %v286_v13, 32 }
  0x5b   : > { %229 = vst.msk [vmem:[#allocation4 + $0x43] sm:$0x7] %vm212_vm4, %v2407_v36  ;;  %230 = vst.msk [vmem:[#allocation4 + $0x5b] sm:$0x7] %vm212_vm4, %v2407_v36  ;;  %vm3106_vm11 = vcmp.ge.s32.totalorder %v286_v13, 32  ;;  %vm3111_vm12 = vcmp.lt.s32.totalorder %v286_v13, 48 }
  0x5c   : > { %v282_v38 = vcombine.low %v256_v29, %v263_v34  ;;  %v304_v39 = vmul.f32 0.25, %v277_v35  ;;  %231 = vst.msk [vmem:[#allocation4 + $0x73] sm:$0x7] %vm212_vm4, %v2407_v36  ;;  %232 = vst.msk [vmem:[#allocation4 + $0x8b] sm:$0x7] %vm212_vm4, %v2407_v36  ;;  %vm3120_vm14 = vcmp.ge.s32.totalorder %v286_v13, 48 }
  0x5d   : > { %233 = vst.msk [vmem:[#allocation4 + $0xa3] sm:$0x7] %vm212_vm4, %v2407_v36  ;;  %234 = vst.msk [vmem:[#allocation4 + $0xbb] sm:$0x7] %vm212_vm4, %v2407_v36  ;;  %v816_v7 = vstv %s813_s9  ;;  %v824_v8 = vstv %s2078_s13  ;;  %s2733_s9 = sld [smem:[#allocation12 + $0x16]]  ;;  %s2736_s13 = sld [smem:[#allocation12 + $0x1d]] }
  0x5e   : > { %v289_v40 = vrot.slane %v282_v38, %v2606_v32  ;;  %v307_v41 = vcombine.low %v303_v37, %v304_v39  ;;  %235 = vst.msk [vmem:[#allocation4 + $0xd3] sm:$0x7] %vm212_vm4, %v2407_v36  ;;  %236 = vst.msk [vmem:[#allocation4 + $0xeb] sm:$0x7] %vm212_vm4, %v2407_v36  ;;  %vm3125_vm15 = vcmp.lt.s32.totalorder %v286_v13, 64  ;;  %vm3139_vm1 = vcmp.ge.s32.totalorder %v286_v13, 64 }
  0x5f   : > { %237 = vst.msk [vmem:[#allocation4 + $0x103] sm:$0x7] %vm212_vm4, %v2407_v36  ;;  %238 = vst.msk [vmem:[#allocation4 + $0x11b] sm:$0x7] %vm212_vm4, %v2407_v36  ;;  %vm3144_vm2 = vcmp.lt.s32.totalorder %v286_v13, 80  ;;  %p3314_p11 = scmp.ne.s32.totalorder %s3283_s6, 0 }
  0x60   : > { %v296_v42 = vrot.slane %v289_v40, %v2606_v32  ;;  %v314_v43 = vrot.slane %v307_v41, %v2606_v32  ;;  %239 = vst.msk [vmem:[#allocation4 + $0x133] sm:$0x7] %vm212_vm4, %v2407_v36  ;;  %240 = vst.msk [vmem:[#allocation4 + $0x14b] sm:$0x7] %vm212_vm4, %v2407_v36  ;;  %vm3158_vm4 = vcmp.ge.s32.totalorder %v286_v13, 80 }
  0x61   : > { %vm1639_vm10 = vmand %vm3092_vm8, %vm3097_vm9  ;;  %vm3187_vm8 = vcmp.lt.s32.totalorder %v286_v13, 112 }
  0x62   : > { %302 = vst.msk [vmem:[#allocation2] ss:$2 sm:$0x3] %vm300_vm3, %v296_v42  ;;  %v321_v44 = vrot.slane %v314_v43, %v2606_v32  ;;  %vm1662_vm13 = vmand %vm3106_vm11, %vm3111_vm12  ;;  %vm1776_vm11 = vcmp.lt.s32.totalorder %v286_v13, 128 }
  0x63   : > { %vm1685_vm0 = vmand %vm3120_vm14, %vm3125_vm15 }
  0x64   : > { %324 = vst.msk [vmem:[#allocation2 + $0x1] ss:$2 sm:$0x3] %vm300_vm3, %v321_v44  ;;  %vm1708_vm3 = vmand %vm3139_vm1, %vm3144_vm2 }
  0x69   : > { %v2048_v45 = vld [vmem:[#allocation2] ss:$0 sm:$0xff]  ;;  %v2055_v46 = vld [vmem:[#allocation2 + $0x2] ss:$0 sm:$0xff] }
  0x6a   : > { %352 = vrot.lane.b32.xlu1 %v2048_v45, %s2408_s19  ;;  %331 = vrot.lane.b32.xlu0 %v2048_v45, %s2409_s24 }
  0x6b   : > { %v2062_v47 = vld [vmem:[#allocation2 + $0x1] ss:$0 sm:$0xff]  ;;  %v2070_v3 = vld [vmem:[#allocation2 + $0x3] ss:$0 sm:$0xff] }
  0x6e   : > { %362 = vrot.lane.b32.xlu1 %v2048_v45, %s2410_s12  ;;  %342 = vrot.lane.b32.xlu0 %v2048_v45, %s2411_s18 }
  0x72   : > { %382 = vrot.lane.b32.xlu1 %v2048_v45, %s2412_s21  ;;  %372 = vrot.lane.b32.xlu0 %v2048_v45, %s2413_s22 }
  0x76   : > { %402 = vrot.lane.b32.xlu1 %v2048_v45, %s2414_s26  ;;  %392 = vrot.lane.b32.xlu0 %v2048_v45, %s2415_s27 }
  0x7a   : > { %422 = vrot.lane.b32.xlu1 %v2055_v46, %s2411_s18  ;;  %412 = vrot.lane.b32.xlu0 %v2055_v46, %s2409_s24 }
  0x7e   : > { %442 = vrot.lane.b32.xlu1 %v2055_v46, %s2410_s12  ;;  %432 = vrot.lane.b32.xlu0 %v2055_v46, %s2408_s19 }
  0x82   : > { %462 = vrot.lane.b32.xlu1 %v2055_v46, %s2412_s21  ;;  %452 = vrot.lane.b32.xlu0 %v2055_v46, %s2413_s22 }
  0x86   : > { %482 = vrot.lane.b32.xlu1 %v2055_v46, %s2414_s26  ;;  %472 = vrot.lane.b32.xlu0 %v2055_v46, %s2415_s27 }
  0x8a   : > { %492 = vrot.lane.b32.xlu0 %v2062_v47, %s2409_s24  ;;  %503 = vrot.lane.b32.xlu1 %v2062_v47, %s2411_s18 }
  0x8e   : > { %513 = vrot.lane.b32.xlu0 %v2062_v47, %s2408_s19  ;;  %523 = vrot.lane.b32.xlu1 %v2062_v47, %s2410_s12 }
  0xdc   : > { %v353_v48 = vpop.permute.xlu1 %352  ;;  %v332_v49 = vpop.permute.xlu0 %331 }
  0xdd   : > { %355 = vst.msk [vmem:[#allocation3 + $0x2] sm:$0x1] %vm334_vm5, %v353_v48  ;;  %335 = vst.msk [vmem:[#allocation3] sm:$0x1] %vm334_vm5, %v332_v49 }
  0xe0   : > { %v363_v50 = vpop.permute.xlu1 %362  ;;  %v343_v51 = vpop.permute.xlu0 %342 }
  0xe1   : > { %365 = vst.msk [vmem:[#allocation3 + $0x3] sm:$0x1] %vm334_vm5, %v363_v50  ;;  %345 = vst.msk [vmem:[#allocation3 + $0x1] sm:$0x1] %vm334_vm5, %v343_v51 }
  0xe4   : > { %v383_v52 = vpop.permute.xlu1 %382  ;;  %v373_v53 = vpop.permute.xlu0 %372 }
  0xe5   : > { %385 = vst.msk [vmem:[#allocation3 + $0x5] sm:$0x1] %vm334_vm5, %v383_v52  ;;  %375 = vst.msk [vmem:[#allocation3 + $0x4] sm:$0x1] %vm334_vm5, %v373_v53 }
  0xe8   : > { %v403_v54 = vpop.permute.xlu1 %402  ;;  %v393_v55 = vpop.permute.xlu0 %392 }
  0xe9   : > { %405 = vst.msk [vmem:[#allocation3 + $0x7] sm:$0x1] %vm334_vm5, %v403_v54  ;;  %395 = vst.msk [vmem:[#allocation3 + $0x6] sm:$0x1] %vm334_vm5, %v393_v55 }
  0xec   : > { %v423_v56 = vpop.permute.xlu1 %422  ;;  %v413_v57 = vpop.permute.xlu0 %412 }
  0xed   : > { %425 = vst.msk [vmem:[#allocation3 + $0x9] sm:$0x1] %vm334_vm5, %v423_v56  ;;  %415 = vst.msk [vmem:[#allocation3 + $0x8] sm:$0x1] %vm334_vm5, %v413_v57 }
  0xf0   : > { %v647_v58 = vld [vmem:[#allocation3] sm:$0xff]  ;;  %v443_v59 = vpop.permute.xlu1 %442  ;;  %v433_v60 = vpop.permute.xlu0 %432 }
  0xf1   : > { %650 = vst.msk [vmem:[#allocation4 + $0x3] sm:$0xff] %vm649_vm6, %v647_v58  ;;  %656 = vrot.lane.b32.xlu0 %v647_v58, %s2416_s28 }
  0xf2   : > { %445 = vst.msk [vmem:[#allocation3 + $0xb] sm:$0x1] %vm334_vm5, %v443_v59  ;;  %435 = vst.msk [vmem:[#allocation3 + $0xa] sm:$0x1] %vm334_vm5, %v433_v60 }
  0xf4   : > { %v463_v61 = vpop.permute.xlu1 %462  ;;  %v453_v62 = vpop.permute.xlu0 %452 }
  0xf5   : > { %465 = vst.msk [vmem:[#allocation3 + $0xd] sm:$0x1] %vm334_vm5, %v463_v61  ;;  %455 = vst.msk [vmem:[#allocation3 + $0xc] sm:$0x1] %vm334_vm5, %v453_v62  ;;  %533 = vrot.lane.b32.xlu0 %v2062_v47, %s2413_s22 }
  0xf8   : > { %v483_v63 = vpop.permute.xlu1 %482  ;;  %v473_v0 = vpop.permute.xlu0 %472  ;;  %v814_v9 = vld [vmem:[#allocation4] sm:$0xff] }
  0xf9   : > { %485 = vst.msk [vmem:[#allocation3 + $0xf] sm:$0x1] %vm334_vm5, %v483_v63  ;;  %475 = vst.msk [vmem:[#allocation3 + $0xe] sm:$0x1] %vm334_vm5, %v473_v0  ;;  %553 = vrot.lane.b32.xlu0 %v2062_v47, %s2415_s27  ;;  %v822_v10 = vld [vmem:[#allocation4 + $0x1] sm:$0xff]  ;;  %v817_v11 = vmul.f32 %v816_v7, %v814_v9 }
  0xfa   : > { %v825_v12 = vmul.f32 %v824_v8, %v822_v10  ;;  %v830_v15 = vld [vmem:[#allocation4 + $0x2] sm:$0xff]  ;;  %v896_v10 = vstv %s2733_s9  ;;  %s2774_s9 = sld [smem:[#allocation12 + $0x2c]] }
  0xfb   : > { %v838_v19 = vld [vmem:[#allocation4 + $0x3] sm:$0xff] }
  0xfc   : > { %v493_v1 = vpop.permute.xlu0 %492  ;;  %v504_v2 = vpop.permute.xlu1 %503  ;;  %v827_v16 = vadd.f32 %v825_v12, %v817_v11 }
  0xfd   : > { %669 = vrot.lane.b32.xlu0 %v647_v58, %s2417_s29  ;;  %496 = vst.msk [vmem:[#allocation3 + $0x10] sm:$0x1] %vm334_vm5, %v493_v1  ;;  %506 = vst.msk [vmem:[#allocation3 + $0x11] sm:$0x1] %vm334_vm5, %v504_v2 }
 0x100   : > { %v648_v4 = vld [vmem:[#allocation3 + $0x8] sm:$0xff]  ;;  %v514_v5 = vpop.permute.xlu0 %513  ;;  %v524_v6 = vpop.permute.xlu1 %523 }
 0x101   : > { %651 = vst.msk [vmem:[#allocation4 + $0xb] sm:$0xff] %vm649_vm6, %v648_v4  ;;  %658 = vrot.lane.b32.xlu1 %v648_v4, %s2416_s28  ;;  %573 = vrot.lane.b32.xlu0 %v2070_v3, %s2409_s24  ;;  %s2709_s24 = sld [smem:[#allocation12 + $0x15]] }
 0x102   : > { %516 = vst.msk [vmem:[#allocation3 + $0x12] sm:$0x1] %vm334_vm5, %v514_v5  ;;  %526 = vst.msk [vmem:[#allocation3 + $0x13] sm:$0x1] %vm334_vm5, %v524_v6 }
 0x105   : > { %543 = vrot.lane.b32.xlu1 %v2062_v47, %s2412_s21  ;;  %593 = vrot.lane.b32.xlu0 %v2070_v3, %s2408_s19  ;;  %s2707_s19 = sld [smem:[#allocation12 + $0xe]] }
 0x107   : > { %v840_v18 = vstv %s2709_s24  ;;  %s2743_s24 = sld [smem:[#allocation12 + $0x2b]] }
 0x108   : > { %v846_v21 = vld [vmem:[#allocation4 + $0x4] sm:$0xff]  ;;  %v841_v26 = vmul.f32 %v840_v18, %v838_v19  ;;  %v847_v52 = vld [vmem:[#allocation4 + $0xc] sm:$0xff] }
 0x109   : > { %563 = vrot.lane.b32.xlu1 %v2062_v47, %s2414_s26  ;;  %613 = vrot.lane.b32.xlu0 %v2070_v3, %s2413_s22  ;;  %v815_v24 = vld [vmem:[#allocation4 + $0x8] sm:$0xff]  ;;  %s2720_s22 = sld [smem:[#allocation12 + $0x1]] }
 0x10a   : > { %v823_v25 = vld [vmem:[#allocation4 + $0x9] sm:$0xff]  ;;  %v818_v29 = vmul.f32 %v816_v7, %v815_v24 }
 0x10b   : > { %v832_v14 = vstv %s2707_s19  ;;  %v826_v30 = vmul.f32 %v824_v8, %v823_v25  ;;  %v854_v34 = vld [vmem:[#allocation4 + $0x5] sm:$0xff]  ;;  %v855_v60 = vld [vmem:[#allocation4 + $0xd] sm:$0xff]  ;;  %s2739_s19 = sld [smem:[#allocation12 + $0x24]] }
 0x10c   : > { %v833_v17 = vmul.f32 %v832_v14, %v830_v15  ;;  %v831_v35 = vld [vmem:[#allocation4 + $0xa] sm:$0xff]  ;;  %v904_v15 = vstv %s2736_s13  ;;  %s2781_s13 = sld [smem:[#allocation12 + $0x3]] }
 0x10d   : > { %671 = vrot.lane.b32.xlu1 %v648_v4, %s2417_s29  ;;  %682 = vrot.lane.b32.xlu0 %v647_v58, %s2418_s30  ;;  %v828_v38 = vadd.f32 %v826_v30, %v818_v29  ;;  %v834_v41 = vmul.f32 %v832_v14, %v831_v35  ;;  %v862_v42 = vld [vmem:[#allocation4 + $0x6] sm:$0xff]  ;;  %v863_v5 = vld [vmem:[#allocation4 + $0xe] sm:$0xff]  ;;  %v920_v30 = vstv %s2743_s24  ;;  %s2791_s24 = sld [smem:[#allocation12 + $0x11]] }
 0x10e   : > { %v835_v22 = vadd.f32 %v833_v17, %v827_v16  ;;  %v839_v44 = vld [vmem:[#allocation4 + $0xb] sm:$0xff] }
 0x10f   : > { %v872_v43 = vstv %s2720_s22  ;;  %v836_v48 = vadd.f32 %v834_v41, %v828_v38  ;;  %v842_v51 = vmul.f32 %v840_v18, %v839_v44  ;;  %s2758_s22 = sld [smem:[#allocation12 + $0x17]] }
 0x110   : > { %v843_v31 = vadd.f32 %v841_v26, %v835_v22 }
 0x111   : > { %583 = vrot.lane.b32.xlu1 %v2070_v3, %s2411_s18  ;;  %633 = vrot.lane.b32.xlu0 %v2070_v3, %s2415_s27  ;;  %s2714_s18 = sld [smem:[#allocation12 + $0x23]]  ;;  %s2729_s27 = sld [smem:[#allocation12 + $0xf]]  ;;  %v844_v55 = vadd.f32 %v842_v51, %v836_v48  ;;  %v912_v22 = vstv %s2739_s19 }
 0x112   : > { %s2784_s19 = sld [smem:[#allocation12 + $0xa]] }
 0x115   : > { %603 = vrot.lane.b32.xlu1 %v2070_v3, %s2410_s12  ;;  %695 = vrot.lane.b32.xlu0 %v647_v58, %s2419_s4  ;;  %s2711_s12 = sld [smem:[#allocation12 + $0x1c]] }
 0x117   : > { %v856_v33 = vstv %s2714_s18  ;;  %v888_v1 = vstv %s2729_s27  ;;  %s2750_s18 = sld [smem:[#allocation12 + $0x9]]  ;;  %s2767_s27 = sld [smem:[#allocation12 + $0x25]] }
 0x118   : > { %v857_v39 = vmul.f32 %v856_v33, %v854_v34 }
 0x119   : > { %623 = vrot.lane.b32.xlu1 %v2070_v3, %s2412_s21  ;;  %708 = vrot.lane.b32.xlu0 %v647_v58, %s2420_s7  ;;  %s2718_s21 = sld [smem:[#allocation12 + $0x2a]] }
 0x11b   : > { %v848_v20 = vstv %s2711_s12  ;;  %s2746_s12 = sld [smem:[#allocation12 + $0x2]] }
 0x11c   : > { %v849_v27 = vmul.f32 %v848_v20, %v846_v21  ;;  %v850_v59 = vmul.f32 %v848_v20, %v847_v52 }
 0x11d   : > { %684 = vrot.lane.b32.xlu1 %v648_v4, %s2418_s30  ;;  %721 = vrot.lane.b32.xlu0 %v647_v58, %s2421_s8 }
 0x11e   : > { %v851_v36 = vadd.f32 %v849_v27, %v843_v31  ;;  %v852_v0 = vadd.f32 %v850_v59, %v844_v55 }
 0x11f   : > { %v864_v40 = vstv %s2718_s21  ;;  %s2753_s21 = sld [smem:[#allocation12 + $0x10]] }
 0x120   : > { %v859_v45 = vadd.f32 %v857_v39, %v851_v36  ;;  %v865_v49 = vmul.f32 %v864_v40, %v862_v42  ;;  %v866_v14 = vmul.f32 %v864_v40, %v863_v5 }
 0x121   : > { %643 = vrot.lane.b32.xlu1 %v2070_v3, %s2414_s26  ;;  %s2724_s26 = sld [smem:[#allocation12 + $0x8]]  ;;  %v928_v40 = vstv %s2746_s12 }
 0x122   : > { %v867_v53 = vadd.f32 %v865_v49, %v859_v45  ;;  %s2794_s12 = sld [smem:[#allocation12 + $0x18]] }
 0x125   : > { %697 = vrot.lane.b32.xlu1 %v648_v4, %s2419_s4 }
 0x127   : > { %v880_v56 = vstv %s2724_s26  ;;  %s2762_s26 = sld [smem:[#allocation12 + $0x1e]] }
 0x129   : > { %710 = vrot.lane.b32.xlu1 %v648_v4, %s2420_s7 }
 0x12d   : > { %723 = vrot.lane.b32.xlu1 %v648_v4, %s2421_s8  ;;  %v858_v4 = vmul.f32 %v856_v33, %v855_v60 }
 0x12f   : > { %v860_v9 = vadd.f32 %v858_v4, %v852_v0  ;;  %v952_v0 = vstv %s2758_s22  ;;  %s2811_s22 = sld [smem:[#allocation12 + $0x2d]] }
 0x131   : > { %v868_v21 = vadd.f32 %v866_v14, %v860_v9 }
 0x163   : > { %v657_v28 = vpop.permute.xlu0 %656 }
 0x164   : > { %663 = vst.msk [vmem:[#allocation4 + $0x1b] sm:$0xff] %vm649_vm6, %v657_v28 }
 0x167   : > { %v534_v37 = vpop.permute.xlu0 %533 }
 0x168   : > { %536 = vst.msk [vmem:[#allocation3 + $0x14] sm:$0x1] %vm334_vm5, %v534_v37 }
 0x16b   : > { %v870_v46 = vld [vmem:[#allocation4 + $0x18] sm:$0xff]  ;;  %v554_v47 = vpop.permute.xlu0 %553 }
 0x16c   : > { %556 = vst.msk [vmem:[#allocation3 + $0x16] sm:$0x1] %vm334_vm5, %v554_v47  ;;  %v873_v50 = vmul.f32 %v872_v43, %v870_v46  ;;  %v878_v57 = vld [vmem:[#allocation4 + $0x19] sm:$0xff]  ;;  %v936_v47 = vstv %s2750_s18  ;;  %s2801_s18 = sld [smem:[#allocation12 + $0x1f]] }
 0x16d   : > { %v881_v61 = vmul.f32 %v880_v56, %v878_v57  ;;  %v886_v2 = vld [vmem:[#allocation4 + $0x1a] sm:$0xff]  ;;  %v944_v57 = vstv %s2753_s21  ;;  %s2804_s21 = sld [smem:[#allocation12 + $0x26]] }
 0x16e   : > { %v875_v58 = vadd.f32 %v873_v50, %v867_v53  ;;  %v889_v6 = vmul.f32 %v888_v1, %v886_v2  ;;  %v894_v11 = vld [vmem:[#allocation4 + $0x1b] sm:$0xff] }
 0x16f   : > { %v670_v54 = vpop.permute.xlu0 %669  ;;  %v897_v16 = vmul.f32 %v896_v10, %v894_v11  ;;  %v960_v11 = vstv %s2762_s26  ;;  %s2814_s26 = sld [smem:[#allocation12 + $0x4]] }
 0x170   : > { %676 = vst.msk [vmem:[#allocation4 + $0x33] sm:$0xff] %vm649_vm6, %v670_v54  ;;  %v883_v3 = vadd.f32 %v881_v61, %v875_v58 }
 0x172   : > { %v891_v12 = vadd.f32 %v889_v6, %v883_v3 }
 0x173   : > { %v659_v62 = vpop.permute.xlu1 %658  ;;  %v574_v63 = vpop.permute.xlu0 %573 }
 0x174   : > { %664 = vst.msk [vmem:[#allocation4 + $0x23] sm:$0xff] %vm649_vm6, %v659_v62  ;;  %v899_v26 = vadd.f32 %v897_v16, %v891_v12 }
 0x175   : > { %576 = vst.msk [vmem:[#allocation3 + $0x18] sm:$0x1] %vm334_vm5, %v574_v63 }
 0x177   : > { %v544_v7 = vpop.permute.xlu1 %543  ;;  %v594_v8 = vpop.permute.xlu0 %593  ;;  %v926_v41 = vld [vmem:[#allocation4 + $0x30] sm:$0xff] }
 0x178   : > { %546 = vst.msk [vmem:[#allocation3 + $0x15] sm:$0x1] %vm334_vm5, %v544_v7  ;;  %596 = vst.msk [vmem:[#allocation3 + $0x1a] sm:$0x1] %vm334_vm5, %v594_v8  ;;  %v934_v48 = vld [vmem:[#allocation4 + $0x31] sm:$0xff]  ;;  %v929_v51 = vmul.f32 %v928_v40, %v926_v41 }
 0x179   : > { %v942_v58 = vld [vmem:[#allocation4 + $0x32] sm:$0xff]  ;;  %v937_v61 = vmul.f32 %v936_v47, %v934_v48 }
 0x17a   : > { %v945_v4 = vmul.f32 %v944_v57, %v942_v58 }
 0x17b   : > { %v871_v17 = vld [vmem:[#allocation4 + $0x20] sm:$0xff]  ;;  %v564_v19 = vpop.permute.xlu1 %563  ;;  %v614_v20 = vpop.permute.xlu0 %613 }
 0x17c   : > { %v879_v18 = vld [vmem:[#allocation4 + $0x21] sm:$0xff]  ;;  %v874_v24 = vmul.f32 %v872_v43, %v871_v17  ;;  %566 = vst.msk [vmem:[#allocation3 + $0x17] sm:$0x1] %vm334_vm5, %v564_v19  ;;  %616 = vst.msk [vmem:[#allocation3 + $0x1c] sm:$0x1] %vm334_vm5, %v614_v20 }
 0x17d   : > { %v902_v25 = vld [vmem:[#allocation4 + $0x1c] sm:$0xff]  ;;  %v882_v33 = vmul.f32 %v880_v56, %v879_v18  ;;  %v903_v44 = vld [vmem:[#allocation4 + $0x24] sm:$0xff]  ;;  %v968_v18 = vstv %s2767_s27  ;;  %s2819_s27 = sld [smem:[#allocation12 + $0xb]] }
 0x17e   : > { %v887_v27 = vld [vmem:[#allocation4 + $0x22] sm:$0xff]  ;;  %v905_v28 = vmul.f32 %v904_v15, %v902_v25  ;;  %v876_v31 = vadd.f32 %v874_v24, %v868_v21  ;;  %v906_v60 = vmul.f32 %v904_v15, %v903_v44 }
 0x17f   : > { %v910_v29 = vld [vmem:[#allocation4 + $0x1d] sm:$0xff]  ;;  %v672_v38 = vpop.permute.xlu1 %671  ;;  %v683_v39 = vpop.permute.xlu0 %682  ;;  %v890_v43 = vmul.f32 %v888_v1, %v887_v27  ;;  %v911_v52 = vld [vmem:[#allocation4 + $0x25] sm:$0xff]  ;;  %v950_v1 = vld [vmem:[#allocation4 + $0x33] sm:$0xff]  ;;  %v976_v27 = vstv %s2774_s9  ;;  %s2826_s9 = sld [smem:[#allocation12 + $0x12]] }
 0x180   : > { %v918_v34 = vld [vmem:[#allocation4 + $0x1e] sm:$0xff]  ;;  %v907_v36 = vadd.f32 %v905_v28, %v899_v26  ;;  %v913_v37 = vmul.f32 %v912_v22, %v910_v29  ;;  %v884_v42 = vadd.f32 %v882_v33, %v876_v31  ;;  %677 = vst.msk [vmem:[#allocation4 + $0x3b] sm:$0xff] %vm649_vm6, %v672_v38  ;;  %689 = vst.msk [vmem:[#allocation4 + $0x4b] sm:$0xff] %vm649_vm6, %v683_v39  ;;  %v919_v62 = vld [vmem:[#allocation4 + $0x26] sm:$0xff] }
 0x181   : > { %v895_v35 = vld [vmem:[#allocation4 + $0x23] sm:$0xff]  ;;  %v921_v46 = vmul.f32 %v920_v30, %v918_v34  ;;  %v914_v3 = vmul.f32 %v912_v22, %v911_v52  ;;  %v953_v14 = vmul.f32 %v952_v0, %v950_v1 }
 0x182   : > { %v915_v45 = vadd.f32 %v913_v37, %v907_v36  ;;  %v892_v49 = vadd.f32 %v890_v43, %v884_v42  ;;  %v898_v50 = vmul.f32 %v896_v10, %v895_v35  ;;  %v922_v10 = vmul.f32 %v920_v30, %v919_v62 }
 0x183   : > { %v2769_v54 = vld [vmem:[#allocation3 + $0x10] sm:$0xff]  ;;  %v584_v55 = vpop.permute.xlu1 %583  ;;  %v634_v56 = vpop.permute.xlu0 %633  ;;  %v984_v37 = vstv %s2781_s13  ;;  %v1008_v62 = vstv %s2794_s12  ;;  %s2837_s13 = sld [smem:[#allocation12 + $0x19]]  ;;  %s2876_s12 = sld [smem:[#allocation12 + $0x28]] }
 0x184   : > { %v923_v53 = vadd.f32 %v921_v46, %v915_v45  ;;  %v900_v59 = vadd.f32 %v898_v50, %v892_v49  ;;  %733 = vst.msk [vmem:[#allocation4 + $0xab] sm:$0xff] %vm649_vm6, %v2769_v54  ;;  %739 = vrot.lane.b32.xlu0 %v2769_v54, %s2416_s28  ;;  %v992_v46 = vstv %s2784_s19  ;;  %s2854_s19 = sld [smem:[#allocation12 + $0x2e]] }
 0x185   : > { %586 = vst.msk [vmem:[#allocation3 + $0x19] sm:$0x1] %vm334_vm5, %v584_v55  ;;  %636 = vst.msk [vmem:[#allocation3 + $0x1e] sm:$0x1] %vm334_vm5, %v634_v56 }
 0x186   : > { %v931_v63 = vadd.f32 %v929_v51, %v923_v53  ;;  %v908_v2 = vadd.f32 %v906_v60, %v900_v59  ;;  %v1000_v53 = vstv %s2791_s24  ;;  %s2873_s24 = sld [smem:[#allocation12 + $0x21]] }
 0x187   : > { %v927_v6 = vld [vmem:[#allocation4 + $0x38] sm:$0xff]  ;;  %v604_v7 = vpop.permute.xlu1 %603  ;;  %v696_v8 = vpop.permute.xlu0 %695  ;;  %v982_v38 = vld [vmem:[#allocation4 + $0x48] sm:$0xff] }
 0x188   : > { %v939_v5 = vadd.f32 %v937_v61, %v931_v63  ;;  %v916_v9 = vadd.f32 %v914_v3, %v908_v2  ;;  %v958_v12 = vld [vmem:[#allocation4 + $0x34] sm:$0xff]  ;;  %606 = vst.msk [vmem:[#allocation3 + $0x1b] sm:$0x1] %vm334_vm5, %v604_v7  ;;  %752 = vrot.lane.b32.xlu0 %v2769_v54, %s2417_s29  ;;  %v930_v19 = vmul.f32 %v928_v40, %v927_v6  ;;  %v959_v39 = vld [vmem:[#allocation4 + $0x3c] sm:$0xff]  ;;  %v998_v55 = vld [vmem:[#allocation4 + $0x4a] sm:$0xff] }
 0x189   : > { %702 = vst.msk [vmem:[#allocation4 + $0x63] sm:$0xff] %vm649_vm6, %v696_v8  ;;  %v935_v16 = vld [vmem:[#allocation4 + $0x39] sm:$0xff]  ;;  %v961_v24 = vmul.f32 %v960_v11, %v958_v12  ;;  %v985_v50 = vmul.f32 %v984_v37, %v982_v38  ;;  %v962_v52 = vmul.f32 %v960_v11, %v959_v39  ;;  %v1006_v63 = vld [vmem:[#allocation4 + $0x4b] sm:$0xff]  ;;  %v1001_v1 = vmul.f32 %v1000_v53, %v998_v55 }
 0x18a   : > { %v947_v15 = vadd.f32 %v945_v4, %v939_v5  ;;  %v924_v17 = vadd.f32 %v922_v10, %v916_v9  ;;  %v966_v20 = vld [vmem:[#allocation4 + $0x35] sm:$0xff]  ;;  %v938_v29 = vmul.f32 %v936_v47, %v935_v16  ;;  %v990_v47 = vld [vmem:[#allocation4 + $0x49] sm:$0xff]  ;;  %v967_v48 = vld [vmem:[#allocation4 + $0x3d] sm:$0xff]  ;;  %v1016_v4 = vstv %s2801_s18  ;;  %s2879_s18 = sld [smem:[#allocation12 + $0x2f]] }
 0x18b   : > { %v943_v22 = vld [vmem:[#allocation4 + $0x3a] sm:$0xff]  ;;  %v624_v25 = vpop.permute.xlu1 %623  ;;  %v709_v26 = vpop.permute.xlu0 %708  ;;  %v969_v34 = vmul.f32 %v968_v18, %v966_v20  ;;  %v993_v58 = vmul.f32 %v992_v46, %v990_v47  ;;  %v970_v61 = vmul.f32 %v968_v18, %v967_v48  ;;  %v1009_v6 = vmul.f32 %v1008_v62, %v1006_v63 }
 0x18c   : > { %v955_v21 = vadd.f32 %v953_v14, %v947_v15  ;;  %v932_v28 = vadd.f32 %v930_v19, %v924_v17  ;;  %v974_v30 = vld [vmem:[#allocation4 + $0x36] sm:$0xff]  ;;  %626 = vst.msk [vmem:[#allocation3 + $0x1d] sm:$0x1] %vm334_vm5, %v624_v25  ;;  %765 = vrot.lane.b32.xlu0 %v2769_v54, %s2418_s30  ;;  %v946_v36 = vmul.f32 %v944_v57, %v943_v22  ;;  %v975_v56 = vld [vmem:[#allocation4 + $0x3e] sm:$0xff]  ;;  %v1024_v11 = vstv %s2804_s21  ;;  %s2881_s21 = sld [smem:[#allocation12 + $0x6]] }
 0x18d   : > { %715 = vst.msk [vmem:[#allocation4 + $0x7b] sm:$0xff] %vm649_vm6, %v709_v26  ;;  %v951_v31 = vld [vmem:[#allocation4 + $0x3b] sm:$0xff]  ;;  %v977_v41 = vmul.f32 %v976_v27, %v974_v30  ;;  %v978_v3 = vmul.f32 %v976_v27, %v975_v56  ;;  %v1032_v19 = vstv %s2811_s22  ;;  %s2884_s22 = sld [smem:[#allocation12 + $0xd]] }
 0x18e   : > { %v963_v33 = vadd.f32 %v961_v24, %v955_v21  ;;  %v940_v35 = vadd.f32 %v938_v29, %v932_v28  ;;  %v954_v45 = vmul.f32 %v952_v0, %v951_v31  ;;  %v1040_v29 = vstv %s2814_s26  ;;  %s2888_s26 = sld [smem:[#allocation12 + $0x14]] }
 0x18f   : > { %v685_v42 = vpop.permute.xlu1 %684  ;;  %v722_v43 = vpop.permute.xlu0 %721 }
 0x190   : > { %v971_v40 = vadd.f32 %v969_v34, %v963_v33  ;;  %v948_v44 = vadd.f32 %v946_v36, %v940_v35  ;;  %690 = vst.msk [vmem:[#allocation4 + $0x53] sm:$0xff] %vm649_vm6, %v685_v42  ;;  %728 = vst.msk [vmem:[#allocation4 + $0x93] sm:$0xff] %vm649_vm6, %v722_v43  ;;  %778 = vrot.lane.b32.xlu0 %v2769_v54, %s2419_s4  ;;  %v1038_v30 = vld [vmem:[#allocation4 + $0x60] sm:$0xff]  ;;  %v1048_v36 = vstv %s2819_s27  ;;  %s2891_s27 = sld [smem:[#allocation12 + $0x1b]] }
 0x191   : > { %v1054_v48 = vld [vmem:[#allocation4 + $0x62] sm:$0xff] }
 0x192   : > { %v979_v49 = vadd.f32 %v977_v41, %v971_v40  ;;  %v956_v51 = vadd.f32 %v954_v45, %v948_v44  ;;  %v1041_v40 = vmul.f32 %v1040_v29, %v1038_v30 }
 0x193   : > { %v644_v59 = vpop.permute.xlu1 %643 }
 0x194   : > { %v987_v57 = vadd.f32 %v985_v50, %v979_v49  ;;  %v964_v60 = vadd.f32 %v962_v52, %v956_v51  ;;  %646 = vst.msk [vmem:[#allocation3 + $0x1f] sm:$0x1] %vm334_vm5, %v644_v59  ;;  %791 = vrot.lane.b32.xlu0 %v2769_v54, %s2420_s7  ;;  %vm3163_vm5 = vcmp.lt.s32.totalorder %v286_v13, 96 }
 0x196   : > { %v995_v0 = vadd.f32 %v993_v58, %v987_v57  ;;  %v972_v2 = vadd.f32 %v970_v61, %v964_v60  ;;  %v1064_v57 = vstv %s2837_s13  ;;  %v1062_v58 = vld [vmem:[#allocation4 + $0x63] sm:$0xff]  ;;  %s2897_s13 = sld [smem:[#allocation12 + $0x29]] }
 0x197   : > { %v983_v7 = vld [vmem:[#allocation4 + $0x50] sm:$0xff]  ;;  %v698_v9 = vpop.permute.xlu1 %697  ;;  %v1065_v63 = vmul.f32 %v1064_v57, %v1062_v58 }
 0x198   : > { %v1003_v5 = vadd.f32 %v1001_v1, %v995_v0  ;;  %v991_v8 = vld [vmem:[#allocation4 + $0x51] sm:$0xff]  ;;  %v980_v10 = vadd.f32 %v978_v3, %v972_v2  ;;  %v986_v12 = vmul.f32 %v984_v37, %v983_v7  ;;  %703 = vst.msk [vmem:[#allocation4 + $0x6b] sm:$0xff] %vm649_vm6, %v698_v9  ;;  %804 = vrot.lane.b32.xlu0 %v2769_v54, %s2421_s8  ;;  %v1046_v37 = vld [vmem:[#allocation4 + $0x61] sm:$0xff] }
 0x199   : > { %v1014_v14 = vld [vmem:[#allocation4 + $0x4c] sm:$0xff]  ;;  %v994_v21 = vmul.f32 %v992_v46, %v991_v8  ;;  %v1015_v33 = vld [vmem:[#allocation4 + $0x54] sm:$0xff]  ;;  %v1056_v46 = vstv %s2826_s9  ;;  %v1049_v47 = vmul.f32 %v1048_v36, %v1046_v37  ;;  %s2894_s9 = sld [smem:[#allocation12 + $0x22]] }
 0x19a   : > { %v1011_v15 = vadd.f32 %v1009_v6, %v1003_v5  ;;  %v999_v16 = vld [vmem:[#allocation4 + $0x52] sm:$0xff]  ;;  %v1017_v17 = vmul.f32 %v1016_v4, %v1014_v14  ;;  %v988_v20 = vadd.f32 %v986_v12, %v980_v10  ;;  %v1018_v45 = vmul.f32 %v1016_v4, %v1015_v33 }
 0x19b   : > { %v1022_v18 = vld [vmem:[#allocation4 + $0x4d] sm:$0xff]  ;;  %v2829_v27 = vld [vmem:[#allocation3 + $0x18] sm:$0xff]  ;;  %v711_v28 = vpop.permute.xlu1 %710  ;;  %v1002_v31 = vmul.f32 %v1000_v53, %v999_v16  ;;  %v1057_v55 = vmul.f32 %v1056_v46, %v1054_v48 }
 0x19c   : > { %v1030_v22 = vld [vmem:[#allocation4 + $0x4e] sm:$0xff]  ;;  %v1019_v25 = vadd.f32 %v1017_v17, %v1011_v15  ;;  %v1025_v26 = vmul.f32 %v1024_v11, %v1022_v18  ;;  %v996_v54 = vadd.f32 %v994_v21, %v988_v20  ;;  %734 = vst.msk [vmem:[#allocation4 + $0xb3] sm:$0xff] %vm649_vm6, %v2829_v27  ;;  %716 = vst.msk [vmem:[#allocation4 + $0x83] sm:$0xff] %vm649_vm6, %v711_v28  ;;  %741 = vrot.lane.b32.xlu1 %v2829_v27, %s2416_s28  ;;  %s2844_s28 = sld [smem:[#allocation12 + $0x20]]  ;;  %v1031_v52 = vld [vmem:[#allocation4 + $0x56] sm:$0xff] }
 0x19d   : > { %v1007_v24 = vld [vmem:[#allocation4 + $0x53] sm:$0xff]  ;;  %v1033_v35 = vmul.f32 %v1032_v19, %v1030_v22  ;;  %v1034_v59 = vmul.f32 %v1032_v19, %v1031_v52  ;;  %v1088_v15 = vstv %s2854_s19  ;;  %s2905_s19 = sld [smem:[#allocation12 + $0x38]] }
 0x19e   : > { %v1027_v34 = vadd.f32 %v1025_v26, %v1019_v25  ;;  %v1004_v38 = vadd.f32 %v1002_v31, %v996_v54  ;;  %v1010_v39 = vmul.f32 %v1008_v62, %v1007_v24  ;;  %v1023_v41 = vld [vmem:[#allocation4 + $0x55] sm:$0xff] }
 0x19f   : > { %v724_v43 = vpop.permute.xlu1 %723  ;;  %v1026_v51 = vmul.f32 %v1024_v11, %v1023_v41  ;;  %v1039_v61 = vld [vmem:[#allocation4 + $0x68] sm:$0xff]  ;;  %v1094_v24 = vld [vmem:[#allocation4 + $0x78] sm:$0xff] }
 0x1a0   : > { %v1035_v42 = vadd.f32 %v1033_v35, %v1027_v34  ;;  %v1012_v44 = vadd.f32 %v1010_v39, %v1004_v38  ;;  %729 = vst.msk [vmem:[#allocation4 + $0x9b] sm:$0xff] %vm649_vm6, %v724_v43  ;;  %754 = vrot.lane.b32.xlu1 %v2829_v27, %s2417_s29  ;;  %s2849_s29 = sld [smem:[#allocation12 + $0x27]]  ;;  %v1042_v1 = vmul.f32 %v1040_v29, %v1039_v61  ;;  %v1070_v2 = vld [vmem:[#allocation4 + $0x64] sm:$0xff]  ;;  %v1071_v26 = vld [vmem:[#allocation4 + $0x6c] sm:$0xff]  ;;  %v1102_v54 = vld [vmem:[#allocation4 + $0x79] sm:$0xff] }
 0x1a1   : > { %v1047_v3 = vld [vmem:[#allocation4 + $0x69] sm:$0xff]  ;;  %v1110_v38 = vld [vmem:[#allocation4 + $0x7a] sm:$0xff] }
 0x1a2   : > { %v1043_v49 = vadd.f32 %v1041_v40, %v1035_v42  ;;  %v1020_v50 = vadd.f32 %v1018_v45, %v1012_v44  ;;  %v1072_v0 = vstv %s2844_s28  ;;  %v1050_v8 = vmul.f32 %v1048_v36, %v1047_v3  ;;  %v1078_v9 = vld [vmem:[#allocation4 + $0x65] sm:$0xff]  ;;  %v1079_v33 = vld [vmem:[#allocation4 + $0x6d] sm:$0xff]  ;;  %v1118_v45 = vld [vmem:[#allocation4 + $0x7b] sm:$0xff]  ;;  %s2900_s28 = sld [smem:[#allocation12 + $0x30]] }
 0x1a3   : > { %v1073_v6 = vmul.f32 %v1072_v0, %v1070_v2  ;;  %v1055_v10 = vld [vmem:[#allocation4 + $0x6a] sm:$0xff]  ;;  %v1074_v31 = vmul.f32 %v1072_v0, %v1071_v26  ;;  %v1134_v61 = vld [vmem:[#allocation4 + $0x7d] sm:$0xff]  ;;  %v1144_v2 = vstv %s2879_s18  ;;  %v1166_v26 = vld [vmem:[#allocation4 + $0x92] sm:$0xff]  ;;  %s2929_s18 = sld [smem:[#allocation12 + $0x39]] }
 0x1a4   : > { %v1051_v53 = vadd.f32 %v1049_v47, %v1043_v49  ;;  %v1028_v56 = vadd.f32 %v1026_v51, %v1020_v50  ;;  %767 = vrot.lane.b32.xlu1 %v2829_v27, %s2418_s30  ;;  %s2858_s30 = sld [smem:[#allocation12 + $0x5]]  ;;  %v1058_v16 = vmul.f32 %v1056_v46, %v1055_v10  ;;  %v1086_v17 = vld [vmem:[#allocation4 + $0x66] sm:$0xff]  ;;  %v1087_v40 = vld [vmem:[#allocation4 + $0x6e] sm:$0xff]  ;;  %v1128_v51 = vstv %s2873_s24  ;;  %s2923_s24 = sld [smem:[#allocation12 + $0x5b]] }
 0x1a5   : > { %v1063_v18 = vld [vmem:[#allocation4 + $0x6b] sm:$0xff]  ;;  %v1089_v21 = vmul.f32 %v1088_v15, %v1086_v17  ;;  %v1090_v46 = vmul.f32 %v1088_v15, %v1087_v40  ;;  %v1095_v47 = vld [vmem:[#allocation4 + $0x80] sm:$0xff]  ;;  %v1160_v17 = vstv %s2884_s22  ;;  %s2938_s22 = sld [smem:[#allocation12 + $0x47]] }
 0x1a6   : > { %v1059_v60 = vadd.f32 %v1057_v55, %v1051_v53  ;;  %v1036_v62 = vadd.f32 %v1034_v59, %v1028_v56  ;;  %v1080_v7 = vstv %s2849_s29  ;;  %v1066_v25 = vmul.f32 %v1064_v57, %v1063_v18  ;;  %v1126_v53 = vld [vmem:[#allocation4 + $0x7c] sm:$0xff]  ;;  %v1150_v10 = vld [vmem:[#allocation4 + $0x90] sm:$0xff]  ;;  %s2902_s29 = sld [smem:[#allocation12 + $0x31]] }
 0x1a7   : > { %v1081_v14 = vmul.f32 %v1080_v7, %v1078_v9  ;;  %v1082_v39 = vmul.f32 %v1080_v7, %v1079_v33  ;;  %v1103_v55 = vld [vmem:[#allocation4 + $0x81] sm:$0xff]  ;;  %v1129_v58 = vmul.f32 %v1128_v51, %v1126_v53  ;;  %v1136_v59 = vstv %s2876_s12  ;;  %v1158_v18 = vld [vmem:[#allocation4 + $0x91] sm:$0xff]  ;;  %s2925_s12 = sld [smem:[#allocation12 + $0x32]] }
 0x1a8   : > { %780 = vrot.lane.b32.xlu1 %v2829_v27, %s2419_s4  ;;  %v1067_v4 = vadd.f32 %v1065_v63, %v1059_v60  ;;  %v1044_v5 = vadd.f32 %v1042_v1, %v1036_v62  ;;  %s2863_s4 = sld [smem:[#allocation12 + $0xc]]  ;;  %v1111_v62 = vld [vmem:[#allocation4 + $0x82] sm:$0xff]  ;;  %v1137_v1 = vmul.f32 %v1136_v59, %v1134_v61  ;;  %v1152_v9 = vstv %s2881_s21  ;;  %v1174_v33 = vld [vmem:[#allocation4 + $0x93] sm:$0xff]  ;;  %s2934_s21 = sld [smem:[#allocation12 + $0x40]] }
 0x1a9   : > { %v1200_v53 = vstv %s2900_s28  ;;  %s2953_s28 = sld [smem:[#allocation12 + $0x3a]] }
 0x1aa   : > { %v1075_v11 = vadd.f32 %v1073_v6, %v1067_v4  ;;  %v1052_v12 = vadd.f32 %v1050_v8, %v1044_v5  ;;  %v1096_v22 = vstv %s2858_s30  ;;  %v1142_v4 = vld [vmem:[#allocation4 + $0x7e] sm:$0xff]  ;;  %s2909_s30 = sld [smem:[#allocation12 + $0x3f]] }
 0x1ab   : > { %v1098_v52 = vmul.f32 %v1096_v22, %v1095_v47  ;;  %v1119_v5 = vld [vmem:[#allocation4 + $0x83] sm:$0xff]  ;;  %v1145_v8 = vmul.f32 %v1144_v2, %v1142_v4  ;;  %v1216_v4 = vstv %s2905_s19  ;;  %s2960_s19 = sld [smem:[#allocation12 + $0x48]] }
 0x1ac   : > { %793 = vrot.lane.b32.xlu1 %v2829_v27, %s2420_s7  ;;  %v1083_v19 = vadd.f32 %v1081_v14, %v1075_v11  ;;  %v1060_v20 = vadd.f32 %v1058_v16, %v1052_v12  ;;  %s2867_s7 = sld [smem:[#allocation12 + $0x13]]  ;;  %v1127_v12 = vld [vmem:[#allocation4 + $0x84] sm:$0xff]  ;;  %v1153_v16 = vmul.f32 %v1152_v9, %v1150_v10  ;;  %v1208_v61 = vstv %s2902_s29  ;;  %s2956_s29 = sld [smem:[#allocation12 + $0x41]] }
 0x1ae   : > { %v1091_v28 = vadd.f32 %v1089_v21, %v1083_v19  ;;  %v1068_v29 = vadd.f32 %v1066_v25, %v1060_v20  ;;  %v1104_v30 = vstv %s2863_s4  ;;  %v1130_v19 = vmul.f32 %v1128_v51, %v1127_v12  ;;  %v1135_v20 = vld [vmem:[#allocation4 + $0x85] sm:$0xff]  ;;  %s2912_s4 = sld [smem:[#allocation12 + $0x46]] }
 0x1af   : > { %v1105_v36 = vmul.f32 %v1104_v30, %v1102_v54  ;;  %v1106_v60 = vmul.f32 %v1104_v30, %v1103_v55  ;;  %v1168_v25 = vstv %s2888_s26  ;;  %s2941_s26 = sld [smem:[#allocation12 + $0x4e]] }
 0x1b0   : > { %806 = vrot.lane.b32.xlu1 %v2829_v27, %s2421_s8  ;;  %v1097_v27 = vmul.f32 %v1096_v22, %v1094_v24  ;;  %s2870_s8 = sld [smem:[#allocation12 + $0x1a]]  ;;  %v1076_v35 = vadd.f32 %v1074_v31, %v1068_v29  ;;  %v1161_v24 = vmul.f32 %v1160_v17, %v1158_v18  ;;  %v1143_v29 = vld [vmem:[#allocation4 + $0x86] sm:$0xff]  ;;  %v1169_v54 = vmul.f32 %v1168_v25, %v1166_v26 }
 0x1b1   : > { %v1176_v31 = vstv %s2891_s27  ;;  %s2944_s27 = sld [smem:[#allocation12 + $0x55]] }
 0x1b2   : > { %v1099_v34 = vadd.f32 %v1097_v27, %v1091_v28  ;;  %v1112_v37 = vstv %s2867_s7  ;;  %v1084_v42 = vadd.f32 %v1082_v39, %v1076_v35  ;;  %v1138_v28 = vmul.f32 %v1136_v59, %v1135_v20  ;;  %v1151_v35 = vld [vmem:[#allocation4 + $0x98] sm:$0xff]  ;;  %s2915_s7 = sld [smem:[#allocation12 + $0x4d]] }
 0x1b3   : > { %v1113_v43 = vmul.f32 %v1112_v37, %v1110_v38  ;;  %v1114_v3 = vmul.f32 %v1112_v37, %v1111_v62  ;;  %v1177_v38 = vmul.f32 %v1176_v31, %v1174_v33  ;;  %v1184_v39 = vstv %s2894_s9  ;;  %s2947_s9 = sld [smem:[#allocation12 + $0x5c]] }
 0x1b4   : > { %v1107_v41 = vadd.f32 %v1105_v36, %v1099_v34  ;;  %v1092_v49 = vadd.f32 %v1090_v46, %v1084_v42  ;;  %v1146_v34 = vmul.f32 %v1144_v2, %v1143_v29  ;;  %v1154_v40 = vmul.f32 %v1152_v9, %v1151_v35  ;;  %v1159_v42 = vld [vmem:[#allocation4 + $0x99] sm:$0xff] }
 0x1b5   : > { %v1192_v46 = vstv %s2897_s13  ;;  %v1162_v47 = vmul.f32 %v1160_v17, %v1159_v42  ;;  %v1232_v20 = vstv %s2912_s4  ;;  %s2950_s13 = sld [smem:[#allocation12 + $0x33]]  ;;  %s2968_s4 = sld [smem:[#allocation12 + $0x56]] }
 0x1b6   : > { %v1120_v44 = vstv %s2870_s8  ;;  %v1115_v48 = vadd.f32 %v1113_v43, %v1107_v41  ;;  %v1100_v57 = vadd.f32 %v1098_v52, %v1092_v49  ;;  %v1182_v41 = vld [vmem:[#allocation4 + $0x94] sm:$0xff]  ;;  %s2919_s8 = sld [smem:[#allocation12 + $0x54]] }
 0x1b7   : > { %v1121_v50 = vmul.f32 %v1120_v44, %v1118_v45  ;;  %v1122_v11 = vmul.f32 %v1120_v44, %v1119_v5  ;;  %v1185_v45 = vmul.f32 %v1184_v39, %v1182_v41  ;;  %v1167_v49 = vld [vmem:[#allocation4 + $0x9a] sm:$0xff] }
 0x1b8   : > { %v1108_v0 = vadd.f32 %v1106_v60, %v1100_v57  ;;  %v1170_v55 = vmul.f32 %v1168_v25, %v1167_v49  ;;  %v1175_v57 = vld [vmem:[#allocation4 + $0x9b] sm:$0xff] }
 0x1b9   : > { %v1123_v56 = vadd.f32 %v1121_v50, %v1115_v48  ;;  %v1190_v48 = vld [vmem:[#allocation4 + $0x95] sm:$0xff]  ;;  %v1178_v62 = vmul.f32 %v1176_v31, %v1175_v57 }
 0x1ba   : > { %v1116_v7 = vadd.f32 %v1114_v3, %v1108_v0  ;;  %v1193_v52 = vmul.f32 %v1192_v46, %v1190_v48  ;;  %v1183_v0 = vld [vmem:[#allocation4 + $0x9c] sm:$0xff]  ;;  %v1215_v31 = vld [vmem:[#allocation4 + $0xb1] sm:$0xff]  ;;  %v1264_v48 = vstv %s2925_s12  ;;  %s2981_s12 = sld [smem:[#allocation12 + $0x42]] }
 0x1bb   : > { %v1131_v63 = vadd.f32 %v1129_v58, %v1123_v56  ;;  %v1198_v56 = vld [vmem:[#allocation4 + $0x96] sm:$0xff]  ;;  %v1186_v5 = vmul.f32 %v1184_v39, %v1183_v0  ;;  %v1246_v39 = vld [vmem:[#allocation4 + $0xad] sm:$0xff] }
 0x1bc   : > { %v1124_v15 = vadd.f32 %v1122_v11, %v1116_v7  ;;  %v1201_v60 = vmul.f32 %v1200_v53, %v1198_v56  ;;  %v1191_v7 = vld [vmem:[#allocation4 + $0x9d] sm:$0xff]  ;;  %v1224_v11 = vstv %s2909_s30  ;;  %s2964_s30 = sld [smem:[#allocation12 + $0x4f]] }
 0x1bd   : > { %v1139_v6 = vadd.f32 %v1137_v1, %v1131_v63  ;;  %v1206_v63 = vld [vmem:[#allocation4 + $0xa8] sm:$0xff]  ;;  %v1194_v12 = vmul.f32 %v1192_v46, %v1191_v7  ;;  %v1256_v46 = vstv %s2923_s24  ;;  %s2977_s24 = sld [smem:[#allocation12 + $0x3b]] }
 0x1be   : > { %v1132_v22 = vadd.f32 %v1130_v19, %v1124_v15  ;;  %v1209_v3 = vmul.f32 %v1208_v61, %v1206_v63  ;;  %v1199_v15 = vld [vmem:[#allocation4 + $0x9e] sm:$0xff] }
 0x1bf   : > { %v1147_v14 = vadd.f32 %v1145_v8, %v1139_v6  ;;  %v1214_v6 = vld [vmem:[#allocation4 + $0xa9] sm:$0xff] }
 0x1c0   : > { %v1140_v30 = vadd.f32 %v1138_v28, %v1132_v22  ;;  %v1217_v10 = vmul.f32 %v1216_v4, %v1214_v6  ;;  %v1230_v22 = vld [vmem:[#allocation4 + $0xab] sm:$0xff]  ;;  %v1280_v6 = vstv %s2934_s21  ;;  %s2988_s21 = sld [smem:[#allocation12 + $0x50]] }
 0x1c1   : > { %v1155_v21 = vadd.f32 %v1153_v16, %v1147_v14  ;;  %v1222_v14 = vld [vmem:[#allocation4 + $0xaa] sm:$0xff]  ;;  %v1233_v29 = vmul.f32 %v1232_v20, %v1230_v22 }
 0x1c2   : > { %v1148_v37 = vadd.f32 %v1146_v34, %v1140_v30  ;;  %v1225_v19 = vmul.f32 %v1224_v11, %v1222_v14 }
 0x1c3   : > { %v1163_v27 = vadd.f32 %v1161_v24, %v1155_v21  ;;  %v1202_v21 = vmul.f32 %v1200_v53, %v1199_v15  ;;  %v1207_v24 = vld [vmem:[#allocation4 + $0xb0] sm:$0xff]  ;;  %v1288_v15 = vstv %s2938_s22  ;;  %s2991_s22 = sld [smem:[#allocation12 + $0x57]] }
 0x1c4   : > { %v1156_v44 = vadd.f32 %v1154_v40, %v1148_v37  ;;  %v1210_v30 = vmul.f32 %v1208_v61, %v1207_v24  ;;  %v1218_v37 = vmul.f32 %v1216_v4, %v1215_v31  ;;  %v1223_v40 = vld [vmem:[#allocation4 + $0xb2] sm:$0xff] }
 0x1c5   : > { %v1171_v36 = vadd.f32 %v1169_v54, %v1163_v27  ;;  %v1240_v27 = vstv %s2915_s7  ;;  %v1238_v54 = vld [vmem:[#allocation4 + $0xac] sm:$0xff]  ;;  %s2971_s7 = sld [smem:[#allocation12 + $0x5d]] }
 0x1c6   : > { %v1164_v51 = vadd.f32 %v1162_v47, %v1156_v44  ;;  %v1254_v47 = vld [vmem:[#allocation4 + $0xae] sm:$0xff] }
 0x1c7   : > { %v1179_v43 = vadd.f32 %v1177_v38, %v1171_v36  ;;  %v1241_v36 = vmul.f32 %v1240_v27, %v1238_v54  ;;  %v1248_v38 = vstv %s2919_s8  ;;  %s2975_s8 = sld [smem:[#allocation12 + $0x34]] }
 0x1c8   : > { %v1172_v59 = vadd.f32 %v1170_v55, %v1164_v51  ;;  %v1249_v44 = vmul.f32 %v1248_v38, %v1246_v39  ;;  %v1257_v55 = vmul.f32 %v1256_v46, %v1254_v47 }
 0x1c9   : > { %v1187_v50 = vadd.f32 %v1185_v45, %v1179_v43  ;;  %v1226_v45 = vmul.f32 %v1224_v11, %v1223_v40 }
 0x1ca   : > { %v1180_v2 = vadd.f32 %v1178_v62, %v1172_v59  ;;  %v1272_v62 = vstv %s2929_s18  ;;  %s2984_s18 = sld [smem:[#allocation12 + $0x49]] }
 0x1cb   : > { %v1195_v58 = vadd.f32 %v1193_v52, %v1187_v50  ;;  %v1231_v50 = vld [vmem:[#allocation4 + $0xb3] sm:$0xff] }
 0x1cc   : > { %v1188_v9 = vadd.f32 %v1186_v5, %v1180_v2  ;;  %v1234_v57 = vmul.f32 %v1232_v20, %v1231_v50  ;;  %v1247_v2 = vld [vmem:[#allocation4 + $0xb5] sm:$0xff] }
 0x1cd   : > { %v1203_v1 = vadd.f32 %v1201_v60, %v1195_v58  ;;  %v1239_v58 = vld [vmem:[#allocation4 + $0xb4] sm:$0xff] }
 0x1ce   : > { %v1196_v18 = vadd.f32 %v1194_v12, %v1188_v9  ;;  %v1250_v9 = vmul.f32 %v1248_v38, %v1247_v2 }
 0x1cf   : > { %v1211_v8 = vadd.f32 %v1209_v3, %v1203_v1  ;;  %v1242_v1 = vmul.f32 %v1240_v27, %v1239_v58 }
 0x1d0   : > { %v1204_v28 = vadd.f32 %v1202_v21, %v1196_v18 }
 0x1d1   : > { %v1219_v16 = vadd.f32 %v1217_v10, %v1211_v8  ;;  %v1255_v10 = vld [vmem:[#allocation4 + $0xb6] sm:$0xff] }
 0x1d2   : > { %v1212_v35 = vadd.f32 %v1210_v30, %v1204_v28  ;;  %v1258_v18 = vmul.f32 %v1256_v46, %v1255_v10  ;;  %v1352_v10 = vstv %s2964_s30  ;;  %s3015_s30 = sld [smem:[#allocation12 + $0x5f]] }
 0x1d3   : > { %v1227_v25 = vadd.f32 %v1225_v19, %v1219_v16  ;;  %v1296_v19 = vstv %s2941_s26  ;;  %s2994_s26 = sld [smem:[#allocation12 + $0x5e]] }
 0x1d4   : > { %v1220_v43 = vadd.f32 %v1218_v37, %v1212_v35 }
 0x1d5   : > { %v1235_v33 = vadd.f32 %v1233_v29, %v1227_v25 }
 0x1d6   : > { %v1228_v53 = vadd.f32 %v1226_v45, %v1220_v43 }
 0x1d7   : > { %v1243_v41 = vadd.f32 %v1241_v36, %v1235_v33  ;;  %v1312_v33 = vstv %s2947_s9  ;;  %s2999_s9 = sld [smem:[#allocation12 + $0x3c]] }
 0x1d8   : > { %v1236_v61 = vadd.f32 %v1234_v57, %v1228_v53  ;;  %v1336_v57 = vstv %s2956_s29  ;;  %s3009_s29 = sld [smem:[#allocation12 + $0x51]] }
 0x1d9   : > { %v1251_v51 = vadd.f32 %v1249_v44, %v1243_v41  ;;  %v1320_v41 = vstv %s2950_s13  ;;  %s3002_s13 = sld [smem:[#allocation12 + $0x43]] }
 0x1da   : > { %v1244_v5 = vadd.f32 %v1242_v1, %v1236_v61 }
 0x1db   : > { %v1259_v59 = vadd.f32 %v1257_v55, %v1251_v51 }
 0x1dc   : > { %v1252_v14 = vadd.f32 %v1250_v9, %v1244_v5 }
 0x1de   : > { %v1260_v25 = vadd.f32 %v1258_v18, %v1252_v14 }
 0x1f6   : > { %v740_v17 = vpop.permute.xlu0 %739 }
 0x1f7   : > { %746 = vst.msk [vmem:[#allocation4 + $0xc3] sm:$0xff] %vm649_vm6, %v740_v17 }
 0x1fa   : > { %v753_v26 = vpop.permute.xlu0 %752 }
 0x1fb   : > { %759 = vst.msk [vmem:[#allocation4 + $0xdb] sm:$0xff] %vm649_vm6, %v753_v26  ;;  %v1304_v26 = vstv %s2944_s27  ;;  %s2997_s27 = sld [smem:[#allocation12 + $0x35]] }
 0x1fe   : > { %v766_v34 = vpop.permute.xlu0 %765  ;;  %v1262_v49 = vld [vmem:[#allocation4 + $0xc0] sm:$0xff] }
 0x1ff   : > { %772 = vst.msk [vmem:[#allocation4 + $0xf3] sm:$0xff] %vm649_vm6, %v766_v34  ;;  %v1265_v56 = vmul.f32 %v1264_v48, %v1262_v49  ;;  %v1270_v63 = vld [vmem:[#allocation4 + $0xc1] sm:$0xff] }
 0x200   : > { %v1273_v3 = vmul.f32 %v1272_v62, %v1270_v63  ;;  %v1278_v7 = vld [vmem:[#allocation4 + $0xc2] sm:$0xff] }
 0x201   : > { %v1267_v0 = vadd.f32 %v1265_v56, %v1259_v59  ;;  %v1281_v11 = vmul.f32 %v1280_v6, %v1278_v7  ;;  %v1286_v16 = vld [vmem:[#allocation4 + $0xc3] sm:$0xff] }
 0x202   : > { %v779_v42 = vpop.permute.xlu0 %778  ;;  %v1289_v20 = vmul.f32 %v1288_v15, %v1286_v16  ;;  %v1326_v49 = vld [vmem:[#allocation4 + $0xd9] sm:$0xff] }
 0x203   : > { %785 = vst.msk [vmem:[#allocation4 + $0x10b] sm:$0xff] %vm649_vm6, %v779_v42  ;;  %v1275_v8 = vadd.f32 %v1273_v3, %v1267_v0  ;;  %v1318_v42 = vld [vmem:[#allocation4 + $0xd8] sm:$0xff]  ;;  %v1344_v0 = vstv %s2960_s19  ;;  %s3012_s19 = sld [smem:[#allocation12 + $0x58]] }
 0x204   : > { %v1334_v58 = vld [vmem:[#allocation4 + $0xda] sm:$0xff] }
 0x205   : > { %v1283_v17 = vadd.f32 %v1281_v11, %v1275_v8  ;;  %v1342_v1 = vld [vmem:[#allocation4 + $0xdb] sm:$0xff] }
 0x206   : > { %v792_v52 = vpop.permute.xlu0 %791 }
 0x207   : > { %798 = vst.msk [vmem:[#allocation4 + $0x123] sm:$0xff] %vm649_vm6, %v792_v52  ;;  %v1291_v27 = vadd.f32 %v1289_v20, %v1283_v17  ;;  %v1321_v52 = vmul.f32 %v1320_v41, %v1318_v42  ;;  %v1360_v17 = vstv %s2968_s4  ;;  %s3018_s4 = sld [smem:[#allocation12 + $0x36]] }
 0x20a   : > { %v805_v60 = vpop.permute.xlu0 %804 }
 0x20b   : > { %811 = vst.msk [vmem:[#allocation4 + $0x13b] sm:$0xff] %vm649_vm6, %v805_v60 }
 0x20e   : > { %v742_v4 = vpop.permute.xlu1 %741 }
 0x20f   : > { %747 = vst.msk [vmem:[#allocation4 + $0xcb] sm:$0xff] %vm649_vm6, %v742_v4  ;;  %v1337_v4 = vmul.f32 %v1336_v57, %v1334_v58 }
 0x212   : > { %v755_v12 = vpop.permute.xlu1 %754 }
 0x213   : > { %760 = vst.msk [vmem:[#allocation4 + $0xe3] sm:$0xff] %vm649_vm6, %v755_v12  ;;  %v1345_v12 = vmul.f32 %v1344_v0, %v1342_v1 }
 0x216   : > { %v1263_v21 = vld [vmem:[#allocation4 + $0xc8] sm:$0xff]  ;;  %v768_v24 = vpop.permute.xlu1 %767 }
 0x217   : > { %v1271_v22 = vld [vmem:[#allocation4 + $0xc9] sm:$0xff]  ;;  %v1266_v28 = vmul.f32 %v1264_v48, %v1263_v21  ;;  %773 = vst.msk [vmem:[#allocation4 + $0xfb] sm:$0xff] %vm649_vm6, %v768_v24  ;;  %v1328_v48 = vstv %s2953_s28  ;;  %v1368_v24 = vstv %s2971_s7  ;;  %s3005_s28 = sld [smem:[#allocation12 + $0x4a]]  ;;  %s3020_s7 = sld [smem:[#allocation12 + $0x3d]] }
 0x218   : > { %v1294_v29 = vld [vmem:[#allocation4 + $0xc4] sm:$0xff]  ;;  %v1274_v35 = vmul.f32 %v1272_v62, %v1271_v22  ;;  %v1295_v45 = vld [vmem:[#allocation4 + $0xcc] sm:$0xff]  ;;  %v1329_v61 = vmul.f32 %v1328_v48, %v1326_v49 }
 0x219   : > { %v1279_v30 = vld [vmem:[#allocation4 + $0xca] sm:$0xff]  ;;  %v1297_v54 = vmul.f32 %v1296_v19, %v1294_v29  ;;  %v1268_v34 = vadd.f32 %v1266_v28, %v1260_v25  ;;  %v1298_v60 = vmul.f32 %v1296_v19, %v1295_v45  ;;  %v1392_v45 = vstv %s2981_s12  ;;  %s3030_s12 = sld [smem:[#allocation12 + $0x52]] }
 0x21a   : > { %v1302_v31 = vld [vmem:[#allocation4 + $0xc5] sm:$0xff]  ;;  %v781_v40 = vpop.permute.xlu1 %780  ;;  %v1282_v44 = vmul.f32 %v1280_v6, %v1279_v30  ;;  %v1303_v53 = vld [vmem:[#allocation4 + $0xcd] sm:$0xff]  ;;  %v1350_v11 = vld [vmem:[#allocation4 + $0xdc] sm:$0xff] }
 0x21b   : > { %v1310_v36 = vld [vmem:[#allocation4 + $0xc6] sm:$0xff]  ;;  %v1299_v38 = vadd.f32 %v1297_v54, %v1291_v27  ;;  %v1305_v39 = vmul.f32 %v1304_v26, %v1302_v31  ;;  %v1276_v43 = vadd.f32 %v1274_v35, %v1268_v34  ;;  %786 = vst.msk [vmem:[#allocation4 + $0x113] sm:$0xff] %vm649_vm6, %v781_v40  ;;  %v1311_v62 = vld [vmem:[#allocation4 + $0xce] sm:$0xff]  ;;  %v1306_v3 = vmul.f32 %v1304_v26, %v1303_v53  ;;  %v1358_v19 = vld [vmem:[#allocation4 + $0xdd] sm:$0xff] }
 0x21c   : > { %v1287_v37 = vld [vmem:[#allocation4 + $0xcb] sm:$0xff]  ;;  %v1313_v47 = vmul.f32 %v1312_v33, %v1310_v36  ;;  %v1319_v6 = vld [vmem:[#allocation4 + $0xe0] sm:$0xff]  ;;  %v1314_v9 = vmul.f32 %v1312_v33, %v1311_v62  ;;  %v1353_v22 = vmul.f32 %v1352_v10, %v1350_v11  ;;  %v1361_v30 = vmul.f32 %v1360_v17, %v1358_v19  ;;  %v1398_v53 = vld [vmem:[#allocation4 + $0xf3] sm:$0xff] }
 0x21d   : > { %v1307_v46 = vadd.f32 %v1305_v39, %v1299_v38  ;;  %v1284_v50 = vadd.f32 %v1282_v44, %v1276_v43  ;;  %v1290_v51 = vmul.f32 %v1288_v15, %v1287_v37  ;;  %v1327_v14 = vld [vmem:[#allocation4 + $0xe1] sm:$0xff]  ;;  %v1322_v18 = vmul.f32 %v1320_v41, %v1319_v6  ;;  %v1374_v31 = vld [vmem:[#allocation4 + $0xf0] sm:$0xff] }
 0x21e   : > { %v794_v56 = vpop.permute.xlu1 %793  ;;  %v1335_v20 = vld [vmem:[#allocation4 + $0xe2] sm:$0xff]  ;;  %v1330_v26 = vmul.f32 %v1328_v48, %v1327_v14  ;;  %v1376_v54 = vstv %s2975_s8  ;;  %v1384_v38 = vstv %s2977_s24  ;;  %v1382_v39 = vld [vmem:[#allocation4 + $0xf1] sm:$0xff]  ;;  %v1408_v62 = vstv %s2988_s21  ;;  %v1383_v1 = vld [vmem:[#allocation4 + $0xf9] sm:$0xff]  ;;  %s3023_s8 = sld [smem:[#allocation12 + $0x44]]  ;;  %s3026_s24 = sld [smem:[#allocation12 + $0x4b]] }
 0x21f   : > { %v1315_v55 = vadd.f32 %v1313_v47, %v1307_v46  ;;  %v1292_v59 = vadd.f32 %v1290_v51, %v1284_v50  ;;  %799 = vst.msk [vmem:[#allocation4 + $0x12b] sm:$0xff] %vm649_vm6, %v794_v56  ;;  %v1366_v28 = vld [vmem:[#allocation4 + $0xde] sm:$0xff]  ;;  %v1338_v34 = vmul.f32 %v1336_v57, %v1335_v20  ;;  %v1377_v42 = vmul.f32 %v1376_v54, %v1374_v31  ;;  %v1390_v46 = vld [vmem:[#allocation4 + $0xf2] sm:$0xff]  ;;  %v1367_v50 = vld [vmem:[#allocation4 + $0xe6] sm:$0xff]  ;;  %s3036_s21 = sld [smem:[#allocation12 + $0x60]] }
 0x220   : > { %v1343_v29 = vld [vmem:[#allocation4 + $0xe3] sm:$0xff]  ;;  %v1369_v37 = vmul.f32 %v1368_v24, %v1366_v28  ;;  %v1385_v49 = vmul.f32 %v1384_v38, %v1382_v39  ;;  %v1393_v57 = vmul.f32 %v1392_v45, %v1390_v46  ;;  %v1414_v6 = vld [vmem:[#allocation4 + $0xf5] sm:$0xff] }
 0x221   : > { %v1323_v63 = vadd.f32 %v1321_v52, %v1315_v55  ;;  %v1300_v2 = vadd.f32 %v1298_v60, %v1292_v59  ;;  %v1351_v35 = vld [vmem:[#allocation4 + $0xe4] sm:$0xff]  ;;  %v1346_v41 = vmul.f32 %v1344_v0, %v1343_v29  ;;  %v1400_v52 = vstv %s2984_s18  ;;  %v1375_v59 = vld [vmem:[#allocation4 + $0xf8] sm:$0xff]  ;;  %s3033_s18 = sld [smem:[#allocation12 + $0x59]] }
 0x222   : > { %v807_v7 = vpop.permute.xlu1 %806  ;;  %v1359_v43 = vld [vmem:[#allocation4 + $0xe5] sm:$0xff]  ;;  %v1354_v48 = vmul.f32 %v1352_v10, %v1351_v35  ;;  %v1401_v0 = vmul.f32 %v1400_v52, %v1398_v53  ;;  %v1424_v10 = vstv %s2994_s26  ;;  %v1422_v14 = vld [vmem:[#allocation4 + $0xf6] sm:$0xff]  ;;  %s3041_s26 = sld [smem:[#allocation12 + $0x3e]] }
 0x223   : > { %v1331_v5 = vadd.f32 %v1329_v61, %v1323_v63  ;;  %v1308_v8 = vadd.f32 %v1306_v3, %v1300_v2  ;;  %812 = vst.msk [vmem:[#allocation4 + $0x143] sm:$0xff] %vm649_vm6, %v807_v7  ;;  %v1362_v56 = vmul.f32 %v1360_v17, %v1359_v43  ;;  %v1370_v61 = vmul.f32 %v1368_v24, %v1367_v50  ;;  %v1406_v63 = vld [vmem:[#allocation4 + $0xf4] sm:$0xff]  ;;  %v1430_v19 = vld [vmem:[#allocation4 + $0x108] sm:$0xff] }
 0x224   : > { %v1391_v7 = vld [vmem:[#allocation4 + $0xfa] sm:$0xff]  ;;  %v1438_v28 = vld [vmem:[#allocation4 + $0x109] sm:$0xff] }
 0x225   : > { %v1339_v15 = vadd.f32 %v1337_v4, %v1331_v5  ;;  %v1316_v16 = vadd.f32 %v1314_v9, %v1308_v8  ;;  %v1416_v4 = vstv %s2991_s22  ;;  %v1378_v5 = vmul.f32 %v1376_v54, %v1375_v59  ;;  %v1415_v54 = vld [vmem:[#allocation4 + $0xfd] sm:$0xff]  ;;  %v1431_v46 = vld [vmem:[#allocation4 + $0x110] sm:$0xff]  ;;  %s3039_s22 = sld [smem:[#allocation12 + $0x37]] }
 0x226   : > { %v1409_v9 = vmul.f32 %v1408_v62, %v1406_v63  ;;  %v1417_v17 = vmul.f32 %v1416_v4, %v1414_v6  ;;  %v1418_v43 = vmul.f32 %v1416_v4, %v1415_v54  ;;  %v1462_v50 = vld [vmem:[#allocation4 + $0x10c] sm:$0xff]  ;;  %v1486_v6 = vld [vmem:[#allocation4 + $0x120] sm:$0xff] }
 0x227   : > { %v1347_v21 = vadd.f32 %v1345_v12, %v1339_v15  ;;  %v1324_v25 = vadd.f32 %v1322_v18, %v1316_v16  ;;  %v1386_v12 = vmul.f32 %v1384_v38, %v1383_v1  ;;  %v1399_v15 = vld [vmem:[#allocation4 + $0xfb] sm:$0xff]  ;;  %v1432_v18 = vstv %s2997_s27  ;;  %v1447_v59 = vld [vmem:[#allocation4 + $0x112] sm:$0xff]  ;;  %s3044_s27 = sld [smem:[#allocation12 + $0x45]] }
 0x228   : > { %v1423_v38 = vld [vmem:[#allocation4 + $0xfe] sm:$0xff]  ;;  %v1478_v1 = vld [vmem:[#allocation4 + $0x10e] sm:$0xff] }
 0x229   : > { %v1355_v27 = vadd.f32 %v1353_v22, %v1347_v21  ;;  %v1332_v33 = vadd.f32 %v1330_v26, %v1324_v25  ;;  %v1394_v21 = vmul.f32 %v1392_v45, %v1391_v7  ;;  %v1407_v22 = vld [vmem:[#allocation4 + $0xfc] sm:$0xff]  ;;  %v1425_v25 = vmul.f32 %v1424_v10, %v1422_v14 }
 0x22a   : > { %v1440_v26 = vstv %s2999_s9  ;;  %v1494_v14 = vld [vmem:[#allocation4 + $0x121] sm:$0xff]  ;;  %s3047_s9 = sld [smem:[#allocation12 + $0x4c]] }
 0x22b   : > { %v1363_v36 = vadd.f32 %v1361_v30, %v1355_v27  ;;  %v1340_v40 = vadd.f32 %v1338_v34, %v1332_v33  ;;  %v1402_v27 = vmul.f32 %v1400_v52, %v1399_v15  ;;  %v1433_v30 = vmul.f32 %v1432_v18, %v1430_v19  ;;  %v1446_v34 = vld [vmem:[#allocation4 + $0x10a] sm:$0xff] }
 0x22c   : > { %v1448_v33 = vstv %s3002_s13  ;;  %v1439_v52 = vld [vmem:[#allocation4 + $0x111] sm:$0xff]  ;;  %s3051_s13 = sld [smem:[#allocation12 + $0x53]] }
 0x22d   : > { %v1371_v44 = vadd.f32 %v1369_v37, %v1363_v36  ;;  %v1348_v47 = vadd.f32 %v1346_v41, %v1340_v40  ;;  %v1410_v36 = vmul.f32 %v1408_v62, %v1407_v22  ;;  %v1441_v37 = vmul.f32 %v1440_v26, %v1438_v28  ;;  %v1454_v41 = vld [vmem:[#allocation4 + $0x10b] sm:$0xff] }
 0x22e   : > { %v1456_v40 = vstv %s3005_s28  ;;  %v1480_v62 = vstv %s3015_s30  ;;  %s3054_s28 = sld [smem:[#allocation12 + $0x5a]]  ;;  %s2422_s30 = smov 16  }
 0x22f   : > { %v1379_v51 = vadd.f32 %v1377_v42, %v1371_v44  ;;  %v1356_v55 = vadd.f32 %v1354_v48, %v1348_v47  ;;  %v1449_v44 = vmul.f32 %v1448_v33, %v1446_v34  ;;  %v1426_v48 = vmul.f32 %v1424_v10, %v1423_v38  ;;  %v1487_v34 = vld [vmem:[#allocation4 + $0x128] sm:$0xff] }
 0x230   : > { %v1518_v38 = vld [vmem:[#allocation4 + $0x124] sm:$0xff] }
 0x231   : > { %v1387_v58 = vadd.f32 %v1385_v49, %v1379_v51  ;;  %v1364_v60 = vadd.f32 %v1362_v56, %v1356_v55  ;;  %v1464_v49 = vstv %s3009_s29  ;;  %v1457_v51 = vmul.f32 %v1456_v40, %v1454_v41  ;;  %s3057_s29 = sld [smem:[#allocation12 + $0x61]] }
 0x232   : > { %v1472_v56 = vstv %s3012_s19  ;;  %s3060_s19 = sld [smem:[#allocation7]] }
 0x233   : > { %v1395_v2 = vadd.f32 %v1393_v57, %v1387_v58  ;;  %v1372_v3 = vadd.f32 %v1370_v61, %v1364_v60  ;;  %v1434_v57 = vmul.f32 %v1432_v18, %v1431_v46  ;;  %v1470_v58 = vld [vmem:[#allocation4 + $0x10d] sm:$0xff]  ;;  %v1465_v61 = vmul.f32 %v1464_v49, %v1462_v50  ;;  %v1471_v18 = vld [vmem:[#allocation4 + $0x115] sm:$0xff] }
 0x234   : > { %v1473_v4 = vmul.f32 %v1472_v56, %v1470_v58  ;;  %v1474_v54 = vmul.f32 %v1472_v56, %v1471_v18  ;;  %v1503_v46 = vld [vmem:[#allocation4 + $0x12a] sm:$0xff]  ;;  %v1542_v58 = vld [vmem:[#allocation4 + $0x138] sm:$0xff] }
 0x235   : > { %v1403_v8 = vadd.f32 %v1401_v0, %v1395_v2  ;;  %v1380_v11 = vadd.f32 %v1378_v5, %v1372_v3  ;;  %v1442_v0 = vmul.f32 %v1440_v26, %v1439_v52  ;;  %v1455_v2 = vld [vmem:[#allocation4 + $0x113] sm:$0xff]  ;;  %v1488_v5 = vstv %s3018_s4  ;;  %v1534_v52 = vld [vmem:[#allocation4 + $0x126] sm:$0xff]  ;;  %s2423_s4 = smov 32  }
 0x236   : > { %v1479_v26 = vld [vmem:[#allocation4 + $0x116] sm:$0xff] }
 0x237   : > { %v1411_v16 = vadd.f32 %v1409_v9, %v1403_v8  ;;  %v1388_v20 = vadd.f32 %v1386_v12, %v1380_v11  ;;  %v1450_v8 = vmul.f32 %v1448_v33, %v1447_v59  ;;  %v1463_v9 = vld [vmem:[#allocation4 + $0x114] sm:$0xff]  ;;  %v1481_v11 = vmul.f32 %v1480_v62, %v1478_v1 }
 0x238   : > { %v1496_v12 = vstv %s3020_s7  ;;  %v1550_v1 = vld [vmem:[#allocation4 + $0x139] sm:$0xff]  ;;  %s2424_s7 = smov 48  }
 0x239   : > { %v1419_v24 = vadd.f32 %v1417_v17, %v1411_v16  ;;  %v1396_v29 = vadd.f32 %v1394_v21, %v1388_v20  ;;  %v1458_v16 = vmul.f32 %v1456_v40, %v1455_v2  ;;  %v1489_v17 = vmul.f32 %v1488_v5, %v1486_v6  ;;  %v1502_v21 = vld [vmem:[#allocation4 + $0x122] sm:$0xff] }
 0x23a   : > { %v1504_v20 = vstv %s3023_s8  ;;  %v1495_v40 = vld [vmem:[#allocation4 + $0x129] sm:$0xff]  ;;  %s2425_s8 = smov 64  }
 0x23b   : > { %v1427_v31 = vadd.f32 %v1425_v25, %v1419_v24  ;;  %v1404_v35 = vadd.f32 %v1402_v27, %v1396_v29  ;;  %v1466_v24 = vmul.f32 %v1464_v49, %v1463_v9  ;;  %v1497_v25 = vmul.f32 %v1496_v12, %v1494_v14  ;;  %v1510_v27 = vld [vmem:[#allocation4 + $0x123] sm:$0xff] }
 0x23c   : > { %v1512_v29 = vstv %s3026_s24  ;;  %v1536_v49 = vstv %s3036_s21  ;;  %s2426_s24 = smov 80   ;;  %s2197_s21 = sshll.u32 %s2474_s2, 7 }
 0x23d   : > { %v1435_v39 = vadd.f32 %v1433_v30, %v1427_v31  ;;  %v1412_v42 = vadd.f32 %v1410_v36, %v1404_v35  ;;  %v1505_v31 = vmul.f32 %v1504_v20, %v1502_v21  ;;  %v1482_v36 = vmul.f32 %v1480_v62, %v1479_v26  ;;  %v1543_v21 = vld [vmem:[#allocation4 + $0x140] sm:$0xff]  ;;  %s2429_s2 = smov [#allocation13]  }
 0x23e   : > { %v1574_v26 = vld [vmem:[#allocation4 + $0x13c] sm:$0xff] }
 0x23f   : > { %v1443_v45 = vadd.f32 %v1441_v37, %v1435_v39  ;;  %v1420_v47 = vadd.f32 %v1418_v43, %v1412_v42  ;;  %v1520_v37 = vstv %s3030_s12  ;;  %v1513_v39 = vmul.f32 %v1512_v29, %v1510_v27  ;;  %s2427_s12 = smov 96  }
 0x240   : > { %v1528_v43 = vstv %s3033_s18  ;;  %s2428_s18 = smov 112  }
 0x241   : > { %v1451_v53 = vadd.f32 %v1449_v44, %v1443_v45  ;;  %v1428_v55 = vadd.f32 %v1426_v48, %v1420_v47  ;;  %v1490_v44 = vmul.f32 %v1488_v5, %v1487_v34  ;;  %v1526_v45 = vld [vmem:[#allocation4 + $0x125] sm:$0xff]  ;;  %v1521_v48 = vmul.f32 %v1520_v37, %v1518_v38  ;;  %v1527_v5 = vld [vmem:[#allocation4 + $0x12d] sm:$0xff] }
 0x242   : > { %v1529_v56 = vmul.f32 %v1528_v43, %v1526_v45  ;;  %v1530_v18 = vmul.f32 %v1528_v43, %v1527_v5  ;;  %v1559_v34 = vld [vmem:[#allocation4 + $0x142] sm:$0xff] }
 0x243   : > { %v1459_v60 = vadd.f32 %v1457_v51, %v1451_v53  ;;  %v1436_v63 = vadd.f32 %v1434_v57, %v1428_v55  ;;  %v1498_v51 = vmul.f32 %v1496_v12, %v1495_v40  ;;  %v1511_v53 = vld [vmem:[#allocation4 + $0x12b] sm:$0xff]  ;;  %v1544_v57 = vstv %s3039_s22  ;;  %v1590_v40 = vld [vmem:[#allocation4 + $0x13e] sm:$0xff]  ;;  %s201_s22 = scalar_lea.vmem [#allocation13], %s2043_s11  ;;  %s2336_s11 = sshll.u32 %s2429_s2, 4  ;;  %s2337_s11 = int_to_ptr.vmem [resolvable:$false] %s2336_s11 }
 0x244   : > { %v1535_v12 = vld [vmem:[#allocation4 + $0x12e] sm:$0xff] }
 0x245   : > { %v1467_v3 = vadd.f32 %v1465_v61, %v1459_v60  ;;  %v1444_v7 = vadd.f32 %v1442_v0, %v1436_v63  ;;  %v1506_v60 = vmul.f32 %v1504_v20, %v1503_v46  ;;  %v1519_v61 = vld [vmem:[#allocation4 + $0x12c] sm:$0xff]  ;;  %v1537_v63 = vmul.f32 %v1536_v49, %v1534_v52  ;;  %v1575_v46 = vld [vmem:[#allocation4 + $0x144] sm:$0xff] }
 0x246   : > { %v1552_v0 = vstv %s3041_s26  ;;  %v1583_v52 = vld [vmem:[#allocation4 + $0x145] sm:$0xff]  ;;  %s1953_s26 = sshll.u32 %s201_s22, 4  ;;  %s3228_s26 = int_to_ptr.vmem [resolvable:$true] %s1953_s26 }
 0x247   : > { %v1475_v10 = vadd.f32 %v1473_v4, %v1467_v3  ;;  %v1452_v15 = vadd.f32 %v1450_v8, %v1444_v7  ;;  %v1514_v3 = vmul.f32 %v1512_v29, %v1511_v53  ;;  %v1545_v4 = vmul.f32 %v1544_v57, %v1542_v58  ;;  %v1558_v8 = vld [vmem:[#allocation4 + $0x13a] sm:$0xff]  ;;  %p2339_p0 = scmp.lt.s32.totalorder %s3228_s26, %s2337_s11 }
 0x248   : > { %v1560_v7 = vstv %s3044_s27  ;;  %v1551_v29 = vld [vmem:[#allocation4 + $0x141] sm:$0xff] }
 0x249   : > { %v1483_v19 = vadd.f32 %v1481_v11, %v1475_v10  ;;  %v1460_v22 = vadd.f32 %v1458_v16, %v1452_v15  ;;  %v1522_v10 = vmul.f32 %v1520_v37, %v1519_v61  ;;  %v1553_v11 = vmul.f32 %v1552_v0, %v1550_v1  ;;  %v1566_v16 = vld [vmem:[#allocation4 + $0x13b] sm:$0xff] }
 0x24a   : > { %v1568_v15 = vstv %s3047_s9  ;;  %v1592_v37 = vstv %s3057_s29  ;;  %v1562_v45 = vmul.f32 %v1560_v7, %v1559_v34  ;;  %s2332_s29 = scalar_lea.vmem %s3228_s26, 128 }
 0x24b   : > { %v1491_v28 = vadd.f32 %v1489_v17, %v1483_v19  ;;  %v1468_v30 = vadd.f32 %v1466_v24, %v1460_v22  ;;  %v1561_v19 = vmul.f32 %v1560_v7, %v1558_v8  ;;  %v1538_v24 = vmul.f32 %v1536_v49, %v1535_v12  ;;  %v1922_v8 = vld [vmem:[%s2591_s23] sm:$0xff]  ;;  %p2333_p9 = scmp.ne.s32.totalorder %s3228_s26, %s2332_s29  ;;  %s2338_s23 = scalar_lea.vmem %s2337_s11, 256 }
 0x24c   : > { %v1597_v49 = vstv %s3060_s19  ;;  %p2340_p3 = scmp.lt.s32.totalorder %s2338_s23, %s2332_s29 }
 0x24d   : > { %v1499_v33 = vadd.f32 %v1497_v25, %v1491_v28  ;;  %v1476_v35 = vadd.f32 %v1474_v54, %v1468_v30  ;;  %v1576_v25 = vstv %s3051_s13  ;;  %v1569_v28 = vmul.f32 %v1568_v15, %v1566_v16  ;;  %s3226_s13 = scalar_lea.hbm %s3273_s3, %s2197_s21  ;;  %p2334_p13 = pnand %p2333_p9, %p3314_p11 }
 0x24e   : > { %v1584_v54 = vstv %s3054_s28  ;;  %s1939_s28 = scalar_lea.sflag [#allocation10], %s2585_s10  ;;  %p2341_p12 = por %p2340_p3, %p2339_p0 }
 0x24f   : > { %v1507_v41 = vadd.f32 %v1505_v31, %v1499_v33  ;;  %v1484_v42 = vadd.f32 %v1482_v36, %v1476_v35  ;;  %v1546_v31 = vmul.f32 %v1544_v57, %v1543_v21  ;;  %v1582_v33 = vld [vmem:[#allocation4 + $0x13d] sm:$0xff]  ;;  %v1577_v36 = vmul.f32 %v1576_v25, %v1574_v26  ;;  %v1591_v57 = vld [vmem:[#allocation4 + $0x146] sm:$0xff]  ;;  %p2335_p7 = pneg %p2334_p13 }
 0x250   : > { %v1585_v43 = vmul.f32 %v1584_v54, %v1582_v33 }
 0x251   : > { %v1515_v47 = vadd.f32 %v1513_v39, %v1507_v41  ;;  %v1492_v50 = vadd.f32 %v1490_v44, %v1484_v42  ;;  %v1554_v39 = vmul.f32 %v1552_v0, %v1551_v29  ;;  %v1567_v41 = vld [vmem:[#allocation4 + $0x143] sm:$0xff]  ;;  %p2342_p5 = pnand %p2341_p12, %p2335_p7 }
 0x253   : > { %v1523_v55 = vadd.f32 %v1521_v48, %v1515_v47  ;;  %v1500_v59 = vadd.f32 %v1498_v51, %v1492_v50  ;;  %v1593_v48 = vmul.f32 %v1592_v37, %v1590_v40  ;;  %v1570_v51 = vmul.f32 %v1568_v15, %v1567_v41 }
 0x255   : > { %v1531_v62 = vadd.f32 %v1529_v56, %v1523_v55  ;;  %v1508_v2 = vadd.f32 %v1506_v60, %v1500_v59  ;;  %v1578_v56 = vmul.f32 %v1576_v25, %v1575_v46  ;;  %v1586_v60 = vmul.f32 %v1584_v54, %v1583_v52 }
 0x257   : > { %v1539_v6 = vadd.f32 %v1537_v63, %v1531_v62  ;;  %v1516_v9 = vadd.f32 %v1514_v3, %v1508_v2  ;;  %v1594_v63 = vmul.f32 %v1592_v37, %v1591_v57 }
 0x259   : > { %v1547_v14 = vadd.f32 %v1545_v4, %v1539_v6  ;;  %v1524_v17 = vadd.f32 %v1522_v10, %v1516_v9 }
 0x25b   : > { %v1555_v20 = vadd.f32 %v1553_v11, %v1547_v14  ;;  %v1532_v22 = vadd.f32 %v1530_v18, %v1524_v17 }
 0x25d   : > { %v1563_v27 = vadd.f32 %v1561_v19, %v1555_v20  ;;  %v1540_v30 = vadd.f32 %v1538_v24, %v1532_v22 }
 0x25f   : > { %v1571_v35 = vadd.f32 %v1569_v28, %v1563_v27  ;;  %v1548_v38 = vadd.f32 %v1546_v31, %v1540_v30 }
 0x261   : > { %v1579_v42 = vadd.f32 %v1577_v36, %v1571_v35  ;;  %v1556_v44 = vadd.f32 %v1554_v39, %v1548_v38 }
 0x263   : > { %v1587_v47 = vadd.f32 %v1585_v43, %v1579_v42  ;;  %v1564_v50 = vadd.f32 %v1562_v45, %v1556_v44 }
 0x265   : > { %v1595_v53 = vadd.f32 %v1593_v48, %v1587_v47  ;;  %v1572_v55 = vadd.f32 %v1570_v51, %v1564_v50 }
 0x267   : > { %v1598_v58 = vadd.f32 %v1597_v49, %v1595_v53  ;;  %v1580_v59 = vadd.f32 %v1578_v56, %v1572_v55 }
 0x269   : > { %v2175_v61 = vmul.f32 -1.442695, %v1598_v58  ;;  %v1588_v62 = vadd.f32 %v1586_v60, %v1580_v59 }
 0x26b   : > { %2279 = vpow2.f32 %v2175_v61  ;;  %v1596_v0 = vadd.f32 %v1594_v63, %v1588_v62 }
 0x26d   : > { %v1599_v1 = vadd.f32 %v1597_v49, %v1596_v0 }
 0x26f   : > { %v2176_v2 = vmul.f32 -1.442695, %v1599_v1 }
 0x271   : > { %2281 = vpow2.f32 %v2176_v2 }
 0x275   : > { %v2280_v3 = vpop.eup %2279 }
 0x276   : > { %v1606_v4 = vadd.f32 1.0, %v2280_v3  ;;  %v1926_v3 = vsub.s32 0, %v2603_v23 }
 0x278   : > { %2283 = vrcp.f32 %v1606_v4  ;;  %v1930_v4 = vsub.s32 1, %v2603_v23 }
 0x27b   : > { %v2282_v5 = vpop.eup %2281 }
 0x27c   : > { %v1607_v6 = vadd.f32 1.0, %v2282_v5 }
 0x27e   : > { %2285 = vrcp.f32 %v1607_v6 }
 0x282   : > { %v2284_v7 = vpop.eup %2283 }
 0x283   : > { %1612 = vst.msk [vmem:[#allocation5] sm:$0xff] %vm649_vm6, %v2284_v7 }
 0x288   : > { %v2286_v9 = vpop.eup %2285 }
 0x289   : > { %1613 = vst.msk [vmem:[#allocation5 + $0x8] sm:$0xff] %vm649_vm6, %v2286_v9  ;;  %vm1731_vm6 = vmand %vm3158_vm4, %vm3163_vm5 }
 0x28a   : > { %v2177_v10 = vld.sshfl [vmem:[#allocation5 + $0x1] sm:$0x1 pattern:$0x75316420]  ;;  %v1614_v11 = vld [vmem:[#allocation5] sm:$0x1] }
 0x28b   : > { %v1633_v12 = vrot.slane %v2177_v10, %v2606_v32  ;;  %1617 = vst.msk [vmem:[#allocation6] sm:$0x1] %vm3068_vm7, %v1614_v11  ;;  %v2178_v14 = vld.sshfl [vmem:[#allocation5 + $0x2] sm:$0x1 pattern:$0x75316420] }
 0x28c   : > { %v1656_v15 = vrot.slane %v2178_v14, %v2606_v32  ;;  %v2179_v16 = vld.sshfl [vmem:[#allocation5 + $0x3] sm:$0x1 pattern:$0x75316420] }
 0x28d   : > { %1634 = vrot.lane.b32.xlu0 %v1633_v12, %s2422_s30  ;;  %v1679_v20 = vrot.slane %v2179_v16, %v2606_v32  ;;  %v2180_v22 = vld.sshfl [vmem:[#allocation5 + $0x4] sm:$0x1 pattern:$0x75316420] }
 0x28e   : > { %v1702_v25 = vrot.slane %v2180_v22, %v2606_v32  ;;  %v2181_v28 = vld.sshfl [vmem:[#allocation5 + $0x5] sm:$0x1 pattern:$0x75316420] }
 0x28f   : > { %v1725_v27 = vrot.slane %v2181_v28, %v2606_v32  ;;  %v2182_v54 = vld.sshfl [vmem:[#allocation5 + $0x6] sm:$0x1 pattern:$0x75316420] }
 0x290   : > { %v2184_v17 = vld.sshfl [vmem:[#allocation5 + $0x9] sm:$0x1 pattern:$0x75316420]  ;;  %v1779_v18 = vld [vmem:[#allocation5 + $0x8] sm:$0x1]  ;;  %v1748_v33 = vrot.slane %v2182_v54, %v2606_v32 }
 0x291   : > { %1657 = vrot.lane.b32.xlu0 %v1656_v15, %s2423_s4  ;;  %v1796_v19 = vrot.slane %v2184_v17, %v2606_v32  ;;  %1780 = vst.msk [vmem:[#allocation6 + $0x1] sm:$0x1] %vm3068_vm7, %v1779_v18  ;;  %v2185_v21 = vld.sshfl [vmem:[#allocation5 + $0xa] sm:$0x1 pattern:$0x75316420] }
 0x292   : > { %v1816_v24 = vrot.slane %v2185_v21, %v2606_v32  ;;  %v2186_v26 = vld.sshfl [vmem:[#allocation5 + $0xb] sm:$0x1 pattern:$0x75316420]  ;;  %vm3182_vm7 = vcmp.ge.s32.totalorder %v286_v13, 96 }
 0x293   : > { %1797 = vrot.lane.b32.xlu1 %v1796_v19, %s2422_s30  ;;  %v1836_v29 = vrot.slane %v2186_v26, %v2606_v32  ;;  %v2187_v30 = vld.sshfl [vmem:[#allocation5 + $0xc] sm:$0x1 pattern:$0x75316420]  ;;  %vm1754_vm9 = vmand %vm3182_vm7, %vm3187_vm8 }
 0x294   : > { %v1856_v31 = vrot.slane %v2187_v30, %v2606_v32  ;;  %v2188_v34 = vld.sshfl [vmem:[#allocation5 + $0xd] sm:$0x1 pattern:$0x75316420] }
 0x295   : > { %1680 = vrot.lane.b32.xlu0 %v1679_v20, %s2424_s7  ;;  %v2183_v35 = vld.sshfl [vmem:[#allocation5 + $0x7] sm:$0x1 pattern:$0x75316420]  ;;  %v1876_v36 = vrot.slane %v2188_v34, %v2606_v32 }
 0x296   : > { %v1771_v37 = vrot.slane %v2183_v35, %v2606_v32  ;;  %v2189_v38 = vld.sshfl [vmem:[#allocation5 + $0xe] sm:$0x1 pattern:$0x75316420] }
 0x297   : > { %1817 = vrot.lane.b32.xlu1 %v1816_v24, %s2423_s4  ;;  %v1896_v39 = vrot.slane %v2189_v38, %v2606_v32  ;;  %v2190_v40 = vld.sshfl [vmem:[#allocation5 + $0xf] sm:$0x1 pattern:$0x75316420] }
 0x298   : > { %v1916_v41 = vrot.slane %v2190_v40, %v2606_v32 }
 0x299   : > { %1703 = vrot.lane.b32.xlu0 %v1702_v25, %s2425_s8 }
 0x29b   : > { %1837 = vrot.lane.b32.xlu1 %v1836_v29, %s2424_s7 }
 0x29d   : > { %1726 = vrot.lane.b32.xlu0 %v1725_v27, %s2426_s24 }
 0x29f   : > { %1857 = vrot.lane.b32.xlu1 %v1856_v31, %s2425_s8 }
 0x2a1   : > { %1749 = vrot.lane.b32.xlu0 %v1748_v33, %s2427_s12 }
 0x2a3   : > { %1877 = vrot.lane.b32.xlu1 %v1876_v36, %s2426_s24 }
 0x2a5   : > { %1772 = vrot.lane.b32.xlu0 %v1771_v37, %s2428_s18 }
 0x2a7   : > { %1897 = vrot.lane.b32.xlu1 %v1896_v39, %s2427_s12 }
 0x2ab   : > { %1917 = vrot.lane.b32.xlu1 %v1916_v41, %s2428_s18 }
 0x2ff   : > { %v1635_v45 = vpop.permute.xlu0 %1634 }
 0x300   : > { %1640 = vst.msk [vmem:[#allocation6] sm:$0x1] %vm1639_vm10, %v1635_v45 }
 0x303   : > { %v1658_v48 = vpop.permute.xlu0 %1657 }
 0x304   : > { %1663 = vst.msk [vmem:[#allocation6] sm:$0x1] %vm1662_vm13, %v1658_v48 }
 0x305   : > { %v1798_v49 = vpop.permute.xlu1 %1797 }
 0x306   : > { %1800 = vst.msk [vmem:[#allocation6 + $0x1] sm:$0x1] %vm1639_vm10, %v1798_v49  ;;  %vm1775_vm10 = vcmp.ge.s32.totalorder %v286_v13, 112 }
 0x307   : > { %v1681_v52 = vpop.permute.xlu0 %1680  ;;  %vm1777_vm12 = vmand %vm1775_vm10, %vm1776_vm11 }
 0x308   : > { %1686 = vst.msk [vmem:[#allocation6] sm:$0x1] %vm1685_vm0, %v1681_v52 }
 0x309   : > { %v1818_v53 = vpop.permute.xlu1 %1817 }
 0x30a   : > { %1820 = vst.msk [vmem:[#allocation6 + $0x1] sm:$0x1] %vm1662_vm13, %v1818_v53 }
 0x30b   : > { %v1704_v57 = vpop.permute.xlu0 %1703 }
 0x30c   : > { %1709 = vst.msk [vmem:[#allocation6] sm:$0x1] %vm1708_vm3, %v1704_v57 }
 0x30d   : > { %v1838_v58 = vpop.permute.xlu1 %1837 }
 0x30e   : > { %1840 = vst.msk [vmem:[#allocation6 + $0x1] sm:$0x1] %vm1685_vm0, %v1838_v58 }
 0x30f   : > { %v1727_v61 = vpop.permute.xlu0 %1726 }
 0x310   : > { %1732 = vst.msk [vmem:[#allocation6] sm:$0x1] %vm1731_vm6, %v1727_v61 }
 0x311   : > { %v1858_v62 = vpop.permute.xlu1 %1857 }
 0x312   : > { %1860 = vst.msk [vmem:[#allocation6 + $0x1] sm:$0x1] %vm1708_vm3, %v1858_v62 }
 0x313   : > { %v1750_v63 = vpop.permute.xlu0 %1749 }
 0x314   : > { %1755 = vst.msk [vmem:[#allocation6] sm:$0x1] %vm1754_vm9, %v1750_v63 }
 0x315   : > { %v1878_v0 = vpop.permute.xlu1 %1877 }
 0x316   : > { %1880 = vst.msk [vmem:[#allocation6 + $0x1] sm:$0x1] %vm1731_vm6, %v1878_v0 }
 0x317   : > { %v1773_v13 = vpop.permute.xlu0 %1772 }
 0x318   : > { %1778 = vst.msk [vmem:[#allocation6] sm:$0x1] %vm1777_vm12, %v1773_v13 }
 0x319   : > { %v1898_v1 = vpop.permute.xlu1 %1897 }
 0x31a   : > { %1900 = vst.msk [vmem:[#allocation6 + $0x1] sm:$0x1] %vm1754_vm9, %v1898_v1 }
 0x31d   : > { %v1918_v2 = vpop.permute.xlu1 %1917 }
 0x31e   : > { %1920 = vst.msk [vmem:[#allocation6 + $0x1] sm:$0x1] %vm1777_vm12, %v1918_v2 }
 0x325   : > { %v1921_v5 = vld [vmem:[#allocation6] sm:$0x3] }
 0x326   : > { %v1927_v6 = vrot.slane %v1921_v5, %v1926_v3  ;;  %v1931_v7 = vrot.slane %v1921_v5, %v1930_v4 }
 0x328   : > { %v1932_v9 = vcombine.low %v1927_v6, %v1931_v7 }
 0x32a   : > { %v1934_v10 = vmul.f32 %v1932_v9, %v1922_v8 }
 0x32c   : > { %1937 = vst [vmem:[%s201_s22] sm:$0xff] %v1934_v10 }
 0x32d   : > { %2345 = shalt.err (!%p2342_p5)
}
 0x32e   : > { %s2346_s10 = scalar_lea.hbm %s3226_s13, 128  ;;  %s2350_s4 = scalar_lea.hbm %s3273_s3, 256 }
 0x32f   : > { %p2347_p10 = scmp.ne.s32.totalorder %s3226_s13, %s2346_s10  ;;  %p2351_p4 = scmp.lt.u32.totalorder %s3226_s13, %s3273_s3 }
 0x330   : > { %p2352_p6 = scmp.lt.u32.totalorder %s2350_s4, %s2346_s10  ;;  %p2354_p9 = scmp.lt.u32.totalorder %s2346_s10, %s3226_s13 }
 0x331   : > { %p2348_p2 = pnand %p2347_p10, %p3314_p11 }
 0x332   : > { %p2353_p8 = por %p2352_p6, %p2351_p4 }
 0x333   : > { %p2349_p1 = pneg %p2348_p2 }
 0x334   : > { %p2355_p13 = por %p2354_p9, %p2353_p8 }
 0x336   : > { %p2356_p7 = pnand %p2355_p13, %p2349_p1 }
 0x338   : > { %2359 = shalt.err (!%p2356_p7)
}
 0x339   : > { %2204 = dma.vmem_to_hbm [thread:$0]  (%p3314_p11), %s3228_s26, 128, %s3226_s13, %s1939_s28  }
 0x33a PF: > { %s1965_s24 = sand.u32 1, %s2390_s14   ;;  %p3315_p0 = scmp.ne.s32.totalorder %s3278_s20, 0 }
 0x33b   : > { %p3316_p3 = scmp.ge.s32.totalorder %s2402_s17, 2  ;;  %s1966_s12 = scalar_lea.sflag [#allocation10], %s1965_s24 }
 0x33d   : > { %p2215_p12 = pnand %p3316_p3, %p3315_p0 }
 0x33f   : > { %2385 = dma.done.wait (!%p2215_p12), %s1966_s12, 128  }
 0x340   : > { %2387 = vsyncadd (!%p2215_p12), %s1966_s12, 4294967168  ;;  %p18_p5 = scmp.ge.s32.totalorder %s2504_s25, 4   ;;  %s3317_s14 = smov %s2394_s15 }
 0x341   : > { %s3318_s15 = smov %s2398_s16  ;;  %s3319_s16 = smov %s2528_s5 }
 0x342   : > { %s3320_s17 = smov %s2504_s25  ;;  %20 = sbr.rel (!%p18_p5) target bundleno = 8 (0x8), region = 99 }
 0x349   :  { %1971 = vsyncpa [#allocation9], 1 }
 0x34a   :  { %1973 = vsyncpa [#allocation9 + $0x1], 1 }
 0x34b   :  { %1974 = vsyncpa [#allocation10], 1 }
 0x34c   :  { %1976 = vsyncpa [#allocation10 + $0x1], 1 }
 0x34d   :  { %1977 = vsyncpa [#allocation11], 1 }
 0x34e   :  { %1979 = vsyncpa [#allocation11 + $0x1], 1 }

</bundles_post_ra>
